<compile_context>
chip_gen: v6e
topology: v6e:2x2x1
jax: 0.10.0
libtpu: 0.0.40
codegen_flags: <defaults>
</compile_context>

<pallas_src>
import math

import numpy as np
import jax
import jax.numpy as jnp
from jax.experimental import pallas as pl
from jax.experimental.pallas import tpu as pltpu

SQRT_HALF = np.float32(np.sqrt(0.5))   # torch.sqrt(torch.tensor(0.5))
BN_EPS = 1e-5


def _round_up(n, m):
    return ((n + m - 1) // m) * m


def _device_profile():
    """Best-effort TPU-generation probe; conservative fallbacks."""
    kind = ""
    try:
        kind = jax.devices()[0].device_kind.lower()
    except Exception:
        pass
    is_v5e = ("v5 lite" in kind) or ("v5e" in kind) or ("v5litepod" in kind)
    is_multi_tc = ("v7" in kind) or ("7x" in kind)      # v7x: 2 TensorCores/chip
    try:
        vmem_cap = int(pltpu.get_tpu_info().vmem_capacity_bytes)
    except Exception:
        # Conservative (v7x-sized) fallback when the query is unavailable.
        vmem_cap = (128 if (kind and not is_multi_tc) else 64) * (1 << 20)
    if ("v2" in kind) or ("v3" in kind):                # tiny-VMEM legacy parts
        vmem_cap = min(vmem_cap, 16 * (1 << 20))
    return {"kind": kind, "is_v5e": is_v5e, "multi_tc": is_multi_tc,
            "vmem_cap": vmem_cap}


def _make_kernel(R, T, Cp, K, L, mm_dtype, taps_in_mm):
    PAD = (K - 1) // 2

    def kernel(x_ref, fc_w_ref, fc_b_ref,
               conv_w_ref, conv_b_ref,
               bn_s_ref, bn_t_ref,
               fco_w_ref, fco_b_ref, out_ref):
        # --- fc: [R, D_in] @ [D_in, Cp] + b (f32 accumulation) -------------
        h = jnp.dot(x_ref[...], fc_w_ref[...],
                    preferred_element_type=jnp.float32) + fc_b_ref[...]   # [R,Cp]

        # --- "same"-padding validity masks (hoisted out of the layer loop) -
        # Rows are (b, t) flattened with R a multiple of T, so t = row % T.
        # NOTE: masking MUST stay select-based (jnp.where): it is what keeps
        # garbage rows of a partial final grid block from leaking across T
        # boundaries (rolled-in junk is replaced, never multiplied).
        row = jax.lax.broadcasted_iota(jnp.int32, (R, 1), 0)
        t_idx = row % T
        masks = []
        for j in range(K):
            off = j - PAD
            masks.append(None if off == 0 else
                         jnp.logical_and(t_idx + off >= 0, t_idx + off < T))

        for l in range(L):                      # static unroll over conv layers
            res = h                             # residual stream stays f32

            # K shifted copies fused into one wide matmul: [R,K*Cp]@[K*Cp,2Cp].
            h_tap = h.astype(mm_dtype) if taps_in_mm else h
            zero = jnp.array(0.0, h_tap.dtype)
            taps = []
            for j in range(K):
                off = j - PAD
                if off == 0:
                    taps.append(h_tap)
                else:
                    rolled = pltpu.roll(h_tap, shift=(-off) % R, axis=0)
                    taps.append(jnp.where(masks[j], rolled, zero))   # zero pad
            shifted_cat = jnp.concatenate(taps, axis=-1)             # lane-aligned
            if shifted_cat.dtype != mm_dtype:
                shifted_cat = shifted_cat.astype(mm_dtype)

            acc = jnp.dot(shifted_cat, conv_w_ref[l],
                          preferred_element_type=jnp.float32)        # [R, 2Cp]
            acc = acc + conv_b_ref[l]

            # GLU + residual + sqrt(0.5) scale (f32 VPU/EUP), then folded BN.
            glu = acc[:, :Cp] * jax.nn.sigmoid(acc[:, Cp:])          # [R, Cp]
            h = (glu + res) * SQRT_HALF
            h = h * bn_s_ref[l] + bn_t_ref[l]

        # --- fc_out: [R, Cp] @ [Cp, Dp] + b ---------------------------------
        out = jnp.dot(h.astype(mm_dtype), fco_w_ref[...],
                      preferred_element_type=jnp.float32) + fco_b_ref[...]
        out_ref[...] = out.astype(out_ref.dtype)

    return kernel


def conv_layer_pallas(x, params, *, matmul_dtype=jnp.bfloat16,
                      target_rows=None, taps_in_mm_dtype=None,
                      pad_output=None):
    B, T, D_in = x.shape
    conv_w = params["conv_w"]
    L, K, C, _ = conv_w.shape
    rows = B * T

    mm = matmul_dtype
    mm_sz = jnp.dtype(mm).itemsize
    f32_sz = 4

    prof = _device_profile()
    if taps_in_mm_dtype is None:
        # v5e has no bf16 VPU path: build the taps in f32 there.
        taps_in_mm_dtype = not prof["is_v5e"]

    # --- generation-aware budgets -------------------------------------------
    if prof["vmem_cap"] <= 80 * (1 << 20):              # v7x-class (64 MiB VMEM)
        vmem_limit = max(8 * (1 << 20),
                         min(prof["vmem_cap"] - 8 * (1 << 20), 48 * (1 << 20)))
        act_budget = min(24 * (1 << 20), prof["vmem_cap"] // 2)
        default_rows = 512
    else:                                               # v5e / v6e (128 MiB VMEM)
        vmem_limit = 100 * (1 << 20)
        act_budget = 64 * (1 << 20)
        default_rows = 1024
    if target_rows is None:
        target_rows = default_rows

    # --- lane-aligned channel / output widths --------------------------------
    Cp = _round_up(C, 128)                    # pad channels -> vreg/MXU aligned
    Dp_full = _round_up(D_in, 128)
    if pad_output is None:
        # Lane-dense stores on v6e/v7x; on v5e skip padding when it would
        # inflate the f32 writeback by more than 2x (HBM-BW-bound there).
        pad_output = (D_in % 128 != 0) and not (
            prof["is_v5e"] and Dp_full > 2 * D_in)
    Dp = Dp_full if pad_output else D_in

    # --- parameter packing (padded channels are exact zeros everywhere) ------
    fc_w = jnp.zeros((D_in, Cp), mm).at[:, :C].set(params["fc_w"].astype(mm))
    fc_b = jnp.zeros((1, Cp), jnp.float32).at[:, :C].set(
        params["fc_b"].reshape(1, C).astype(jnp.float32))

    conv_w_p = jnp.zeros((L, K, Cp, 2 * Cp), jnp.float32)
    conv_w_p = conv_w_p.at[:, :, :C, :C].set(conv_w[..., :C])          # pass half
    conv_w_p = conv_w_p.at[:, :, :C, Cp:Cp + C].set(conv_w[..., C:])   # gate half
    conv_w_f = conv_w_p.reshape(L, K * Cp, 2 * Cp).astype(mm)          # fused taps

    conv_b = jnp.zeros((L, 1, 2 * Cp), jnp.float32)
    conv_b = conv_b.at[:, 0, :C].set(params["conv_b"][:, :C])
    conv_b = conv_b.at[:, 0, Cp:Cp + C].set(params["conv_b"][:, C:])

    bn_scale_v = params["bn_gamma"] * jax.lax.rsqrt(params["bn_var"] + BN_EPS)
    bn_shift_v = params["bn_beta"] - params["bn_mean"] * bn_scale_v
    bn_scale = jnp.zeros((L, 1, Cp), jnp.float32).at[:, 0, :C].set(bn_scale_v)
    bn_shift = jnp.zeros((L, 1, Cp), jnp.float32).at[:, 0, :C].set(bn_shift_v)

    fco_w = jnp.zeros((Cp, Dp), mm).at[:C, :D_in].set(
        params["fc_out_w"].astype(mm))
    fco_b = jnp.zeros((1, Dp), jnp.float32).at[0, :D_in].set(
        params["fc_out_b"].astype(jnp.float32))

    weights = [fc_w, fc_b, conv_w_f, conv_b, bn_scale, bn_shift, fco_w, fco_b]

    # --- tile selection: dtype-aware VMEM estimate, fill the MXU M-dim -------
    tap_sz = mm_sz if taps_in_mm_dtype else f32_sz
    bytes_per_row = (
        2 * D_in * mm_sz                  # x tile (pre-cast), double-buffered
        + 2 * Dp * f32_sz                 # out tile, double-buffered
        + 5 * Cp * f32_sz                 # h, res, glu (f32) + acc (2*Cp, f32)
        + K * Cp * (tap_sz + mm_sz)       # shifted taps + fused concat operand
    )
    weight_bytes = 2 * sum(int(w.size) * w.dtype.itemsize for w in weights)
    row_budget = max(0, act_budget - weight_bytes)
    tile_b = min(B,
                 max(1, target_rows // T),
                 max(1, row_budget // max(1, bytes_per_row * T)))

    # Sublane alignment of the (R, D_in)/(R, Dp) tiles (16 for packed bf16).
    sub_align = 16 if mm_sz == 2 else 8
    step = max(1, sub_align // math.gcd(T, sub_align))
    if tile_b < B and step > 1:
        tile_b = max(step, (tile_b // step) * step)
        if tile_b > B:
            tile_b = B
    grid_n = pl.cdiv(B, tile_b)
    # Even grid -> both v7x TensorCores stay busy; skipped on single-TC parts
    # (shrinking the tile there only adds per-step overhead).
    if prof["multi_tc"] and grid_n > 1 and grid_n % 2 == 1:
        cand = pl.cdiv(B, grid_n + 1)
        cand = max(step, (cand // step) * step)
        if 0 < cand <= tile_b:
            tile_b = cand
            grid_n = pl.cdiv(B, tile_b)
    R = tile_b * T
    # Partial-final-block safety relies on tile boundaries landing on T
    # boundaries (see select-based masking in the kernel).
    assert R % T == 0

    # --- input pre-cast to the matmul dtype (halves x DMA bytes) -------------
    x2 = x.reshape(rows, D_in).astype(mm)

    # --- scheduling hint for XLA ---------------------------------------------
    flops = 2 * rows * (D_in * Cp + L * (K * Cp) * (2 * Cp) + Cp * Dp)
    cost = pl.CostEstimate(
        flops=int(flops),
        transcendentals=int(rows * Cp * L),
        bytes_accessed=int(rows * D_in * mm_sz + rows * Dp * f32_sz
                           + sum(int(w.size) * w.dtype.itemsize
                                 for w in weights)))

    kernel = _make_kernel(R, T, Cp, K, L, mm, taps_in_mm_dtype)

    def _run(weight_pipeline_mode):
        def full_spec(arr):
            nd = arr.ndim
            kwargs = {}
            if weight_pipeline_mode is not None:
                kwargs["pipeline_mode"] = weight_pipeline_mode
            return pl.BlockSpec(arr.shape, lambda i, _nd=nd: (0,) * _nd, **kwargs)

        return pl.pallas_call(
            kernel,
            out_shape=jax.ShapeDtypeStruct((rows, Dp), x.dtype),
            grid_spec=pl.GridSpec(
                grid=(grid_n,),
                in_specs=[pl.BlockSpec((R, D_in), lambda i: (i, 0))]
                         + [full_spec(w) for w in weights],
                out_specs=pl.BlockSpec((R, Dp), lambda i: (i, 0)),
            ),
            compiler_params=pltpu.CompilerParams(
                dimension_semantics=("parallel",),
                vmem_limit_bytes=int(vmem_limit),
            ),
            cost_estimate=cost,
        )(x2, *weights)

    # Constant-index weight blocks only need one VMEM buffer; fall back to the
    # default pipelining if this JAX build rejects single-buffered mode.
    weight_mode = pl.Buffered(1) if grid_n > 1 else None
    try:
        out2 = _run(weight_mode)
    except Exception:
        out2 = _run(None)

    out2 = out2 if Dp == D_in else out2[:, :D_in]
    return out2.reshape(B, T, D_in)


def init_params(key, inputs_dim, hidden, kwidth):
    """Deterministic synthetic parameters (shapes follow the module __init__).
    Linear / conv weights are stored pre-transposed to [in, out] layout."""
    C = hidden[0]
    L = len(hidden)
    K = kwidth[0]
    keys = jax.random.split(key, 10)
    s = 0.1
    return dict(
        fc_w=jax.random.normal(keys[0], (inputs_dim, C), jnp.float32) * s,
        fc_b=jax.random.normal(keys[1], (C,), jnp.float32) * s,
        conv_w=jax.random.normal(keys[2], (L, K, C, 2 * C), jnp.float32) * s,
        conv_b=jax.random.normal(keys[3], (L, 2 * C), jnp.float32) * s,
        bn_gamma=1.0 + jax.random.normal(keys[4], (L, C), jnp.float32) * s,
        bn_beta=jax.random.normal(keys[5], (L, C), jnp.float32) * s,
        bn_mean=jax.random.normal(keys[6], (L, C), jnp.float32) * s,
        bn_var=1.0 + jax.random.uniform(keys[7], (L, C), jnp.float32) * 0.5,
        fc_out_w=jax.random.normal(keys[8], (C, inputs_dim), jnp.float32) * s,
        fc_out_b=jax.random.normal(keys[9], (inputs_dim,), jnp.float32) * s,
    )


def ref_forward(x, p):
    """Pure-JAX reference of the eval-mode forward pass (for verification)."""
    L, K, C, _ = p["conv_w"].shape
    B, T, _ = x.shape
    PAD = (K - 1) // 2
    h = x @ p["fc_w"] + p["fc_b"]
    for l in range(L):
        res = h
        xp = jnp.pad(h, ((0, 0), (PAD, PAD), (0, 0)))
        acc = jnp.zeros((B, T, 2 * C), jnp.float32) + p["conv_b"][l]
        for j in range(K):
            acc = acc + jnp.einsum("btc,cd->btd", xp[:, j:j + T, :], p["conv_w"][l, j])
        glu = acc[..., :C] * jax.nn.sigmoid(acc[..., C:])
        h = (glu + res) * SQRT_HALF
        h = (h - p["bn_mean"][l]) * (
            p["bn_gamma"][l] / jnp.sqrt(p["bn_var"][l] + BN_EPS)) + p["bn_beta"][l]
    return h @ p["fc_out_w"] + p["fc_out_b"]


if __name__ == "__main__":
    inputs_dim = 16
    hidden = [32, 32, 32]     # all equal (see semantics note above)
    kwidth = [3, 3, 3]
    B, T = 2, 8

    key = jax.random.PRNGKey(0)
    kx, kp = jax.random.split(key)
    x = jax.random.normal(kx, (B, T, inputs_dim), jnp.float32)
    params = init_params(kp, inputs_dim, hidden, kwidth)

    ref = ref_forward(x, params)

    # f32-matmul path: strict numerical check (channel padding adds exact zeros).
    out_f32 = jax.block_until_ready(
        conv_layer_pallas(x, params, matmul_dtype=jnp.float32))
    np.testing.assert_allclose(np.asarray(out_f32), np.asarray(ref),
                               rtol=1e-4, atol=1e-4)

    # bf16-matmul fast path (all TPU generations): f32 accumulation; residual
    # stream stays f32, but the per-layer bf16 matmul quantization compounds,
    # so this tolerance scales with the number of layers L.
    out_bf16 = jax.block_until_ready(
        conv_layer_pallas(x, params, matmul_dtype=jnp.bfloat16))
    np.testing.assert_allclose(np.asarray(out_bf16), np.asarray(ref),
                               rtol=5e-2, atol=5e-2)

    print("KERNEL_OK")
</pallas_src>

<mosaic_0001>
module attributes {stable_mosaic.version = 11 : i64} {
  func.func @kernel(%arg0: i32, %arg1: memref<16x16xf32, #tpu.memory_space<vmem>>, %arg2: memref<16x128xf32, #tpu.memory_space<vmem>>, %arg3: memref<1x128xf32, #tpu.memory_space<vmem>>, %arg4: memref<3x384x256xf32, #tpu.memory_space<vmem>>, %arg5: memref<3x1x256xf32, #tpu.memory_space<vmem>>, %arg6: memref<3x1x128xf32, #tpu.memory_space<vmem>>, %arg7: memref<3x1x128xf32, #tpu.memory_space<vmem>>, %arg8: memref<128x128xf32, #tpu.memory_space<vmem>>, %arg9: memref<1x128xf32, #tpu.memory_space<vmem>>, %arg10: memref<16x128xf32, #tpu.memory_space<vmem>>) attributes {dimension_semantics = [#tpu.dimension_semantics<parallel>], iteration_bounds = array<i64: 1>, scalar_prefetch = 0 : i64, scratch_operands = 0 : i64, tpu.core_type = #tpu.core_type<tc>, window_params = [{transform_indices = @transform_0, window_bounds = array<i64: 16, 16>}, {pipeline_mode = #tpu.pipeline_mode<synchronous>, transform_indices = @transform_1, window_bounds = array<i64: 16, 128>}, {pipeline_mode = #tpu.pipeline_mode<synchronous>, transform_indices = @transform_2, window_bounds = array<i64: 1, 128>}, {pipeline_mode = #tpu.pipeline_mode<synchronous>, transform_indices = @transform_3, window_bounds = array<i64: 3, 384, 256>}, {pipeline_mode = #tpu.pipeline_mode<synchronous>, transform_indices = @transform_4, window_bounds = array<i64: 3, 1, 256>}, {pipeline_mode = #tpu.pipeline_mode<synchronous>, transform_indices = @transform_5, window_bounds = array<i64: 3, 1, 128>}, {pipeline_mode = #tpu.pipeline_mode<synchronous>, transform_indices = @transform_6, window_bounds = array<i64: 3, 1, 128>}, {pipeline_mode = #tpu.pipeline_mode<synchronous>, transform_indices = @transform_7, window_bounds = array<i64: 128, 128>}, {pipeline_mode = #tpu.pipeline_mode<synchronous>, transform_indices = @transform_8, window_bounds = array<i64: 1, 128>}, {transform_indices = @transform_9, window_bounds = array<i64: 16, 128>}]} {
    %c0 = arith.constant 0 : index
    %c0_0 = arith.constant 0 : index
    %0 = vector.load %arg1[%c0, %c0_0] : memref<16x16xf32, #tpu.memory_space<vmem>>, vector<16x16xf32>
    %c0_1 = arith.constant 0 : index
    %c0_2 = arith.constant 0 : index
    %1 = vector.load %arg2[%c0_1, %c0_2] : memref<16x128xf32, #tpu.memory_space<vmem>>, vector<16x128xf32>
    %cst = arith.constant dense<0.000000e+00> : vector<16x128xf32>
    %2 = tpu.matmul %0, %1, %cst {dimension_numbers = #tpu.dot_dimension_numbers<[1], [0], [0], [1], [0, 0, 1, 1], [], []>} : vector<16x16xf32>, vector<16x128xf32>, vector<16x128xf32> -> vector<16x128xf32>
    %c0_3 = arith.constant 0 : index
    %c0_4 = arith.constant 0 : index
    %3 = vector.load %arg3[%c0_3, %c0_4] : memref<1x128xf32, #tpu.memory_space<vmem>>, vector<1x128xf32>
    %4 = vector.broadcast %3 : vector<1x128xf32> to vector<16x128xf32>
    %5 = arith.addf %2, %4 : vector<16x128xf32>
    %6 = tpu.iota {dimensions = array<i32: 0>} : vector<16x1xi32>
    %c8_i32 = arith.constant 8 : i32
    %c0_i32 = arith.constant 0 : i32
    %7 = arith.cmpi eq, %c8_i32, %c0_i32 : i32
    %c1_i32 = arith.constant 1 : i32
    %8 = arith.select %7, %c1_i32, %c8_i32 : i32
    %9 = vector.broadcast %8 : i32 to vector<16x1xi32>
    %10 = arith.remsi %6, %9 : vector<16x1xi32>
    %c0_i32_5 = arith.constant 0 : i32
    %11 = vector.broadcast %c0_i32_5 : i32 to vector<16x1xi32>
    %12 = arith.cmpi ne, %10, %11 : vector<16x1xi32>
    %c0_i32_6 = arith.constant 0 : i32
    %13 = vector.broadcast %c0_i32_6 : i32 to vector<16x1xi32>
    %14 = arith.cmpi slt, %10, %13 : vector<16x1xi32>
    %c0_i32_7 = arith.constant 0 : i32
    %15 = arith.cmpi slt, %8, %c0_i32_7 : i32
    %16 = vector.broadcast %15 : i1 to vector<16x1xi1>
    %17 = vector.broadcast %16 : vector<16x1xi1> to vector<16x1xi1>
    %18 = arith.xori %14, %17 : vector<16x1xi1>
    %19 = arith.andi %18, %12 : vector<16x1xi1>
    %20 = vector.broadcast %8 : i32 to vector<16x1xi32>
    %21 = arith.addi %10, %20 : vector<16x1xi32>
    %22 = arith.select %19, %21, %10 : vector<16x1xi1>, vector<16x1xi32>
    %c-1_i32 = arith.constant -1 : i32
    %23 = vector.broadcast %c-1_i32 : i32 to vector<16x1xi32>
    %24 = arith.addi %22, %23 : vector<16x1xi32>
    %c0_i32_8 = arith.constant 0 : i32
    %25 = vector.broadcast %c0_i32_8 : i32 to vector<16x1xi32>
    %26 = arith.cmpi sge, %24, %25 : vector<16x1xi32>
    %c-1_i32_9 = arith.constant -1 : i32
    %27 = vector.broadcast %c-1_i32_9 : i32 to vector<16x1xi32>
    %28 = arith.addi %22, %27 : vector<16x1xi32>
    %c8_i32_10 = arith.constant 8 : i32
    %29 = vector.broadcast %c8_i32_10 : i32 to vector<16x1xi32>
    %30 = arith.cmpi slt, %28, %29 : vector<16x1xi32>
    %31 = arith.andi %26, %30 : vector<16x1xi1>
    %c1_i32_11 = arith.constant 1 : i32
    %32 = vector.broadcast %c1_i32_11 : i32 to vector<16x1xi32>
    %33 = arith.addi %22, %32 : vector<16x1xi32>
    %c0_i32_12 = arith.constant 0 : i32
    %34 = vector.broadcast %c0_i32_12 : i32 to vector<16x1xi32>
    %35 = arith.cmpi sge, %33, %34 : vector<16x1xi32>
    %c1_i32_13 = arith.constant 1 : i32
    %36 = vector.broadcast %c1_i32_13 : i32 to vector<16x1xi32>
    %37 = arith.addi %22, %36 : vector<16x1xi32>
    %c8_i32_14 = arith.constant 8 : i32
    %38 = vector.broadcast %c8_i32_14 : i32 to vector<16x1xi32>
    %39 = arith.cmpi slt, %37, %38 : vector<16x1xi32>
    %40 = arith.andi %35, %39 : vector<16x1xi1>
    %c1_i32_15 = arith.constant 1 : i32
    %41 = tpu.dynamic_rotate %5 by %c1_i32_15 dim 0 : vector<16x128xf32>, i32 -> vector<16x128xf32>
    %cst_16 = arith.constant 0.000000e+00 : f32
    %42 = vector.shape_cast %31 : vector<16x1xi1> to vector<16x1xi1>
    %43 = vector.broadcast %42 : vector<16x1xi1> to vector<16x128xi1>
    %44 = vector.broadcast %cst_16 : f32 to vector<16x128xf32>
    %45 = arith.select %43, %41, %44 : vector<16x128xi1>, vector<16x128xf32>
    %c15_i32 = arith.constant 15 : i32
    %46 = tpu.dynamic_rotate %5 by %c15_i32 dim 0 : vector<16x128xf32>, i32 -> vector<16x128xf32>
    %cst_17 = arith.constant 0.000000e+00 : f32
    %47 = vector.shape_cast %40 : vector<16x1xi1> to vector<16x1xi1>
    %48 = vector.broadcast %47 : vector<16x1xi1> to vector<16x128xi1>
    %49 = vector.broadcast %cst_17 : f32 to vector<16x128xf32>
    %50 = arith.select %48, %46, %49 : vector<16x128xi1>, vector<16x128xf32>
    %51 = tpu.concatenate %45, %5, %50 in 1 : vector<16x128xf32>, vector<16x128xf32>, vector<16x128xf32> -> vector<16x384xf32>
    %c0_18 = arith.constant 0 : index
    %c0_19 = arith.constant 0 : index
    %c0_20 = arith.constant 0 : index
    %52 = vector.load %arg4[%c0_18, %c0_19, %c0_20] : memref<3x384x256xf32, #tpu.memory_space<vmem>>, vector<1x384x256xf32>
    %53 = vector.shape_cast %52 : vector<1x384x256xf32> to vector<384x256xf32>
    %cst_21 = arith.constant dense<0.000000e+00> : vector<16x256xf32>
    %54 = tpu.matmul %51, %53, %cst_21 {dimension_numbers = #tpu.dot_dimension_numbers<[1], [0], [0], [1], [0, 0, 1, 1], [], []>} : vector<16x384xf32>, vector<384x256xf32>, vector<16x256xf32> -> vector<16x256xf32>
    %c0_22 = arith.constant 0 : index
    %c0_23 = arith.constant 0 : index
    %c0_24 = arith.constant 0 : index
    %55 = vector.load %arg5[%c0_22, %c0_23, %c0_24] : memref<3x1x256xf32, #tpu.memory_space<vmem>>, vector<1x1x256xf32>
    %56 = vector.shape_cast %55 : vector<1x1x256xf32> to vector<1x256xf32>
    %57 = vector.broadcast %56 : vector<1x256xf32> to vector<16x256xf32>
    %58 = arith.addf %54, %57 : vector<16x256xf32>
    %59 = vector.extract_strided_slice %58 {offsets = [0, 0], sizes = [16, 128], strides = [1, 1]} : vector<16x256xf32> to vector<16x128xf32>
    %60 = vector.extract_strided_slice %58 {offsets = [0, 128], sizes = [16, 128], strides = [1, 1]} : vector<16x256xf32> to vector<16x128xf32>
    %61 = arith.negf %60 : vector<16x128xf32>
    %62 = math.exp %61 : vector<16x128xf32>
    %cst_25 = arith.constant 1.000000e+00 : f32
    %63 = vector.broadcast %cst_25 : f32 to vector<16x128xf32>
    %64 = arith.addf %63, %62 : vector<16x128xf32>
    %65 = arith.divf %63, %64 : vector<16x128xf32>
    %66 = arith.mulf %59, %65 : vector<16x128xf32>
    %67 = arith.addf %66, %5 : vector<16x128xf32>
    %cst_26 = arith.constant 0.707106769 : f32
    %68 = vector.broadcast %cst_26 : f32 to vector<16x128xf32>
    %69 = arith.mulf %67, %68 : vector<16x128xf32>
    %c0_27 = arith.constant 0 : index
    %c0_28 = arith.constant 0 : index
    %c0_29 = arith.constant 0 : index
    %70 = vector.load %arg6[%c0_27, %c0_28, %c0_29] : memref<3x1x128xf32, #tpu.memory_space<vmem>>, vector<1x1x128xf32>
    %71 = vector.shape_cast %70 : vector<1x1x128xf32> to vector<1x128xf32>
    %72 = vector.broadcast %71 : vector<1x128xf32> to vector<16x128xf32>
    %73 = arith.mulf %69, %72 : vector<16x128xf32>
    %c0_30 = arith.constant 0 : index
    %c0_31 = arith.constant 0 : index
    %c0_32 = arith.constant 0 : index
    %74 = vector.load %arg7[%c0_30, %c0_31, %c0_32] : memref<3x1x128xf32, #tpu.memory_space<vmem>>, vector<1x1x128xf32>
    %75 = vector.shape_cast %74 : vector<1x1x128xf32> to vector<1x128xf32>
    %76 = vector.broadcast %75 : vector<1x128xf32> to vector<16x128xf32>
    %77 = arith.addf %73, %76 : vector<16x128xf32>
    %c1_i32_33 = arith.constant 1 : i32
    %78 = tpu.dynamic_rotate %77 by %c1_i32_33 dim 0 : vector<16x128xf32>, i32 -> vector<16x128xf32>
    %cst_34 = arith.constant 0.000000e+00 : f32
    %79 = vector.shape_cast %31 : vector<16x1xi1> to vector<16x1xi1>
    %80 = vector.broadcast %79 : vector<16x1xi1> to vector<16x128xi1>
    %81 = vector.broadcast %cst_34 : f32 to vector<16x128xf32>
    %82 = arith.select %80, %78, %81 : vector<16x128xi1>, vector<16x128xf32>
    %c15_i32_35 = arith.constant 15 : i32
    %83 = tpu.dynamic_rotate %77 by %c15_i32_35 dim 0 : vector<16x128xf32>, i32 -> vector<16x128xf32>
    %cst_36 = arith.constant 0.000000e+00 : f32
    %84 = vector.shape_cast %40 : vector<16x1xi1> to vector<16x1xi1>
    %85 = vector.broadcast %84 : vector<16x1xi1> to vector<16x128xi1>
    %86 = vector.broadcast %cst_36 : f32 to vector<16x128xf32>
    %87 = arith.select %85, %83, %86 : vector<16x128xi1>, vector<16x128xf32>
    %88 = tpu.concatenate %82, %77, %87 in 1 : vector<16x128xf32>, vector<16x128xf32>, vector<16x128xf32> -> vector<16x384xf32>
    %c1 = arith.constant 1 : index
    %c0_37 = arith.constant 0 : index
    %c0_38 = arith.constant 0 : index
    %89 = vector.load %arg4[%c1, %c0_37, %c0_38] : memref<3x384x256xf32, #tpu.memory_space<vmem>>, vector<1x384x256xf32>
    %90 = vector.shape_cast %89 : vector<1x384x256xf32> to vector<384x256xf32>
    %cst_39 = arith.constant dense<0.000000e+00> : vector<16x256xf32>
    %91 = tpu.matmul %88, %90, %cst_39 {dimension_numbers = #tpu.dot_dimension_numbers<[1], [0], [0], [1], [0, 0, 1, 1], [], []>} : vector<16x384xf32>, vector<384x256xf32>, vector<16x256xf32> -> vector<16x256xf32>
    %c1_40 = arith.constant 1 : index
    %c0_41 = arith.constant 0 : index
    %c0_42 = arith.constant 0 : index
    %92 = vector.load %arg5[%c1_40, %c0_41, %c0_42] : memref<3x1x256xf32, #tpu.memory_space<vmem>>, vector<1x1x256xf32>
    %93 = vector.shape_cast %92 : vector<1x1x256xf32> to vector<1x256xf32>
    %94 = vector.broadcast %93 : vector<1x256xf32> to vector<16x256xf32>
    %95 = arith.addf %91, %94 : vector<16x256xf32>
    %96 = vector.extract_strided_slice %95 {offsets = [0, 0], sizes = [16, 128], strides = [1, 1]} : vector<16x256xf32> to vector<16x128xf32>
    %97 = vector.extract_strided_slice %95 {offsets = [0, 128], sizes = [16, 128], strides = [1, 1]} : vector<16x256xf32> to vector<16x128xf32>
    %98 = arith.negf %97 : vector<16x128xf32>
    %99 = math.exp %98 : vector<16x128xf32>
    %cst_43 = arith.constant 1.000000e+00 : f32
    %100 = vector.broadcast %cst_43 : f32 to vector<16x128xf32>
    %101 = arith.addf %100, %99 : vector<16x128xf32>
    %102 = arith.divf %100, %101 : vector<16x128xf32>
    %103 = arith.mulf %96, %102 : vector<16x128xf32>
    %104 = arith.addf %103, %77 : vector<16x128xf32>
    %cst_44 = arith.constant 0.707106769 : f32
    %105 = vector.broadcast %cst_44 : f32 to vector<16x128xf32>
    %106 = arith.mulf %104, %105 : vector<16x128xf32>
    %c1_45 = arith.constant 1 : index
    %c0_46 = arith.constant 0 : index
    %c0_47 = arith.constant 0 : index
    %107 = vector.load %arg6[%c1_45, %c0_46, %c0_47] : memref<3x1x128xf32, #tpu.memory_space<vmem>>, vector<1x1x128xf32>
    %108 = vector.shape_cast %107 : vector<1x1x128xf32> to vector<1x128xf32>
    %109 = vector.broadcast %108 : vector<1x128xf32> to vector<16x128xf32>
    %110 = arith.mulf %106, %109 : vector<16x128xf32>
    %c1_48 = arith.constant 1 : index
    %c0_49 = arith.constant 0 : index
    %c0_50 = arith.constant 0 : index
    %111 = vector.load %arg7[%c1_48, %c0_49, %c0_50] : memref<3x1x128xf32, #tpu.memory_space<vmem>>, vector<1x1x128xf32>
    %112 = vector.shape_cast %111 : vector<1x1x128xf32> to vector<1x128xf32>
    %113 = vector.broadcast %112 : vector<1x128xf32> to vector<16x128xf32>
    %114 = arith.addf %110, %113 : vector<16x128xf32>
    %c1_i32_51 = arith.constant 1 : i32
    %115 = tpu.dynamic_rotate %114 by %c1_i32_51 dim 0 : vector<16x128xf32>, i32 -> vector<16x128xf32>
    %cst_52 = arith.constant 0.000000e+00 : f32
    %116 = vector.shape_cast %31 : vector<16x1xi1> to vector<16x1xi1>
    %117 = vector.broadcast %116 : vector<16x1xi1> to vector<16x128xi1>
    %118 = vector.broadcast %cst_52 : f32 to vector<16x128xf32>
    %119 = arith.select %117, %115, %118 : vector<16x128xi1>, vector<16x128xf32>
    %c15_i32_53 = arith.constant 15 : i32
    %120 = tpu.dynamic_rotate %114 by %c15_i32_53 dim 0 : vector<16x128xf32>, i32 -> vector<16x128xf32>
    %cst_54 = arith.constant 0.000000e+00 : f32
    %121 = vector.shape_cast %40 : vector<16x1xi1> to vector<16x1xi1>
    %122 = vector.broadcast %121 : vector<16x1xi1> to vector<16x128xi1>
    %123 = vector.broadcast %cst_54 : f32 to vector<16x128xf32>
    %124 = arith.select %122, %120, %123 : vector<16x128xi1>, vector<16x128xf32>
    %125 = tpu.concatenate %119, %114, %124 in 1 : vector<16x128xf32>, vector<16x128xf32>, vector<16x128xf32> -> vector<16x384xf32>
    %c2 = arith.constant 2 : index
    %c0_55 = arith.constant 0 : index
    %c0_56 = arith.constant 0 : index
    %126 = vector.load %arg4[%c2, %c0_55, %c0_56] : memref<3x384x256xf32, #tpu.memory_space<vmem>>, vector<1x384x256xf32>
    %127 = vector.shape_cast %126 : vector<1x384x256xf32> to vector<384x256xf32>
    %cst_57 = arith.constant dense<0.000000e+00> : vector<16x256xf32>
    %128 = tpu.matmul %125, %127, %cst_57 {dimension_numbers = #tpu.dot_dimension_numbers<[1], [0], [0], [1], [0, 0, 1, 1], [], []>} : vector<16x384xf32>, vector<384x256xf32>, vector<16x256xf32> -> vector<16x256xf32>
    %c2_58 = arith.constant 2 : index
    %c0_59 = arith.constant 0 : index
    %c0_60 = arith.constant 0 : index
    %129 = vector.load %arg5[%c2_58, %c0_59, %c0_60] : memref<3x1x256xf32, #tpu.memory_space<vmem>>, vector<1x1x256xf32>
    %130 = vector.shape_cast %129 : vector<1x1x256xf32> to vector<1x256xf32>
    %131 = vector.broadcast %130 : vector<1x256xf32> to vector<16x256xf32>
    %132 = arith.addf %128, %131 : vector<16x256xf32>
    %133 = vector.extract_strided_slice %132 {offsets = [0, 0], sizes = [16, 128], strides = [1, 1]} : vector<16x256xf32> to vector<16x128xf32>
    %134 = vector.extract_strided_slice %132 {offsets = [0, 128], sizes = [16, 128], strides = [1, 1]} : vector<16x256xf32> to vector<16x128xf32>
    %135 = arith.negf %134 : vector<16x128xf32>
    %136 = math.exp %135 : vector<16x128xf32>
    %cst_61 = arith.constant 1.000000e+00 : f32
    %137 = vector.broadcast %cst_61 : f32 to vector<16x128xf32>
    %138 = arith.addf %137, %136 : vector<16x128xf32>
    %139 = arith.divf %137, %138 : vector<16x128xf32>
    %140 = arith.mulf %133, %139 : vector<16x128xf32>
    %141 = arith.addf %140, %114 : vector<16x128xf32>
    %cst_62 = arith.constant 0.707106769 : f32
    %142 = vector.broadcast %cst_62 : f32 to vector<16x128xf32>
    %143 = arith.mulf %141, %142 : vector<16x128xf32>
    %c2_63 = arith.constant 2 : index
    %c0_64 = arith.constant 0 : index
    %c0_65 = arith.constant 0 : index
    %144 = vector.load %arg6[%c2_63, %c0_64, %c0_65] : memref<3x1x128xf32, #tpu.memory_space<vmem>>, vector<1x1x128xf32>
    %145 = vector.shape_cast %144 : vector<1x1x128xf32> to vector<1x128xf32>
    %146 = vector.broadcast %145 : vector<1x128xf32> to vector<16x128xf32>
    %147 = arith.mulf %143, %146 : vector<16x128xf32>
    %c2_66 = arith.constant 2 : index
    %c0_67 = arith.constant 0 : index
    %c0_68 = arith.constant 0 : index
    %148 = vector.load %arg7[%c2_66, %c0_67, %c0_68] : memref<3x1x128xf32, #tpu.memory_space<vmem>>, vector<1x1x128xf32>
    %149 = vector.shape_cast %148 : vector<1x1x128xf32> to vector<1x128xf32>
    %150 = vector.broadcast %149 : vector<1x128xf32> to vector<16x128xf32>
    %151 = arith.addf %147, %150 : vector<16x128xf32>
    %c0_69 = arith.constant 0 : index
    %c0_70 = arith.constant 0 : index
    %152 = vector.load %arg8[%c0_69, %c0_70] : memref<128x128xf32, #tpu.memory_space<vmem>>, vector<128x128xf32>
    %cst_71 = arith.constant dense<0.000000e+00> : vector<16x128xf32>
    %153 = tpu.matmul %151, %152, %cst_71 {dimension_numbers = #tpu.dot_dimension_numbers<[1], [0], [0], [1], [0, 0, 1, 1], [], []>} : vector<16x128xf32>, vector<128x128xf32>, vector<16x128xf32> -> vector<16x128xf32>
    %c0_72 = arith.constant 0 : index
    %c0_73 = arith.constant 0 : index
    %154 = vector.load %arg9[%c0_72, %c0_73] : memref<1x128xf32, #tpu.memory_space<vmem>>, vector<1x128xf32>
    %155 = vector.broadcast %154 : vector<1x128xf32> to vector<16x128xf32>
    %156 = arith.addf %153, %155 : vector<16x128xf32>
    %c0_74 = arith.constant 0 : index
    %c0_75 = arith.constant 0 : index
    %157 = vector.load %arg10[%c0_74, %c0_75] : memref<16x128xf32, #tpu.memory_space<vmem>>, vector<16x128xf32>
    tpu.vector_store %arg10[%c0_74, %c0_75], %156 {strides = array<i32>} : memref<16x128xf32, #tpu.memory_space<vmem>>, vector<16x128xf32>,
    return
  }
  func.func @transform_0(%arg0: i32) -> (i32, i32) {
    %c0_i32 = arith.constant 0 : i32
    %c0_i32_0 = arith.constant 0 : i32
    return %arg0, %c0_i32 : i32, i32
  }
  func.func @transform_1(%arg0: i32) -> (i32, i32) {
    %c0_i32 = arith.constant 0 : i32
    %c0_i32_0 = arith.constant 0 : i32
    %c0_i32_1 = arith.constant 0 : i32
    return %c0_i32, %c0_i32_0 : i32, i32
  }
  func.func @transform_2(%arg0: i32) -> (i32, i32) {
    %c0_i32 = arith.constant 0 : i32
    %c0_i32_0 = arith.constant 0 : i32
    %c0_i32_1 = arith.constant 0 : i32
    return %c0_i32, %c0_i32_0 : i32, i32
  }
  func.func @transform_3(%arg0: i32) -> (i32, i32, i32) {
    %c0_i32 = arith.constant 0 : i32
    %c0_i32_0 = arith.constant 0 : i32
    %c0_i32_1 = arith.constant 0 : i32
    %c0_i32_2 = arith.constant 0 : i32
    return %c0_i32, %c0_i32_0, %c0_i32_1 : i32, i32, i32
  }
  func.func @transform_4(%arg0: i32) -> (i32, i32, i32) {
    %c0_i32 = arith.constant 0 : i32
    %c0_i32_0 = arith.constant 0 : i32
    %c0_i32_1 = arith.constant 0 : i32
    %c0_i32_2 = arith.constant 0 : i32
    return %c0_i32, %c0_i32_0, %c0_i32_1 : i32, i32, i32
  }
  func.func @transform_5(%arg0: i32) -> (i32, i32, i32) {
    %c0_i32 = arith.constant 0 : i32
    %c0_i32_0 = arith.constant 0 : i32
    %c0_i32_1 = arith.constant 0 : i32
    %c0_i32_2 = arith.constant 0 : i32
    return %c0_i32, %c0_i32_0, %c0_i32_1 : i32, i32, i32
  }
  func.func @transform_6(%arg0: i32) -> (i32, i32, i32) {
    %c0_i32 = arith.constant 0 : i32
    %c0_i32_0 = arith.constant 0 : i32
    %c0_i32_1 = arith.constant 0 : i32
    %c0_i32_2 = arith.constant 0 : i32
    return %c0_i32, %c0_i32_0, %c0_i32_1 : i32, i32, i32
  }
  func.func @transform_7(%arg0: i32) -> (i32, i32) {
    %c0_i32 = arith.constant 0 : i32
    %c0_i32_0 = arith.constant 0 : i32
    %c0_i32_1 = arith.constant 0 : i32
    return %c0_i32, %c0_i32_0 : i32, i32
  }
  func.func @transform_8(%arg0: i32) -> (i32, i32) {
    %c0_i32 = arith.constant 0 : i32
    %c0_i32_0 = arith.constant 0 : i32
    %c0_i32_1 = arith.constant 0 : i32
    return %c0_i32, %c0_i32_0 : i32, i32
  }
  func.func @transform_9(%arg0: i32) -> (i32, i32) {
    %c0_i32 = arith.constant 0 : i32
    %c0_i32_0 = arith.constant 0 : i32
    return %arg0, %c0_i32 : i32, i32
  }
}

module attributes {stable_mosaic.version = 11 : i64} {
  func.func @kernel(%arg0: i32, %arg1: memref<16x16xf32, #tpu.memory_space<vmem>>, %arg2: memref<16x128xf32, #tpu.memory_space<vmem>>, %arg3: memref<1x128xf32, #tpu.memory_space<vmem>>, %arg4: memref<3x384x256xf32, #tpu.memory_space<vmem>>, %arg5: memref<3x1x256xf32, #tpu.memory_space<vmem>>, %arg6: memref<3x1x128xf32, #tpu.memory_space<vmem>>, %arg7: memref<3x1x128xf32, #tpu.memory_space<vmem>>, %arg8: memref<128x128xf32, #tpu.memory_space<vmem>>, %arg9: memref<1x128xf32, #tpu.memory_space<vmem>>, %arg10: memref<16x128xf32, #tpu.memory_space<vmem>>) attributes {dimension_semantics = [#tpu.dimension_semantics<parallel>], iteration_bounds = array<i64: 1>, scalar_prefetch = 0 : i64, scratch_operands = 0 : i64, tpu.core_type = #tpu.core_type<tc>, window_params = [{transform_indices = @transform_0, window_bounds = array<i64: 16, 16>}, {pipeline_mode = #tpu.pipeline_mode<synchronous>, transform_indices = @transform_1, window_bounds = array<i64: 16, 128>}, {pipeline_mode = #tpu.pipeline_mode<synchronous>, transform_indices = @transform_2, window_bounds = array<i64: 1, 128>}, {pipeline_mode = #tpu.pipeline_mode<synchronous>, transform_indices = @transform_3, window_bounds = array<i64: 3, 384, 256>}, {pipeline_mode = #tpu.pipeline_mode<synchronous>, transform_indices = @transform_4, window_bounds = array<i64: 3, 1, 256>}, {pipeline_mode = #tpu.pipeline_mode<synchronous>, transform_indices = @transform_5, window_bounds = array<i64: 3, 1, 128>}, {pipeline_mode = #tpu.pipeline_mode<synchronous>, transform_indices = @transform_6, window_bounds = array<i64: 3, 1, 128>}, {pipeline_mode = #tpu.pipeline_mode<synchronous>, transform_indices = @transform_7, window_bounds = array<i64: 128, 128>}, {pipeline_mode = #tpu.pipeline_mode<synchronous>, transform_indices = @transform_8, window_bounds = array<i64: 1, 128>}, {transform_indices = @transform_9, window_bounds = array<i64: 16, 128>}]} {
    %c0 = arith.constant 0 : index
    %c0_0 = arith.constant 0 : index
    %0 = vector.load %arg1[%c0, %c0_0] : memref<16x16xf32, #tpu.memory_space<vmem>>, vector<16x16xf32>
    %c0_1 = arith.constant 0 : index
    %c0_2 = arith.constant 0 : index
    %1 = vector.load %arg2[%c0_1, %c0_2] : memref<16x128xf32, #tpu.memory_space<vmem>>, vector<16x128xf32>
    %cst = arith.constant dense<0.000000e+00> : vector<16x128xf32>
    %2 = tpu.matmul %0, %1, %cst {dimension_numbers = #tpu.dot_dimension_numbers<[1], [0], [0], [1], [0, 0, 1, 1], [], []>} : vector<16x16xf32>, vector<16x128xf32>, vector<16x128xf32> -> vector<16x128xf32>
    %c0_3 = arith.constant 0 : index
    %c0_4 = arith.constant 0 : index
    %3 = vector.load %arg3[%c0_3, %c0_4] : memref<1x128xf32, #tpu.memory_space<vmem>>, vector<1x128xf32>
    %4 = vector.broadcast %3 : vector<1x128xf32> to vector<16x128xf32>
    %5 = arith.addf %2, %4 : vector<16x128xf32>
    %6 = tpu.iota {dimensions = array<i32: 0>} : vector<16x1xi32>
    %c8_i32 = arith.constant 8 : i32
    %c0_i32 = arith.constant 0 : i32
    %7 = arith.cmpi eq, %c8_i32, %c0_i32 : i32
    %c1_i32 = arith.constant 1 : i32
    %8 = arith.select %7, %c1_i32, %c8_i32 : i32
    %9 = vector.broadcast %8 : i32 to vector<16x1xi32>
    %10 = arith.remsi %6, %9 : vector<16x1xi32>
    %c0_i32_5 = arith.constant 0 : i32
    %11 = vector.broadcast %c0_i32_5 : i32 to vector<16x1xi32>
    %12 = arith.cmpi ne, %10, %11 : vector<16x1xi32>
    %c0_i32_6 = arith.constant 0 : i32
    %13 = vector.broadcast %c0_i32_6 : i32 to vector<16x1xi32>
    %14 = arith.cmpi slt, %10, %13 : vector<16x1xi32>
    %c0_i32_7 = arith.constant 0 : i32
    %15 = arith.cmpi slt, %8, %c0_i32_7 : i32
    %16 = vector.broadcast %15 : i1 to vector<16x1xi1>
    %17 = vector.broadcast %16 : vector<16x1xi1> to vector<16x1xi1>
    %18 = arith.xori %14, %17 : vector<16x1xi1>
    %19 = arith.andi %18, %12 : vector<16x1xi1>
    %20 = vector.broadcast %8 : i32 to vector<16x1xi32>
    %21 = arith.addi %10, %20 : vector<16x1xi32>
    %22 = arith.select %19, %21, %10 : vector<16x1xi1>, vector<16x1xi32>
    %c-1_i32 = arith.constant -1 : i32
    %23 = vector.broadcast %c-1_i32 : i32 to vector<16x1xi32>
    %24 = arith.addi %22, %23 : vector<16x1xi32>
    %c0_i32_8 = arith.constant 0 : i32
    %25 = vector.broadcast %c0_i32_8 : i32 to vector<16x1xi32>
    %26 = arith.cmpi sge, %24, %25 : vector<16x1xi32>
    %c-1_i32_9 = arith.constant -1 : i32
    %27 = vector.broadcast %c-1_i32_9 : i32 to vector<16x1xi32>
    %28 = arith.addi %22, %27 : vector<16x1xi32>
    %c8_i32_10 = arith.constant 8 : i32
    %29 = vector.broadcast %c8_i32_10 : i32 to vector<16x1xi32>
    %30 = arith.cmpi slt, %28, %29 : vector<16x1xi32>
    %31 = arith.andi %26, %30 : vector<16x1xi1>
    %c1_i32_11 = arith.constant 1 : i32
    %32 = vector.broadcast %c1_i32_11 : i32 to vector<16x1xi32>
    %33 = arith.addi %22, %32 : vector<16x1xi32>
    %c0_i32_12 = arith.constant 0 : i32
    %34 = vector.broadcast %c0_i32_12 : i32 to vector<16x1xi32>
    %35 = arith.cmpi sge, %33, %34 : vector<16x1xi32>
    %c1_i32_13 = arith.constant 1 : i32
    %36 = vector.broadcast %c1_i32_13 : i32 to vector<16x1xi32>
    %37 = arith.addi %22, %36 : vector<16x1xi32>
    %c8_i32_14 = arith.constant 8 : i32
    %38 = vector.broadcast %c8_i32_14 : i32 to vector<16x1xi32>
    %39 = arith.cmpi slt, %37, %38 : vector<16x1xi32>
    %40 = arith.andi %35, %39 : vector<16x1xi1>
    %c1_i32_15 = arith.constant 1 : i32
    %41 = tpu.dynamic_rotate %5 by %c1_i32_15 dim 0 : vector<16x128xf32>, i32 -> vector<16x128xf32>
    %cst_16 = arith.constant 0.000000e+00 : f32
    %42 = vector.shape_cast %31 : vector<16x1xi1> to vector<16x1xi1>
    %43 = vector.broadcast %42 : vector<16x1xi1> to vector<16x128xi1>
    %44 = vector.broadcast %cst_16 : f32 to vector<16x128xf32>
    %45 = arith.select %43, %41, %44 : vector<16x128xi1>, vector<16x128xf32>
    %c15_i32 = arith.constant 15 : i32
    %46 = tpu.dynamic_rotate %5 by %c15_i32 dim 0 : vector<16x128xf32>, i32 -> vector<16x128xf32>
    %cst_17 = arith.constant 0.000000e+00 : f32
    %47 = vector.shape_cast %40 : vector<16x1xi1> to vector<16x1xi1>
    %48 = vector.broadcast %47 : vector<16x1xi1> to vector<16x128xi1>
    %49 = vector.broadcast %cst_17 : f32 to vector<16x128xf32>
    %50 = arith.select %48, %46, %49 : vector<16x128xi1>, vector<16x128xf32>
    %51 = tpu.concatenate %45, %5, %50 in 1 : vector<16x128xf32>, vector<16x128xf32>, vector<16x128xf32> -> vector<16x384xf32>
    %c0_18 = arith.constant 0 : index
    %c0_19 = arith.constant 0 : index
    %c0_20 = arith.constant 0 : index
    %52 = vector.load %arg4[%c0_18, %c0_19, %c0_20] : memref<3x384x256xf32, #tpu.memory_space<vmem>>, vector<1x384x256xf32>
    %53 = vector.shape_cast %52 : vector<1x384x256xf32> to vector<384x256xf32>
    %cst_21 = arith.constant dense<0.000000e+00> : vector<16x256xf32>
    %54 = tpu.matmul %51, %53, %cst_21 {dimension_numbers = #tpu.dot_dimension_numbers<[1], [0], [0], [1], [0, 0, 1, 1], [], []>} : vector<16x384xf32>, vector<384x256xf32>, vector<16x256xf32> -> vector<16x256xf32>
    %c0_22 = arith.constant 0 : index
    %c0_23 = arith.constant 0 : index
    %c0_24 = arith.constant 0 : index
    %55 = vector.load %arg5[%c0_22, %c0_23, %c0_24] : memref<3x1x256xf32, #tpu.memory_space<vmem>>, vector<1x1x256xf32>
    %56 = vector.shape_cast %55 : vector<1x1x256xf32> to vector<1x256xf32>
    %57 = vector.broadcast %56 : vector<1x256xf32> to vector<16x256xf32>
    %58 = arith.addf %54, %57 : vector<16x256xf32>
    %59 = vector.extract_strided_slice %58 {offsets = [0, 0], sizes = [16, 128], strides = [1, 1]} : vector<16x256xf32> to vector<16x128xf32>
    %60 = vector.extract_strided_slice %58 {offsets = [0, 128], sizes = [16, 128], strides = [1, 1]} : vector<16x256xf32> to vector<16x128xf32>
    %61 = arith.negf %60 : vector<16x128xf32>
    %62 = math.exp %61 : vector<16x128xf32>
    %cst_25 = arith.constant 1.000000e+00 : f32
    %63 = vector.broadcast %cst_25 : f32 to vector<16x128xf32>
    %64 = arith.addf %63, %62 : vector<16x128xf32>
    %65 = arith.divf %63, %64 : vector<16x128xf32>
    %66 = arith.mulf %59, %65 : vector<16x128xf32>
    %67 = arith.addf %66, %5 : vector<16x128xf32>
    %cst_26 = arith.constant 0.707106769 : f32
    %68 = vector.broadcast %cst_26 : f32 to vector<16x128xf32>
    %69 = arith.mulf %67, %68 : vector<16x128xf32>
    %c0_27 = arith.constant 0 : index
    %c0_28 = arith.constant 0 : index
    %c0_29 = arith.constant 0 : index
    %70 = vector.load %arg6[%c0_27, %c0_28, %c0_29] : memref<3x1x128xf32, #tpu.memory_space<vmem>>, vector<1x1x128xf32>
    %71 = vector.shape_cast %70 : vector<1x1x128xf32> to vector<1x128xf32>
    %72 = vector.broadcast %71 : vector<1x128xf32> to vector<16x128xf32>
    %73 = arith.mulf %69, %72 : vector<16x128xf32>
    %c0_30 = arith.constant 0 : index
    %c0_31 = arith.constant 0 : index
    %c0_32 = arith.constant 0 : index
    %74 = vector.load %arg7[%c0_30, %c0_31, %c0_32] : memref<3x1x128xf32, #tpu.memory_space<vmem>>, vector<1x1x128xf32>
    %75 = vector.shape_cast %74 : vector<1x1x128xf32> to vector<1x128xf32>
    %76 = vector.broadcast %75 : vector<1x128xf32> to vector<16x128xf32>
    %77 = arith.addf %73, %76 : vector<16x128xf32>
    %c1_i32_33 = arith.constant 1 : i32
    %78 = tpu.dynamic_rotate %77 by %c1_i32_33 dim 0 : vector<16x128xf32>, i32 -> vector<16x128xf32>
    %cst_34 = arith.constant 0.000000e+00 : f32
    %79 = vector.shape_cast %31 : vector<16x1xi1> to vector<16x1xi1>
    %80 = vector.broadcast %79 : vector<16x1xi1> to vector<16x128xi1>
    %81 = vector.broadcast %cst_34 : f32 to vector<16x128xf32>
    %82 = arith.select %80, %78, %81 : vector<16x128xi1>, vector<16x128xf32>
    %c15_i32_35 = arith.constant 15 : i32
    %83 = tpu.dynamic_rotate %77 by %c15_i32_35 dim 0 : vector<16x128xf32>, i32 -> vector<16x128xf32>
    %cst_36 = arith.constant 0.000000e+00 : f32
    %84 = vector.shape_cast %40 : vector<16x1xi1> to vector<16x1xi1>
    %85 = vector.broadcast %84 : vector<16x1xi1> to vector<16x128xi1>
    %86 = vector.broadcast %cst_36 : f32 to vector<16x128xf32>
    %87 = arith.select %85, %83, %86 : vector<16x128xi1>, vector<16x128xf32>
    %88 = tpu.concatenate %82, %77, %87 in 1 : vector<16x128xf32>, vector<16x128xf32>, vector<16x128xf32> -> vector<16x384xf32>
    %c1 = arith.constant 1 : index
    %c0_37 = arith.constant 0 : index
    %c0_38 = arith.constant 0 : index
    %89 = vector.load %arg4[%c1, %c0_37, %c0_38] : memref<3x384x256xf32, #tpu.memory_space<vmem>>, vector<1x384x256xf32>
    %90 = vector.shape_cast %89 : vector<1x384x256xf32> to vector<384x256xf32>
    %cst_39 = arith.constant dense<0.000000e+00> : vector<16x256xf32>
    %91 = tpu.matmul %88, %90, %cst_39 {dimension_numbers = #tpu.dot_dimension_numbers<[1], [0], [0], [1], [0, 0, 1, 1], [], []>} : vector<16x384xf32>, vector<384x256xf32>, vector<16x256xf32> -> vector<16x256xf32>
    %c1_40 = arith.constant 1 : index
    %c0_41 = arith.constant 0 : index
    %c0_42 = arith.constant 0 : index
    %92 = vector.load %arg5[%c1_40, %c0_41, %c0_42] : memref<3x1x256xf32, #tpu.memory_space<vmem>>, vector<1x1x256xf32>
    %93 = vector.shape_cast %92 : vector<1x1x256xf32> to vector<1x256xf32>
    %94 = vector.broadcast %93 : vector<1x256xf32> to vector<16x256xf32>
    %95 = arith.addf %91, %94 : vector<16x256xf32>
    %96 = vector.extract_strided_slice %95 {offsets = [0, 0], sizes = [16, 128], strides = [1, 1]} : vector<16x256xf32> to vector<16x128xf32>
    %97 = vector.extract_strided_slice %95 {offsets = [0, 128], sizes = [16, 128], strides = [1, 1]} : vector<16x256xf32> to vector<16x128xf32>
    %98 = arith.negf %97 : vector<16x128xf32>
    %99 = math.exp %98 : vector<16x128xf32>
    %cst_43 = arith.constant 1.000000e+00 : f32
    %100 = vector.broadcast %cst_43 : f32 to vector<16x128xf32>
    %101 = arith.addf %100, %99 : vector<16x128xf32>
    %102 = arith.divf %100, %101 : vector<16x128xf32>
    %103 = arith.mulf %96, %102 : vector<16x128xf32>
    %104 = arith.addf %103, %77 : vector<16x128xf32>
    %cst_44 = arith.constant 0.707106769 : f32
    %105 = vector.broadcast %cst_44 : f32 to vector<16x128xf32>
    %106 = arith.mulf %104, %105 : vector<16x128xf32>
    %c1_45 = arith.constant 1 : index
    %c0_46 = arith.constant 0 : index
    %c0_47 = arith.constant 0 : index
    %107 = vector.load %arg6[%c1_45, %c0_46, %c0_47] : memref<3x1x128xf32, #tpu.memory_space<vmem>>, vector<1x1x128xf32>
    %108 = vector.shape_cast %107 : vector<1x1x128xf32> to vector<1x128xf32>
    %109 = vector.broadcast %108 : vector<1x128xf32> to vector<16x128xf32>
    %110 = arith.mulf %106, %109 : vector<16x128xf32>
    %c1_48 = arith.constant 1 : index
    %c0_49 = arith.constant 0 : index
    %c0_50 = arith.constant 0 : index
    %111 = vector.load %arg7[%c1_48, %c0_49, %c0_50] : memref<3x1x128xf32, #tpu.memory_space<vmem>>, vector<1x1x128xf32>
    %112 = vector.shape_cast %111 : vector<1x1x128xf32> to vector<1x128xf32>
    %113 = vector.broadcast %112 : vector<1x128xf32> to vector<16x128xf32>
    %114 = arith.addf %110, %113 : vector<16x128xf32>
    %c1_i32_51 = arith.constant 1 : i32
    %115 = tpu.dynamic_rotate %114 by %c1_i32_51 dim 0 : vector<16x128xf32>, i32 -> vector<16x128xf32>
    %cst_52 = arith.constant 0.000000e+00 : f32
    %116 = vector.shape_cast %31 : vector<16x1xi1> to vector<16x1xi1>
    %117 = vector.broadcast %116 : vector<16x1xi1> to vector<16x128xi1>
    %118 = vector.broadcast %cst_52 : f32 to vector<16x128xf32>
    %119 = arith.select %117, %115, %118 : vector<16x128xi1>, vector<16x128xf32>
    %c15_i32_53 = arith.constant 15 : i32
    %120 = tpu.dynamic_rotate %114 by %c15_i32_53 dim 0 : vector<16x128xf32>, i32 -> vector<16x128xf32>
    %cst_54 = arith.constant 0.000000e+00 : f32
    %121 = vector.shape_cast %40 : vector<16x1xi1> to vector<16x1xi1>
    %122 = vector.broadcast %121 : vector<16x1xi1> to vector<16x128xi1>
    %123 = vector.broadcast %cst_54 : f32 to vector<16x128xf32>
    %124 = arith.select %122, %120, %123 : vector<16x128xi1>, vector<16x128xf32>
    %125 = tpu.concatenate %119, %114, %124 in 1 : vector<16x128xf32>, vector<16x128xf32>, vector<16x128xf32> -> vector<16x384xf32>
    %c2 = arith.constant 2 : index
    %c0_55 = arith.constant 0 : index
    %c0_56 = arith.constant 0 : index
    %126 = vector.load %arg4[%c2, %c0_55, %c0_56] : memref<3x384x256xf32, #tpu.memory_space<vmem>>, vector<1x384x256xf32>
    %127 = vector.shape_cast %126 : vector<1x384x256xf32> to vector<384x256xf32>
    %cst_57 = arith.constant dense<0.000000e+00> : vector<16x256xf32>
    %128 = tpu.matmul %125, %127, %cst_57 {dimension_numbers = #tpu.dot_dimension_numbers<[1], [0], [0], [1], [0, 0, 1, 1], [], []>} : vector<16x384xf32>, vector<384x256xf32>, vector<16x256xf32> -> vector<16x256xf32>
    %c2_58 = arith.constant 2 : index
    %c0_59 = arith.constant 0 : index
    %c0_60 = arith.constant 0 : index
    %129 = vector.load %arg5[%c2_58, %c0_59, %c0_60] : memref<3x1x256xf32, #tpu.memory_space<vmem>>, vector<1x1x256xf32>
    %130 = vector.shape_cast %129 : vector<1x1x256xf32> to vector<1x256xf32>
    %131 = vector.broadcast %130 : vector<1x256xf32> to vector<16x256xf32>
    %132 = arith.addf %128, %131 : vector<16x256xf32>
    %133 = vector.extract_strided_slice %132 {offsets = [0, 0], sizes = [16, 128], strides = [1, 1]} : vector<16x256xf32> to vector<16x128xf32>
    %134 = vector.extract_strided_slice %132 {offsets = [0, 128], sizes = [16, 128], strides = [1, 1]} : vector<16x256xf32> to vector<16x128xf32>
    %135 = arith.negf %134 : vector<16x128xf32>
    %136 = math.exp %135 : vector<16x128xf32>
    %cst_61 = arith.constant 1.000000e+00 : f32
    %137 = vector.broadcast %cst_61 : f32 to vector<16x128xf32>
    %138 = arith.addf %137, %136 : vector<16x128xf32>
    %139 = arith.divf %137, %138 : vector<16x128xf32>
    %140 = arith.mulf %133, %139 : vector<16x128xf32>
    %141 = arith.addf %140, %114 : vector<16x128xf32>
    %cst_62 = arith.constant 0.707106769 : f32
    %142 = vector.broadcast %cst_62 : f32 to vector<16x128xf32>
    %143 = arith.mulf %141, %142 : vector<16x128xf32>
    %c2_63 = arith.constant 2 : index
    %c0_64 = arith.constant 0 : index
    %c0_65 = arith.constant 0 : index
    %144 = vector.load %arg6[%c2_63, %c0_64, %c0_65] : memref<3x1x128xf32, #tpu.memory_space<vmem>>, vector<1x1x128xf32>
    %145 = vector.shape_cast %144 : vector<1x1x128xf32> to vector<1x128xf32>
    %146 = vector.broadcast %145 : vector<1x128xf32> to vector<16x128xf32>
    %147 = arith.mulf %143, %146 : vector<16x128xf32>
    %c2_66 = arith.constant 2 : index
    %c0_67 = arith.constant 0 : index
    %c0_68 = arith.constant 0 : index
    %148 = vector.load %arg7[%c2_66, %c0_67, %c0_68] : memref<3x1x128xf32, #tpu.memory_space<vmem>>, vector<1x1x128xf32>
    %149 = vector.shape_cast %148 : vector<1x1x128xf32> to vector<1x128xf32>
    %150 = vector.broadcast %149 : vector<1x128xf32> to vector<16x128xf32>
    %151 = arith.addf %147, %150 : vector<16x128xf32>
    %c0_69 = arith.constant 0 : index
    %c0_70 = arith.constant 0 : index
    %152 = vector.load %arg8[%c0_69, %c0_70] : memref<128x128xf32, #tpu.memory_space<vmem>>, vector<128x128xf32>
    %cst_71 = arith.constant dense<0.000000e+00> : vector<16x128xf32>
    %153 = tpu.matmul %151, %152, %cst_71 {dimension_numbers = #tpu.dot_dimension_numbers<[1], [0], [0], [1], [0, 0, 1, 1], [], []>} : vector<16x128xf32>, vector<128x128xf32>, vector<16x128xf32> -> vector<16x128xf32>
    %c0_72 = arith.constant 0 : index
    %c0_73 = arith.constant 0 : index
    %154 = vector.load %arg9[%c0_72, %c0_73] : memref<1x128xf32, #tpu.memory_space<vmem>>, vector<1x128xf32>
    %155 = vector.broadcast %154 : vector<1x128xf32> to vector<16x128xf32>
    %156 = arith.addf %153, %155 : vector<16x128xf32>
    %c0_74 = arith.constant 0 : index
    %c0_75 = arith.constant 0 : index
    %157 = vector.load %arg10[%c0_74, %c0_75] : memref<16x128xf32, #tpu.memory_space<vmem>>, vector<16x128xf32>
    tpu.vector_store %arg10[%c0_74, %c0_75], %156 {strides = array<i32>} : memref<16x128xf32, #tpu.memory_space<vmem>>, vector<16x128xf32>,
    return
  }
  func.func @transform_0(%arg0: i32) -> (i32, i32) {
    %c0_i32 = arith.constant 0 : i32
    %c0_i32_0 = arith.constant 0 : i32
    return %arg0, %c0_i32 : i32, i32
  }
  func.func @transform_1(%arg0: i32) -> (i32, i32) {
    %c0_i32 = arith.constant 0 : i32
    %c0_i32_0 = arith.constant 0 : i32
    %c0_i32_1 = arith.constant 0 : i32
    return %c0_i32, %c0_i32_0 : i32, i32
  }
  func.func @transform_2(%arg0: i32) -> (i32, i32) {
    %c0_i32 = arith.constant 0 : i32
    %c0_i32_0 = arith.constant 0 : i32
    %c0_i32_1 = arith.constant 0 : i32
    return %c0_i32, %c0_i32_0 : i32, i32
  }
  func.func @transform_3(%arg0: i32) -> (i32, i32, i32) {
    %c0_i32 = arith.constant 0 : i32
    %c0_i32_0 = arith.constant 0 : i32
    %c0_i32_1 = arith.constant 0 : i32
    %c0_i32_2 = arith.constant 0 : i32
    return %c0_i32, %c0_i32_0, %c0_i32_1 : i32, i32, i32
  }
  func.func @transform_4(%arg0: i32) -> (i32, i32, i32) {
    %c0_i32 = arith.constant 0 : i32
    %c0_i32_0 = arith.constant 0 : i32
    %c0_i32_1 = arith.constant 0 : i32
    %c0_i32_2 = arith.constant 0 : i32
    return %c0_i32, %c0_i32_0, %c0_i32_1 : i32, i32, i32
  }
  func.func @transform_5(%arg0: i32) -> (i32, i32, i32) {
    %c0_i32 = arith.constant 0 : i32
    %c0_i32_0 = arith.constant 0 : i32
    %c0_i32_1 = arith.constant 0 : i32
    %c0_i32_2 = arith.constant 0 : i32
    return %c0_i32, %c0_i32_0, %c0_i32_1 : i32, i32, i32
  }
  func.func @transform_6(%arg0: i32) -> (i32, i32, i32) {
    %c0_i32 = arith.constant 0 : i32
    %c0_i32_0 = arith.constant 0 : i32
    %c0_i32_1 = arith.constant 0 : i32
    %c0_i32_2 = arith.constant 0 : i32
    return %c0_i32, %c0_i32_0, %c0_i32_1 : i32, i32, i32
  }
  func.func @transform_7(%arg0: i32) -> (i32, i32) {
    %c0_i32 = arith.constant 0 : i32
    %c0_i32_0 = arith.constant 0 : i32
    %c0_i32_1 = arith.constant 0 : i32
    return %c0_i32, %c0_i32_0 : i32, i32
  }
  func.func @transform_8(%arg0: i32) -> (i32, i32) {
    %c0_i32 = arith.constant 0 : i32
    %c0_i32_0 = arith.constant 0 : i32
    %c0_i32_1 = arith.constant 0 : i32
    return %c0_i32, %c0_i32_0 : i32, i32
  }
  func.func @transform_9(%arg0: i32) -> (i32, i32) {
    %c0_i32 = arith.constant 0 : i32
    %c0_i32_0 = arith.constant 0 : i32
    return %arg0, %c0_i32 : i32, i32
  }
}

</mosaic_0001>

<bundles_post_ra>
// kernel: tpu_custom_call.1
= control target key start
LH: loop header
LB: loop body
LE: loop exit
PB: predicated region body
PF: predicated region fallthrough
CT: control target
= control target key end

     0   :  { %14 = vsyncpa [#allocation3], 0  ;;  %s1941_s0 = inlined_call_operand.hbm [shape: f32[16,16], index: 0, kind: input, shape index: {}]   ;;  %s1942_s1 = inlined_call_operand.hbm [shape: f32[16,128], index: 1, kind: input, shape index: {}]   ;;  %s1943_s2 = inlined_call_operand.hbm [shape: f32[1,128], index: 2, kind: input, shape index: {}]   ;;  %s1944_s3 = inlined_call_operand.hbm [shape: f32[3,384,256], index: 3, kind: input, shape index: {}]   ;;  %s1945_s4 = inlined_call_operand.hbm [shape: f32[3,1,256], index: 4, kind: input, shape index: {}]   ;;  %s1946_s5 = inlined_call_operand.hbm [shape: f32[3,1,128], index: 5, kind: input, shape index: {}]   ;;  %s1947_s6 = inlined_call_operand.hbm [shape: f32[3,1,128], index: 6, kind: input, shape index: {}]   ;;  %s1948_s7 = inlined_call_operand.hbm [shape: f32[128,128], index: 7, kind: input, shape index: {}]   ;;  %s1949_s8 = inlined_call_operand.hbm [shape: f32[1,128], index: 8, kind: input, shape index: {}]   ;;  %s1950_s9 = inlined_call_operand.hbm [shape: f32[16,128], index: 9, kind: output, shape index: {}]  }
   0x1   :  { %15 = vsyncpa [#allocation6], 0 }
   0x2   :  { %16 = vsyncpa [#allocation9], 0 }
   0x3   :  { %17 = vsyncpa [#allocation12], 0 }
   0x4   :  { %18 = vsyncpa [#allocation15], 0 }
   0x5   :  { %19 = vsyncpa [#allocation4], 0  ;;  %s1702_s30 = smov [#allocation5]   ;;  %s1703_s11 = smov [#allocation8]  }
   0x6   :  { %s37_s10 = sshll.u32 %s1702_s30, 4  ;;  %s59_s12 = sshll.u32 %s1703_s11, 4  ;;  %s38_s10 = int_to_ptr.vmem [resolvable:$true] %s37_s10  ;;  %s60_s12 = int_to_ptr.vmem [resolvable:$true] %s59_s12 }
   0x7   :  { %s1498_s13 = scalar_lea.vmem %s38_s10, 256  ;;  %p1503_p1 = scmp.lt.s32.totalorder %s38_s10, %s38_s10 }
   0x8   :  { %p1499_p0 = scmp.ne.s32.totalorder %s38_s10, %s1498_s13  ;;  %p1504_p2 = scmp.lt.s32.totalorder %s1498_s13, %s1498_s13 }
   0xa   :  { %p1505_p3 = por %p1504_p2, %p1503_p1 }
   0xc   :  { %p1506_p4 = pnand %p1505_p3, %p1499_p0 }
   0xe   :  { %1509 = shalt.err (!%p1506_p4)
}
   0xf   :  { %s1704_s14 = smov 128   ;;  %s1705_s15 = smov 8  }
  0x10   :  { %43 = dma.hbm_to_vmem [thread:$0]  %s1942_s1, 256, %s38_s10, [#allocation6], %s1704_s14, %s1704_s14, %s1705_s15  }
  0x11   :  { %s1518_s18 = scalar_lea.vmem %s60_s12, 36864  ;;  %p1523_p6 = scmp.lt.s32.totalorder %s60_s12, %s60_s12 }
  0x12   :  { %p1519_p5 = scmp.ne.s32.totalorder %s60_s12, %s1518_s18  ;;  %p1524_p7 = scmp.lt.s32.totalorder %s1518_s18, %s1518_s18 }
  0x14   :  { %p1525_p8 = por %p1524_p7, %p1523_p6 }
  0x16   :  { %p1526_p9 = pnand %p1525_p8, %p1519_p5 }
  0x18   :  { %1529 = shalt.err (!%p1526_p9)
}
  0x19   :  { %s1706_s19 = smov 256   ;;  %s1707_s20 = smov 16  }
  0x1a   :  { %65 = dma.hbm_to_vmem [thread:$0]  %s1944_s3, 36864, %s60_s12, [#allocation9], %s1706_s19, %s1706_s19, %s1707_s20  }
  0x1b   :  { %s1708_s23 = smov [#allocation11]   ;;  %s1709_s25 = smov [#allocation14]  }
  0x1c   :  { %s83_s24 = sshll.u32 %s1708_s23, 4  ;;  %s107_s26 = sshll.u32 %s1709_s25, 4  ;;  %s84_s24 = int_to_ptr.vmem [resolvable:$true] %s83_s24  ;;  %s108_s26 = int_to_ptr.vmem [resolvable:$true] %s107_s26 }
  0x1d   :  { %s1538_s1 = scalar_lea.vmem %s84_s24, 48  ;;  %s1542_s27 = scalar_lea.vmem %s84_s24, 64 }
  0x1e   :  { %p1539_p10 = scmp.ne.s32.totalorder %s84_s24, %s1538_s1  ;;  %p1543_p11 = scmp.lt.s32.totalorder %s84_s24, %s84_s24 }
  0x1f   :  { %p1544_p12 = scmp.lt.s32.totalorder %s1542_s27, %s1538_s1 }
  0x21   :  { %p1545_p13 = por %p1544_p12, %p1543_p11 }
  0x23   :  { %p1546_p0 = pnand %p1545_p13, %p1539_p10 }
  0x25   :  { %1549 = shalt.err (!%p1546_p0)
}
  0x26   :  { %s1710_s28 = smov 1   ;;  %s1558_s3 = scalar_lea.vmem %s108_s26, 2048 }
  0x27   :  { %89 = dma.hbm_to_vmem [thread:$0]  %s1946_s5, 48, %s84_s24, [#allocation12], %s1707_s20, %s1707_s20, %s1710_s28  }
  0x28   :  { %p1559_p1 = scmp.ne.s32.totalorder %s108_s26, %s1558_s3  ;;  %p1563_p2 = scmp.lt.s32.totalorder %s108_s26, %s108_s26 }
  0x29   :  { %p1564_p3 = scmp.lt.s32.totalorder %s1558_s3, %s1558_s3 }
  0x2b   :  { %p1565_p4 = por %p1564_p3, %p1563_p2 }
  0x2d   :  { %p1566_p5 = pnand %p1565_p4, %p1559_p1 }
  0x2f   :  { %1569 = shalt.err (!%p1566_p5)
}
  0x30   :  { %113 = dma.hbm_to_vmem [thread:$0]  %s1948_s7, 2048, %s108_s26, [#allocation15], %s1704_s14, %s1704_s14, %s1705_s15  }
  0x31   :  { %s1711_s12 = smov [#allocation2]   ;;  %s1712_s16 = smov [#allocation7]  }
  0x32   :  { %s25_s13 = sshll.u32 %s1711_s12, 4  ;;  %s50_s5 = sshll.u32 %s1712_s16, 4  ;;  %s26_s13 = int_to_ptr.vmem [resolvable:$true] %s25_s13  ;;  %s51_s5 = int_to_ptr.vmem [resolvable:$true] %s50_s5 }
  0x33   :  { %s1578_s17 = scalar_lea.vmem %s26_s13, 256  ;;  %p1583_p7 = scmp.lt.s32.totalorder %s26_s13, %s26_s13 }
  0x34   :  { %p1579_p6 = scmp.ne.s32.totalorder %s26_s13, %s1578_s17  ;;  %p1584_p8 = scmp.lt.s32.totalorder %s1578_s17, %s1578_s17 }
  0x36   :  { %p1585_p9 = por %p1584_p8, %p1583_p7 }
  0x38   :  { %p1586_p10 = pnand %p1585_p9, %p1579_p6 }
  0x3a   :  { %1589 = shalt.err (!%p1586_p10)
}
  0x3b   :  { %31 = dma.hbm_to_vmem [thread:$0]  %s1941_s0, 256, %s26_s13, [#allocation3], %s1704_s14, %s1704_s14, %s1705_s15  }
  0x3c   :  { %s1598_s7 = scalar_lea.vmem %s51_s5, 16  ;;  %s1602_s21 = scalar_lea.vmem %s51_s5, 32 }
  0x3d   :  { %p1599_p11 = scmp.ne.s32.totalorder %s51_s5, %s1598_s7  ;;  %p1603_p12 = scmp.lt.s32.totalorder %s51_s5, %s51_s5 }
  0x3e   :  { %p1604_p13 = scmp.lt.s32.totalorder %s1602_s21, %s1598_s7 }
  0x40   :  { %p1605_p0 = por %p1604_p13, %p1603_p12 }
  0x42   :  { %p1606_p1 = pnand %p1605_p0, %p1599_p11 }
  0x44   :  { %1609 = shalt.err (!%p1606_p1)
}
  0x45   :  { %53 = dma.hbm_to_vmem [thread:$0]  %s1943_s2, 16, %s51_s5, [#allocation6]  }
  0x46   :  { %s1713_s24 = smov [#allocation10]  }
  0x47   :  { %s71_s25 = sshll.u32 %s1713_s24, 4  ;;  %s72_s25 = int_to_ptr.vmem [resolvable:$true] %s71_s25 }
  0x48   :  { %s1618_s26 = scalar_lea.vmem %s72_s25, 96  ;;  %p1623_p3 = scmp.lt.s32.totalorder %s72_s25, %s72_s25 }
  0x49   :  { %p1619_p2 = scmp.ne.s32.totalorder %s72_s25, %s1618_s26  ;;  %p1624_p4 = scmp.lt.s32.totalorder %s1618_s26, %s1618_s26 }
  0x4b   :  { %p1625_p5 = por %p1624_p4, %p1623_p3 }
  0x4d   :  { %p1626_p6 = pnand %p1625_p5, %p1619_p2 }
  0x4f   :  { %1629 = shalt.err (!%p1626_p6)
}
  0x50   :  { %s1714_s0 = smov 32   ;;  %s1715_s1 = smov 2  }
  0x51   :  { %77 = dma.hbm_to_vmem [thread:$0]  %s1945_s4, 96, %s72_s25, [#allocation9], %s1714_s0, %s1714_s0, %s1715_s1  }
  0x52   :  { %s1716_s30 = smov [#allocation13]   ;;  %s1717_s10 = smov [#allocation16]  }
  0x53   :  { %s95_s3 = sshll.u32 %s1716_s30, 4  ;;  %s120_s2 = sshll.u32 %s1717_s10, 4  ;;  %s96_s3 = int_to_ptr.vmem [resolvable:$true] %s95_s3  ;;  %s121_s2 = int_to_ptr.vmem [resolvable:$true] %s120_s2 }
  0x54   :  { %s1638_s11 = scalar_lea.vmem %s96_s3, 48  ;;  %s1642_s12 = scalar_lea.vmem %s96_s3, 64 }
  0x55   :  { %p1639_p7 = scmp.ne.s32.totalorder %s96_s3, %s1638_s11  ;;  %p1643_p8 = scmp.lt.s32.totalorder %s96_s3, %s96_s3 }
  0x56   :  { %p1644_p9 = scmp.lt.s32.totalorder %s1642_s12, %s1638_s11 }
  0x58   :  { %p1645_p10 = por %p1644_p9, %p1643_p8 }
  0x5a   :  { %p1646_p11 = pnand %p1645_p10, %p1639_p7 }
  0x5c   :  { %1649 = shalt.err (!%p1646_p11)
}
  0x5d   :  { %101 = dma.hbm_to_vmem [thread:$0]  %s1947_s6, 48, %s96_s3, [#allocation12], %s1707_s20, %s1707_s20, %s1710_s28  }
  0x5e   :  { %s1658_s4 = scalar_lea.vmem %s121_s2, 16  ;;  %s1662_s5 = scalar_lea.vmem %s121_s2, 32 }
  0x5f   :  { %p1659_p12 = scmp.ne.s32.totalorder %s121_s2, %s1658_s4  ;;  %p1663_p13 = scmp.lt.s32.totalorder %s121_s2, %s121_s2 }
  0x60   :  { %p1664_p0 = scmp.lt.s32.totalorder %s1662_s5, %s1658_s4 }
  0x62   :  { %p1665_p1 = por %p1664_p0, %p1663_p13 }
  0x64   :  { %p1666_p2 = pnand %p1665_p1, %p1659_p12 }
  0x66   :  { %1669 = shalt.err (!%p1666_p2)
}
  0x67   :  { %123 = dma.hbm_to_vmem [thread:$0]  %s1949_s8, 16, %s121_s2, [#allocation15]  }
  0x68   :  { %1690 = dma.done.wait [#allocation3], 256  }
  0x69   :  { %1691 = vsyncadd [#allocation3], 4294967040 }
  0x6a   :  { %1692 = dma.done.wait [#allocation6], 272  }
  0x6b   :  { %1693 = vsyncadd [#allocation6], 4294967024 }
  0x6c   :  { %1694 = dma.done.wait [#allocation9], 36960  }
  0x6d   :  { %1695 = vsyncadd [#allocation9], 4294930336 }
  0x6e   :  { %1696 = dma.done.wait [#allocation12], 96  }
  0x6f   :  { %1697 = vsyncadd [#allocation12], 4294967200 }
  0x70   :  { %1698 = dma.done.wait [#allocation15], 2064  }
  0x71   :  { %1699 = vsyncadd [#allocation15], 4294965232  ;;  %vm162_vm0 = vcmask 130048   ;;  %v154_v0 = vld [vmem:[#allocation5 + $0x8] sm:$0xff]  ;;  %v153_v1 = vld [vmem:[#allocation5] sm:$0xff]  ;;  %s1719_s6 = smov [#allocation17]  }
  0x72   :  { %v151_v2 = vld [vmem:[#allocation2] sm:$0xff]  ;;  %1406 = vmatprep.subr.mxu0 %v154_v0  ;;  %v339_v4 = vld [vmem:[#allocation8 + $0xf0] sm:$0xff]  ;;  %v152_v5 = vld [vmem:[#allocation2 + $0x8] sm:$0xff]  ;;  %s1340_s8 = sshll.u32 %s1719_s6, 4  ;;  %s1341_s8 = int_to_ptr.vmem [resolvable:$true] %s1340_s8 }
  0x73   :  { %1410 = vmatprep.mubr.msk.f32.mxu0 %vm162_vm0, %v151_v2  ;;  %v340_v3 = vld [vmem:[#allocation8 + $0xf8] sm:$0xff]  ;;  %1407 = vmatpush3.msra.mxu0 %v154_v0  ;;  %v338_v6 = vld [vmem:[#allocation8 + $0xe8] sm:$0xff]  ;;  %v337_v7 = vld [vmem:[#allocation8 + $0xe0] sm:$0xff]  ;;  %s1670_s20 = scalar_lea.vmem %s1341_s8, 256  ;;  %p1675_p4 = scmp.lt.s32.totalorder %s1341_s8, %s1341_s8 }
  0x74   :  { %417 = vmatprep.subr.mxu1 %v340_v3  ;;  %1408 = vmatprep.subr.mxu0 %v153_v1  ;;  %v336_v8 = vld [vmem:[#allocation8 + $0xd8] sm:$0xff]  ;;  %v335_v9 = vld [vmem:[#allocation8 + $0xd0] sm:$0xff]  ;;  %v334_v10 = vld [vmem:[#allocation8 + $0xc8] sm:$0xff]  ;;  %p1671_p3 = scmp.ne.s32.totalorder %s1341_s8, %s1670_s20  ;;  %p1676_p5 = scmp.lt.s32.totalorder %s1670_s20, %s1670_s20 }
  0x75   :  { %418 = vmatpush1.msra.mxu1 %v339_v4  ;;  %1409 = vmatpush3.msra.mxu0 %v153_v1  ;;  %v333_v11 = vld [vmem:[#allocation8 + $0xc0] sm:$0xff]  ;;  %v332_v12 = vld [vmem:[#allocation8 + $0xb8] sm:$0xff]  ;;  %v331_v13 = vld [vmem:[#allocation8 + $0xb0] sm:$0xff] }
  0x76   :  { %419 = vmatprep.subr.mxu1 %v338_v6  ;;  %1411 = vmatmul.mubr.msk.f32.vlgmr.msra.gmra.mxu0 %vm162_vm0, %v152_v5  ;;  %v330_v14 = vld [vmem:[#allocation8 + $0xa8] sm:$0xff]  ;;  %v329_v15 = vld [vmem:[#allocation8 + $0xa0] sm:$0xff]  ;;  %v328_v16 = vld [vmem:[#allocation8 + $0x98] sm:$0xff]  ;;  %p1677_p6 = por %p1676_p5, %p1675_p4 }
  0x77   :  { %420 = vmatpush1.msra.mxu1 %v337_v7  ;;  %v327_v17 = vld [vmem:[#allocation8 + $0x90] sm:$0xff]  ;;  %v404_v18 = vld [vmem:[#allocation8 + $0x2f8] sm:$0xff]  ;;  %v326_v19 = vld [vmem:[#allocation8 + $0x88] sm:$0xff] }
  0x78   :  { %421 = vmatprep.subr.mxu1 %v336_v8  ;;  %494 = vmatprep.subr.mxu0 %v404_v18  ;;  %v403_v20 = vld [vmem:[#allocation8 + $0x2f0] sm:$0xff]  ;;  %v402_v21 = vld [vmem:[#allocation8 + $0x2e8] sm:$0xff]  ;;  %v325_v22 = vld [vmem:[#allocation8 + $0x80] sm:$0xff]  ;;  %p1678_p7 = pnand %p1677_p6, %p1671_p3 }
  0x79   :  { %422 = vmatpush1.msra.mxu1 %v335_v9  ;;  %495 = vmatpush1.msra.mxu0 %v403_v20  ;;  %v401_v23 = vld [vmem:[#allocation8 + $0x2e0] sm:$0xff]  ;;  %v324_v24 = vld [vmem:[#allocation8 + $0x78] sm:$0xff]  ;;  %v399_v26 = vld [vmem:[#allocation8 + $0x2d0] sm:$0xff] }
  0x7a   :  { %423 = vmatprep.subr.mxu1 %v334_v10  ;;  %496 = vmatprep.subr.mxu0 %v402_v21  ;;  %v400_v25 = vld [vmem:[#allocation8 + $0x2d8] sm:$0xff]  ;;  %v323_v27 = vld [vmem:[#allocation8 + $0x70] sm:$0xff]  ;;  %v398_v28 = vld [vmem:[#allocation8 + $0x2c8] sm:$0xff] }
  0x7b   :  { %424 = vmatpush1.msra.mxu1 %v333_v11  ;;  %497 = vmatpush1.msra.mxu0 %v401_v23  ;;  %v322_v29 = vld [vmem:[#allocation8 + $0x68] sm:$0xff]  ;;  %v397_v30 = vld [vmem:[#allocation8 + $0x2c0] sm:$0xff]  ;;  %v396_v32 = vld [vmem:[#allocation8 + $0x2b8] sm:$0xff] }
  0x7c   :  { %425 = vmatprep.subr.mxu1 %v332_v12  ;;  %498 = vmatprep.subr.mxu0 %v400_v25  ;;  %v321_v31 = vld [vmem:[#allocation8 + $0x60] sm:$0xff]  ;;  %v320_v33 = vld [vmem:[#allocation8 + $0x58] sm:$0xff]  ;;  %v395_v34 = vld [vmem:[#allocation8 + $0x2b0] sm:$0xff] }
  0x7d   :  { %426 = vmatpush1.msra.mxu1 %v331_v13  ;;  %499 = vmatpush1.msra.mxu0 %v399_v26  ;;  %v319_v35 = vld [vmem:[#allocation8 + $0x50] sm:$0xff]  ;;  %v394_v36 = vld [vmem:[#allocation8 + $0x2a8] sm:$0xff]  ;;  %v393_v38 = vld [vmem:[#allocation8 + $0x2a0] sm:$0xff] }
  0x7e   :  { %427 = vmatprep.subr.mxu1 %v330_v14  ;;  %500 = vmatprep.subr.mxu0 %v398_v28  ;;  %v318_v37 = vld [vmem:[#allocation8 + $0x48] sm:$0xff]  ;;  %v317_v39 = vld [vmem:[#allocation8 + $0x40] sm:$0xff]  ;;  %v392_v40 = vld [vmem:[#allocation8 + $0x298] sm:$0xff] }
  0x7f   :  { %428 = vmatpush1.msra.mxu1 %v329_v15  ;;  %501 = vmatpush1.msra.mxu0 %v397_v30  ;;  %v316_v41 = vld [vmem:[#allocation8 + $0x38] sm:$0xff]  ;;  %v391_v42 = vld [vmem:[#allocation8 + $0x290] sm:$0xff]  ;;  %v390_v44 = vld [vmem:[#allocation8 + $0x288] sm:$0xff] }
  0x80   :  { %429 = vmatprep.subr.mxu1 %v328_v16  ;;  %502 = vmatprep.subr.mxu0 %v396_v32  ;;  %v315_v43 = vld [vmem:[#allocation8 + $0x30] sm:$0xff]  ;;  %v314_v45 = vld [vmem:[#allocation8 + $0x28] sm:$0xff]  ;;  %v389_v46 = vld [vmem:[#allocation8 + $0x280] sm:$0xff] }
  0x81   :  { %430 = vmatpush1.msra.mxu1 %v327_v17  ;;  %503 = vmatpush1.msra.mxu0 %v395_v34  ;;  %v313_v47 = vld [vmem:[#allocation8 + $0x20] sm:$0xff]  ;;  %v388_v48 = vld [vmem:[#allocation8 + $0x278] sm:$0xff]  ;;  %v387_v50 = vld [vmem:[#allocation8 + $0x270] sm:$0xff] }
  0x82   :  { %431 = vmatprep.subr.mxu1 %v326_v19  ;;  %504 = vmatprep.subr.mxu0 %v394_v36  ;;  %v312_v49 = vld [vmem:[#allocation8 + $0x18] sm:$0xff]  ;;  %v311_v51 = vld [vmem:[#allocation8 + $0x10] sm:$0xff]  ;;  %v386_v52 = vld [vmem:[#allocation8 + $0x268] sm:$0xff]  ;;  %v1718_v36 = vmov 0.0  }
  0x83   :  { %432 = vmatpush1.msra.mxu1 %v325_v22  ;;  %505 = vmatpush1.msra.mxu0 %v393_v38  ;;  %v310_v53 = vld [vmem:[#allocation8 + $0x8] sm:$0xff]  ;;  %v385_v54 = vld [vmem:[#allocation8 + $0x260] sm:$0xff]  ;;  %v384_v56 = vld [vmem:[#allocation8 + $0x258] sm:$0xff]  ;;  %v244_v38 = vlaneseq }
  0x84   :  { %433 = vmatprep.subr.mxu1 %v324_v24  ;;  %506 = vmatprep.subr.mxu0 %v392_v40  ;;  %v309_v55 = vld [vmem:[#allocation8] sm:$0xff]  ;;  %v372_v57 = vld [vmem:[#allocation8 + $0x1f8] sm:$0xff]  ;;  %v383_v58 = vld [vmem:[#allocation8 + $0x250] sm:$0xff] }
  0x85   :  { %434 = vmatpush1.msra.mxu1 %v323_v27  ;;  %507 = vmatpush1.msra.mxu0 %v391_v42  ;;  %v371_v59 = vld [vmem:[#allocation8 + $0x1f0] sm:$0xff]  ;;  %v382_v60 = vld [vmem:[#allocation8 + $0x248] sm:$0xff]  ;;  %v381_v62 = vld [vmem:[#allocation8 + $0x240] sm:$0xff] }
  0x86   :  { %435 = vmatprep.subr.mxu1 %v322_v29  ;;  %508 = vmatprep.subr.mxu0 %v390_v44  ;;  %v370_v61 = vld [vmem:[#allocation8 + $0x1e8] sm:$0xff]  ;;  %v369_v63 = vld [vmem:[#allocation8 + $0x1e0] sm:$0xff]  ;;  %v368_v0 = vld [vmem:[#allocation8 + $0x1d8] sm:$0xff] }
  0x87   :  { %436 = vmatpush1.msra.mxu1 %v321_v31  ;;  %509 = vmatpush1.msra.mxu0 %v389_v46  ;;  %v367_v1 = vld [vmem:[#allocation8 + $0x1d0] sm:$0xff]  ;;  %v366_v2 = vld [vmem:[#allocation8 + $0x1c8] sm:$0xff]  ;;  %v365_v3 = vld [vmem:[#allocation8 + $0x1c0] sm:$0xff] }
  0x88   :  { %437 = vmatprep.subr.mxu1 %v320_v33  ;;  %510 = vmatprep.subr.mxu0 %v388_v48  ;;  %v364_v4 = vld [vmem:[#allocation8 + $0x1b8] sm:$0xff]  ;;  %v363_v5 = vld [vmem:[#allocation8 + $0x1b0] sm:$0xff]  ;;  %v362_v6 = vld [vmem:[#allocation8 + $0x1a8] sm:$0xff] }
  0x89   :  { %438 = vmatpush1.msra.mxu1 %v319_v35  ;;  %511 = vmatpush1.msra.mxu0 %v387_v50  ;;  %v361_v7 = vld [vmem:[#allocation8 + $0x1a0] sm:$0xff]  ;;  %v360_v8 = vld [vmem:[#allocation8 + $0x198] sm:$0xff]  ;;  %v359_v9 = vld [vmem:[#allocation8 + $0x190] sm:$0xff] }
  0x8a   :  { %439 = vmatprep.subr.mxu1 %v318_v37  ;;  %512 = vmatprep.subr.mxu0 %v386_v52  ;;  %v358_v10 = vld [vmem:[#allocation8 + $0x188] sm:$0xff]  ;;  %v357_v11 = vld [vmem:[#allocation8 + $0x180] sm:$0xff]  ;;  %v356_v12 = vld [vmem:[#allocation8 + $0x178] sm:$0xff] }
  0x8b   :  { %440 = vmatpush1.msra.mxu1 %v317_v39  ;;  %513 = vmatpush1.msra.mxu0 %v385_v54  ;;  %v355_v13 = vld [vmem:[#allocation8 + $0x170] sm:$0xff]  ;;  %v354_v14 = vld [vmem:[#allocation8 + $0x168] sm:$0xff]  ;;  %v353_v15 = vld [vmem:[#allocation8 + $0x160] sm:$0xff]  ;;  %v1816_v39 = vshrl.u32 %v244_v38, 7 }
  0x8c   :  { %441 = vmatprep.subr.mxu1 %v316_v41  ;;  %514 = vmatprep.subr.mxu0 %v384_v56  ;;  %v352_v16 = vld [vmem:[#allocation8 + $0x158] sm:$0xff]  ;;  %v351_v17 = vld [vmem:[#allocation8 + $0x150] sm:$0xff]  ;;  %v350_v18 = vld [vmem:[#allocation8 + $0x148] sm:$0xff] }
  0x8d   :  { %442 = vmatpush1.msra.mxu1 %v315_v43  ;;  %515 = vmatpush1.msra.mxu0 %v383_v58  ;;  %v349_v19 = vld [vmem:[#allocation8 + $0x140] sm:$0xff]  ;;  %v348_v20 = vld [vmem:[#allocation8 + $0x138] sm:$0xff]  ;;  %v347_v22 = vld [vmem:[#allocation8 + $0x130] sm:$0xff]  ;;  %v251_v40 = vand.u32 7, %v1816_v39  ;;  %v246_v41 = vadd.s32 8, %v1816_v39  ;;  %vm289_vm1 = vcmp.lt.s32.totalorder %v1816_v39, 1 }
  0x8e   :  { %443 = vmatprep.subr.mxu1 %v314_v45  ;;  %516 = vmatprep.subr.mxu0 %v382_v60  ;;  %v380_v21 = vld [vmem:[#allocation8 + $0x238] sm:$0xff]  ;;  %v379_v23 = vld [vmem:[#allocation8 + $0x230] sm:$0xff]  ;;  %v346_v24 = vld [vmem:[#allocation8 + $0x128] sm:$0xff]  ;;  %vm300_vm2 = vcmp.lt.s32.totalorder %v1816_v39, 7 }
  0x8f   :  { %444 = vmatpush1.msra.mxu1 %v313_v47  ;;  %517 = vmatpush1.msra.mxu0 %v381_v62  ;;  %v378_v25 = vld [vmem:[#allocation8 + $0x228] sm:$0xff]  ;;  %v345_v26 = vld [vmem:[#allocation8 + $0x120] sm:$0xff]  ;;  %v344_v28 = vld [vmem:[#allocation8 + $0x118] sm:$0xff]  ;;  %v1820_v44 = vadd.s32 4294967295, %v251_v40  ;;  %v1822_v45 = vadd.s32 1, %v251_v40  ;;  %v258_v46 = vand.u32 7, %v246_v41 }
  0x90   :  { %445 = vmatprep.subr.mxu1 %v312_v49  ;;  %518 = vmatprep.subr.mxu0 %v380_v21  ;;  %v377_v27 = vld [vmem:[#allocation8 + $0x220] sm:$0xff]  ;;  %v376_v29 = vld [vmem:[#allocation8 + $0x218] sm:$0xff]  ;;  %v343_v30 = vld [vmem:[#allocation8 + $0x110] sm:$0xff] }
  0x91   :  { %446 = vmatpush1.msra.mxu1 %v311_v51  ;;  %519 = vmatpush1.msra.mxu0 %v379_v23  ;;  %v375_v31 = vld [vmem:[#allocation8 + $0x210] sm:$0xff]  ;;  %v342_v32 = vld [vmem:[#allocation8 + $0x108] sm:$0xff]  ;;  %v341_v34 = vld [vmem:[#allocation8 + $0x100] sm:$0xff]  ;;  %vm273_vm3 = vcmp.ge.s32.totalorder %v1820_v44, 0  ;;  %vm283_vm4 = vcmp.lt.s32.totalorder %v1822_v45, 8  ;;  %v1832_v50 = vadd.s32 4294967295, %v258_v46 }
  0x92   :  { %447 = vmatprep.subr.mxu1 %v310_v53  ;;  %520 = vmatprep.subr.mxu0 %v378_v25  ;;  %v374_v33 = vld [vmem:[#allocation8 + $0x208] sm:$0xff]  ;;  %v373_v35 = vld [vmem:[#allocation8 + $0x200] sm:$0xff]  ;;  %v651_v37 = vld [vmem:[#allocation8 + $0x3f8] sm:$0xff]  ;;  %v1834_v51 = vadd.s32 1, %v258_v46 }
  0x93   :  { %448 = vmatpush1.msra.mxu1 %v309_v55  ;;  %521 = vmatpush1.msra.mxu0 %v377_v27  ;;  %v1356_v42 = vld [vmem:[#allocation7] ss:$0 sm:$0xff]  ;;  %v650_v58 = vld [vmem:[#allocation8 + $0x3f0] sm:$0xff]  ;;  %vm274_vm5 = vcmp.ge.s32.totalorder %v1832_v50, 0  ;;  %v648_v60 = vld [vmem:[#allocation8 + $0x3e0] sm:$0xff] }
  0x94   :  { %449 = vmatprep.subr.mxu1 %v372_v57  ;;  %522 = vmatprep.subr.mxu0 %v376_v29  ;;  %vm284_vm6 = vcmp.lt.s32.totalorder %v1834_v51, 8  ;;  %v625_v21 = vld [vmem:[#allocation8 + $0x328] sm:$0xff]  ;;  %v623_v23 = vld [vmem:[#allocation8 + $0x318] sm:$0xff]  ;;  %v682_v29 = vld [vmem:[#allocation8 + $0x4f0] sm:$0xff] }
  0x95   :  { %450 = vmatpush2.msra.mxu1 %v371_v59  ;;  %523 = vmatpush1.msra.mxu0 %v375_v31  ;;  %v649_v59 = vld [vmem:[#allocation8 + $0x3e8] sm:$0xff]  ;;  %v683_v27 = vld [vmem:[#allocation8 + $0x4f8] sm:$0xff]  ;;  %v678_v38 = vld [vmem:[#allocation8 + $0x4d0] sm:$0xff] }
  0x96   :  { %451 = vmatprep.subr.mxu1 %v370_v61  ;;  %524 = vmatprep.subr.mxu0 %v374_v33  ;;  %v621_v25 = vld [vmem:[#allocation8 + $0x308] sm:$0xff]  ;;  %v680_v33 = vld [vmem:[#allocation8 + $0x4e0] sm:$0xff]  ;;  %v710_v40 = vld [vmem:[#allocation8 + $0x5d0] sm:$0xff] }
  0x97   :  { %452 = vmatpush2.msra.mxu1 %v369_v63  ;;  %525 = vmatpush1.msra.mxu0 %v373_v35  ;;  %v647_v63 = vld [vmem:[#allocation8 + $0x3d8] sm:$0xff]  ;;  %v681_v31 = vld [vmem:[#allocation8 + $0x4e8] sm:$0xff]  ;;  %v708_v46 = vld [vmem:[#allocation8 + $0x5c0] sm:$0xff] }
  0x98   :  { %453 = vmatprep.subr.mxu1 %v368_v0  ;;  %558 = vmatprep.mubr.f32.mxu0 %v1718_v36  ;;  %v646_v0 = vld [vmem:[#allocation8 + $0x3d0] sm:$0xff]  ;;  %v679_v35 = vld [vmem:[#allocation8 + $0x4d8] sm:$0xff]  ;;  %v677_v41 = vld [vmem:[#allocation8 + $0x4c8] sm:$0xff] }
  0x99   :  { %454 = vmatpush2.msra.mxu1 %v367_v1  ;;  %729 = vmatprep.subr.mxu0 %v651_v37  ;;  %v645_v1 = vld [vmem:[#allocation8 + $0x3c8] sm:$0xff]  ;;  %v711_v37 = vld [vmem:[#allocation8 + $0x5d8] sm:$0xff] }
  0x9a   :  { %455 = vmatprep.subr.mxu1 %v366_v2  ;;  %v644_v2 = vld [vmem:[#allocation8 + $0x3c0] sm:$0xff]  ;;  %v1244_v50 = vld [vmem:[#allocation14 + $0x48] sm:$0xff]  ;;  %v1243_v51 = vld [vmem:[#allocation14 + $0x40] sm:$0xff] }
  0x9b   :  { %456 = vmatpush2.msra.mxu1 %v365_v3  ;;  %v643_v3 = vld [vmem:[#allocation8 + $0x3b8] sm:$0xff]  ;;  %v1250_v44 = vld [vmem:[#allocation14 + $0x78] sm:$0xff] }
  0x9c   :  { %457 = vmatprep.subr.mxu1 %v364_v4  ;;  %v642_v4 = vld [vmem:[#allocation8 + $0x3b0] sm:$0xff]  ;;  %v1249_v45 = vld [vmem:[#allocation14 + $0x70] sm:$0xff] }
  0x9d   :  { %458 = vmatpush2.msra.mxu1 %v363_v5  ;;  %v641_v5 = vld [vmem:[#allocation8 + $0x3a8] sm:$0xff] }
  0x9e   :  { %459 = vmatprep.subr.mxu1 %v362_v6  ;;  %v640_v6 = vld [vmem:[#allocation8 + $0x3a0] sm:$0xff] }
  0x9f   :  { %460 = vmatpush2.msra.mxu1 %v361_v7  ;;  %v639_v7 = vld [vmem:[#allocation8 + $0x398] sm:$0xff] }
  0xa0   :  { %461 = vmatprep.subr.mxu1 %v360_v8  ;;  %v638_v8 = vld [vmem:[#allocation8 + $0x390] sm:$0xff] }
  0xa1   :  { %462 = vmatpush2.msra.mxu1 %v359_v9  ;;  %v637_v9 = vld [vmem:[#allocation8 + $0x388] sm:$0xff] }
  0xa2   :  { %463 = vmatprep.subr.mxu1 %v358_v10  ;;  %v636_v10 = vld [vmem:[#allocation8 + $0x380] sm:$0xff] }
  0xa3   :  { %464 = vmatpush2.msra.mxu1 %v357_v11  ;;  %v635_v11 = vld [vmem:[#allocation8 + $0x378] sm:$0xff] }
  0xa4   :  { %465 = vmatprep.subr.mxu1 %v356_v12  ;;  %v634_v12 = vld [vmem:[#allocation8 + $0x370] sm:$0xff] }
  0xa5   :  { %466 = vmatpush2.msra.mxu1 %v355_v13  ;;  %v633_v13 = vld [vmem:[#allocation8 + $0x368] sm:$0xff] }
  0xa6   :  { %467 = vmatprep.subr.mxu1 %v354_v14  ;;  %v632_v14 = vld [vmem:[#allocation8 + $0x360] sm:$0xff] }
  0xa7   :  { %468 = vmatpush2.msra.mxu1 %v353_v15  ;;  %v631_v15 = vld [vmem:[#allocation8 + $0x358] sm:$0xff] }
  0xa8   :  { %469 = vmatprep.subr.mxu1 %v352_v16  ;;  %v630_v16 = vld [vmem:[#allocation8 + $0x350] sm:$0xff] }
  0xa9   :  { %470 = vmatpush2.msra.mxu1 %v351_v17  ;;  %v629_v17 = vld [vmem:[#allocation8 + $0x348] sm:$0xff] }
  0xaa   :  { %471 = vmatprep.subr.mxu1 %v350_v18  ;;  %v628_v18 = vld [vmem:[#allocation8 + $0x340] sm:$0xff] }
  0xab   :  { %472 = vmatpush2.msra.mxu1 %v349_v19  ;;  %v627_v19 = vld [vmem:[#allocation8 + $0x338] sm:$0xff] }
  0xac   :  { %473 = vmatprep.subr.mxu1 %v348_v20  ;;  %v626_v20 = vld [vmem:[#allocation8 + $0x330] sm:$0xff] }
  0xad   :  { %474 = vmatpush2.msra.mxu1 %v347_v22  ;;  %v624_v22 = vld [vmem:[#allocation8 + $0x320] sm:$0xff] }
  0xae   :  { %475 = vmatprep.subr.mxu1 %v346_v24  ;;  %v622_v24 = vld [vmem:[#allocation8 + $0x310] sm:$0xff] }
  0xaf   :  { %476 = vmatpush2.msra.mxu1 %v345_v26  ;;  %v620_v26 = vld [vmem:[#allocation8 + $0x300] sm:$0xff] }
  0xb0   :  { %477 = vmatprep.subr.mxu1 %v344_v28  ;;  %v715_v28 = vld [vmem:[#allocation8 + $0x5f8] sm:$0xff] }
  0xb1   :  { %478 = vmatpush2.msra.mxu1 %v343_v30  ;;  %v714_v30 = vld [vmem:[#allocation8 + $0x5f0] sm:$0xff] }
  0xb2   :  { %479 = vmatprep.subr.mxu1 %v342_v32  ;;  %v713_v32 = vld [vmem:[#allocation8 + $0x5e8] sm:$0xff] }
  0xb3   :  { %480 = vmatpush2.msra.mxu1 %v341_v34  ;;  %v712_v34 = vld [vmem:[#allocation8 + $0x5e0] sm:$0xff] }
  0xb4   :  { %806 = vmatprep.subr.mxu1 %v715_v28  ;;  %v687_v28 = vld [vmem:[#allocation8 + $0x518] sm:$0xff] }
 0x136   :  { %v1412_v43 = vpop.f32.mrf.mxu0 }
 0x137   :  { %v1824_v47 = vadd.f32 %v1412_v43, %v1356_v42  ;;  %v676_v43 = vld [vmem:[#allocation8 + $0x4c0] sm:$0xff] }
 0x138   :  { %v235_v48 = vpop.f32.mrf.mxu0 }
 0x139   :  { %v1826_v49 = vadd.f32 %v1356_v42, %v235_v48  ;;  %v299_v52 = vrot.slane %v1824_v47, 1  ;;  %v288_v55 = vrot.slane %v1824_v47, 7  ;;  %v709_v42 = vld [vmem:[#allocation8 + $0x5c8] sm:$0xff]  ;;  %v675_v48 = vld [vmem:[#allocation8 + $0x4b8] sm:$0xff] }
 0x13b   :  { %v298_v53 = vrot.slane %v1826_v49, 1  ;;  %481 = vmatprep.mubr.f32.mxu1 %v1826_v49  ;;  %v287_v54 = vrot.slane %v1826_v49, 7 }
 0x13d   :  { %v291_v56 = vsel %vm289_vm1, %v288_v55, %v287_v54  ;;  %v301_v57 = vsel %vm300_vm2, %v298_v53, %v299_v52  ;;  %v290_v61 = vsel %vm289_vm1, %v287_v54, %v288_v55  ;;  %v302_v62 = vsel %vm300_vm2, %v299_v52, %v298_v53  ;;  %v707_v52 = vld [vmem:[#allocation8 + $0x5b8] sm:$0xff]  ;;  %v674_v53 = vld [vmem:[#allocation8 + $0x4b0] sm:$0xff]  ;;  %v673_v55 = vld [vmem:[#allocation8 + $0x4a8] sm:$0xff] }
 0x13e   :  { %1359 = vmatmul.mubr.msk.f32.vlgmr.msra.gmra.mxu1 %vm273_vm3, %v291_v56  ;;  %1361 = vmatmul.mubr.msk.f32.vlgmr.msra.gmra.mxu0 %vm283_vm4, %v301_v57  ;;  %v706_v54 = vld [vmem:[#allocation8 + $0x5b0] sm:$0xff]  ;;  %v705_v56 = vld [vmem:[#allocation8 + $0x5a8] sm:$0xff]  ;;  %v672_v57 = vld [vmem:[#allocation8 + $0x4a0] sm:$0xff] }
 0x13f   :  { %487 = vmatprep.mubr.f32.mxu1 %v1824_v47  ;;  %564 = vmatprep.mubr.f32.mxu0 %v1718_v36 }
 0x140   :  { %730 = vmatpush1.msra.mxu0 %v650_v58  ;;  %807 = vmatpush1.msra.mxu1 %v714_v30  ;;  %v704_v58 = vld [vmem:[#allocation8 + $0x5a0] sm:$0xff]  ;;  %v686_v30 = vld [vmem:[#allocation8 + $0x510] sm:$0xff] }
 0x141   :  { %731 = vmatprep.subr.mxu0 %v649_v59  ;;  %808 = vmatprep.subr.mxu1 %v713_v32  ;;  %v671_v59 = vld [vmem:[#allocation8 + $0x498] sm:$0xff]  ;;  %v685_v32 = vld [vmem:[#allocation8 + $0x508] sm:$0xff] }
 0x142   :  { %1360 = vmatmul.mubr.msk.f32.gmra.mxu1 %vm274_vm5, %v290_v61  ;;  %1362 = vmatmul.mubr.msk.f32.gmra.mxu0 %vm284_vm6, %v302_v62  ;;  %v670_v61 = vld [vmem:[#allocation8 + $0x490] sm:$0xff] }
 0x143   :  { %732 = vmatpush1.msra.mxu0 %v648_v60  ;;  %870 = vmatprep.mubr.f32.mxu1 %v1718_v36  ;;  %v703_v60 = vld [vmem:[#allocation8 + $0x598] sm:$0xff]  ;;  %v702_v62 = vld [vmem:[#allocation8 + $0x590] sm:$0xff] }
 0x144   :  { %733 = vmatprep.subr.mxu0 %v647_v63  ;;  %809 = vmatpush1.msra.mxu1 %v712_v34  ;;  %v669_v63 = vld [vmem:[#allocation8 + $0x488] sm:$0xff]  ;;  %v684_v34 = vld [vmem:[#allocation8 + $0x500] sm:$0xff] }
 0x145   :  { %734 = vmatpush1.msra.mxu0 %v646_v0  ;;  %810 = vmatprep.subr.mxu1 %v711_v37  ;;  %v701_v0 = vld [vmem:[#allocation8 + $0x588] sm:$0xff]  ;;  %v1863_v37 = vsub.s32 1, %v1816_v39 }
 0x146   :  { %735 = vmatprep.subr.mxu0 %v645_v1  ;;  %811 = vmatpush1.msra.mxu1 %v710_v40  ;;  %v668_v1 = vld [vmem:[#allocation8 + $0x480] sm:$0xff] }
 0x147   :  { %736 = vmatpush1.msra.mxu0 %v644_v2  ;;  %812 = vmatprep.subr.mxu1 %v709_v42  ;;  %v700_v2 = vld [vmem:[#allocation8 + $0x580] sm:$0xff] }
 0x148   :  { %737 = vmatprep.subr.mxu0 %v643_v3  ;;  %813 = vmatpush1.msra.mxu1 %v708_v46  ;;  %v667_v3 = vld [vmem:[#allocation8 + $0x478] sm:$0xff] }
 0x149   :  { %738 = vmatpush1.msra.mxu0 %v642_v4  ;;  %814 = vmatprep.subr.mxu1 %v707_v52  ;;  %v699_v4 = vld [vmem:[#allocation8 + $0x578] sm:$0xff] }
 0x14a   :  { %739 = vmatprep.subr.mxu0 %v641_v5  ;;  %815 = vmatpush1.msra.mxu1 %v706_v54  ;;  %v666_v5 = vld [vmem:[#allocation8 + $0x470] sm:$0xff] }
 0x14b   :  { %740 = vmatpush1.msra.mxu0 %v640_v6  ;;  %816 = vmatprep.subr.mxu1 %v705_v56  ;;  %v698_v6 = vld [vmem:[#allocation8 + $0x570] sm:$0xff] }
 0x14c   :  { %741 = vmatprep.subr.mxu0 %v639_v7  ;;  %817 = vmatpush1.msra.mxu1 %v704_v58  ;;  %v665_v7 = vld [vmem:[#allocation8 + $0x468] sm:$0xff] }
 0x14d   :  { %742 = vmatpush1.msra.mxu0 %v638_v8  ;;  %818 = vmatprep.subr.mxu1 %v703_v60  ;;  %v697_v8 = vld [vmem:[#allocation8 + $0x568] sm:$0xff] }
 0x14e   :  { %743 = vmatprep.subr.mxu0 %v637_v9  ;;  %819 = vmatpush1.msra.mxu1 %v702_v62  ;;  %v664_v9 = vld [vmem:[#allocation8 + $0x460] sm:$0xff] }
 0x14f   :  { %744 = vmatpush1.msra.mxu0 %v636_v10  ;;  %820 = vmatprep.subr.mxu1 %v701_v0  ;;  %v696_v10 = vld [vmem:[#allocation8 + $0x560] sm:$0xff] }
 0x150   :  { %745 = vmatprep.subr.mxu0 %v635_v11  ;;  %821 = vmatpush1.msra.mxu1 %v700_v2  ;;  %v663_v11 = vld [vmem:[#allocation8 + $0x458] sm:$0xff] }
 0x151   :  { %746 = vmatpush1.msra.mxu0 %v634_v12  ;;  %822 = vmatprep.subr.mxu1 %v699_v4  ;;  %v695_v12 = vld [vmem:[#allocation8 + $0x558] sm:$0xff] }
 0x152   :  { %747 = vmatprep.subr.mxu0 %v633_v13  ;;  %823 = vmatpush1.msra.mxu1 %v698_v6  ;;  %v662_v13 = vld [vmem:[#allocation8 + $0x450] sm:$0xff] }
 0x153   :  { %748 = vmatpush1.msra.mxu0 %v632_v14  ;;  %824 = vmatprep.subr.mxu1 %v697_v8  ;;  %v694_v14 = vld [vmem:[#allocation8 + $0x550] sm:$0xff] }
 0x154   :  { %749 = vmatprep.subr.mxu0 %v631_v15  ;;  %825 = vmatpush1.msra.mxu1 %v696_v10  ;;  %v661_v15 = vld [vmem:[#allocation8 + $0x448] sm:$0xff] }
 0x155   :  { %750 = vmatpush1.msra.mxu0 %v630_v16  ;;  %v693_v16 = vld [vmem:[#allocation8 + $0x548] sm:$0xff]  ;;  %826 = vmatprep.subr.mxu1 %v695_v12 }
 0x156   :  { %751 = vmatprep.subr.mxu0 %v629_v17  ;;  %v660_v17 = vld [vmem:[#allocation8 + $0x440] sm:$0xff]  ;;  %827 = vmatpush1.msra.mxu1 %v694_v14  ;;  %v1366_v14 = vld [vmem:[#allocation13] ss:$0 sm:$0xff] }
 0x157   :  { %752 = vmatpush1.msra.mxu0 %v628_v18  ;;  %v692_v18 = vld [vmem:[#allocation8 + $0x540] sm:$0xff]  ;;  %828 = vmatprep.subr.mxu1 %v693_v16 }
 0x158   :  { %753 = vmatprep.subr.mxu0 %v627_v19  ;;  %v659_v19 = vld [vmem:[#allocation8 + $0x438] sm:$0xff]  ;;  %829 = vmatpush1.msra.mxu1 %v692_v18 }
 0x159   :  { %754 = vmatpush1.msra.mxu0 %v626_v20  ;;  %v691_v20 = vld [vmem:[#allocation8 + $0x538] sm:$0xff] }
 0x15a   :  { %755 = vmatprep.subr.mxu0 %v625_v21  ;;  %v658_v21 = vld [vmem:[#allocation8 + $0x430] sm:$0xff]  ;;  %830 = vmatprep.subr.mxu1 %v691_v20 }
 0x15b   :  { %756 = vmatpush1.msra.mxu0 %v624_v22  ;;  %v690_v22 = vld [vmem:[#allocation8 + $0x530] sm:$0xff] }
 0x15c   :  { %757 = vmatprep.subr.mxu0 %v623_v23  ;;  %831 = vmatpush1.msra.mxu1 %v690_v22  ;;  %v657_v23 = vld [vmem:[#allocation8 + $0x428] sm:$0xff] }
 0x15d   :  { %758 = vmatpush1.msra.mxu0 %v622_v24  ;;  %v689_v24 = vld [vmem:[#allocation8 + $0x528] sm:$0xff] }
 0x15e   :  { %759 = vmatprep.subr.mxu0 %v621_v25  ;;  %832 = vmatprep.subr.mxu1 %v689_v24  ;;  %v656_v25 = vld [vmem:[#allocation8 + $0x420] sm:$0xff] }
 0x15f   :  { %760 = vmatpush1.msra.mxu0 %v620_v26  ;;  %v688_v26 = vld [vmem:[#allocation8 + $0x520] sm:$0xff] }
 0x160   :  { %761 = vmatprep.subr.mxu0 %v683_v27  ;;  %833 = vmatpush1.msra.mxu1 %v688_v26  ;;  %v655_v27 = vld [vmem:[#allocation8 + $0x418] sm:$0xff]  ;;  %v963_v26 = vld [vmem:[#allocation8 + $0x6e8] sm:$0xff] }
 0x161   :  { %762 = vmatpush2.msra.mxu0 %v682_v29  ;;  %v654_v29 = vld [vmem:[#allocation8 + $0x410] sm:$0xff]  ;;  %834 = vmatprep.subr.mxu1 %v687_v28 }
 0x162   :  { %763 = vmatprep.subr.mxu0 %v681_v31  ;;  %v653_v31 = vld [vmem:[#allocation8 + $0x408] sm:$0xff]  ;;  %835 = vmatpush1.msra.mxu1 %v686_v30  ;;  %v961_v30 = vld [vmem:[#allocation8 + $0x6d8] sm:$0xff] }
 0x163   :  { %764 = vmatpush2.msra.mxu0 %v680_v33  ;;  %v652_v33 = vld [vmem:[#allocation8 + $0x400] sm:$0xff]  ;;  %836 = vmatprep.subr.mxu1 %v685_v32  ;;  %v959_v32 = vld [vmem:[#allocation8 + $0x6c8] sm:$0xff] }
 0x164   :  { %765 = vmatprep.subr.mxu0 %v679_v35  ;;  %837 = vmatpush1.msra.mxu1 %v684_v34  ;;  %v965_v35 = vld [vmem:[#allocation8 + $0x6f8] sm:$0xff] }
 0x165   :  { %766 = vmatpush2.msra.mxu0 %v678_v38  ;;  %1043 = vmatprep.subr.mxu1 %v965_v35  ;;  %v405_v38 = vld [vmem:[#allocation10] sm:$0x3]  ;;  %v957_v34 = vld [vmem:[#allocation8 + $0x6b8] sm:$0xff]  ;;  %v956_v35 = vld [vmem:[#allocation8 + $0x6b0] sm:$0xff] }
 0x166   :  { %767 = vmatprep.subr.mxu0 %v677_v41  ;;  %v414_v40 = vrot.slane %v405_v38, %v1863_v37 }
 0x167   :  { %768 = vmatpush2.msra.mxu0 %v676_v43 }
 0x168   :  { %769 = vmatprep.subr.mxu0 %v675_v48 }
 0x169   :  { %770 = vmatpush2.msra.mxu0 %v674_v53 }
 0x16a   :  { %771 = vmatprep.subr.mxu0 %v673_v55 }
 0x16b   :  { %772 = vmatpush2.msra.mxu0 %v672_v57 }
 0x16c   :  { %773 = vmatprep.subr.mxu0 %v671_v59 }
 0x16d   :  { %774 = vmatpush2.msra.mxu0 %v670_v61 }
 0x16e   :  { %775 = vmatprep.subr.mxu0 %v669_v63  ;;  %v1867_v63 = vsub.s32 0, %v1816_v39  ;;  %v1246_v39 = vld [vmem:[#allocation14 + $0x58] sm:$0xff] }
 0x16f   :  { %776 = vmatpush2.msra.mxu0 %v668_v1 }
 0x170   :  { %777 = vmatprep.subr.mxu0 %v667_v3  ;;  %v410_v2 = vrot.slane %v405_v38, %v1867_v63  ;;  %v955_v38 = vld [vmem:[#allocation8 + $0x6a8] sm:$0xff] }
 0x171   :  { %778 = vmatpush2.msra.mxu0 %v666_v5 }
 0x172   :  { %779 = vmatprep.subr.mxu0 %v665_v7 }
 0x173   :  { %780 = vmatpush2.msra.mxu0 %v664_v9 }
 0x174   :  { %781 = vmatprep.subr.mxu0 %v663_v11  ;;  %v1365_v11 = vld [vmem:[#allocation11] ss:$0 sm:$0xff] }
 0x175   :  { %782 = vmatpush2.msra.mxu0 %v662_v13 }
 0x176   :  { %783 = vmatprep.subr.mxu0 %v661_v15 }
 0x177   :  { %784 = vmatpush2.msra.mxu0 %v660_v17 }
 0x178   :  { %785 = vmatprep.subr.mxu0 %v659_v19 }
 0x179   :  { %786 = vmatpush2.msra.mxu0 %v658_v21 }
 0x17a   :  { %787 = vmatprep.subr.mxu0 %v657_v23 }
 0x17b   :  { %788 = vmatpush2.msra.mxu0 %v656_v25  ;;  %v964_v25 = vld [vmem:[#allocation8 + $0x6f0] sm:$0xff] }
 0x17c   :  { %789 = vmatprep.subr.mxu0 %v655_v27  ;;  %v962_v27 = vld [vmem:[#allocation8 + $0x6e0] sm:$0xff] }
 0x17d   :  { %790 = vmatpush2.msra.mxu0 %v654_v29 }
 0x17e   :  { %791 = vmatprep.subr.mxu0 %v653_v31  ;;  %v960_v31 = vld [vmem:[#allocation8 + $0x6d0] sm:$0xff] }
 0x17f   :  { %792 = vmatpush2.msra.mxu0 %v652_v33  ;;  %v958_v33 = vld [vmem:[#allocation8 + $0x6c0] sm:$0xff] }
 0x1fe   :  { %v483_v41 = vpop.f32.mrf.mxu1  ;;  %v560_v42 = vpop.f32.mrf.mxu0 }
 0x1ff   :  { %v484_v3 = vadd.f32 %v483_v41, %v410_v2  ;;  %v953_v41 = vld [vmem:[#allocation8 + $0x698] sm:$0xff] }
 0x200   :  { %v485_v43 = vpop.f32.mrf.mxu1  ;;  %v562_v46 = vpop.f32.mrf.mxu0 }
 0x201   :  { %v486_v48 = vadd.f32 %v485_v43, %v414_v40  ;;  %v561_v4 = vadd.f32 %v560_v42, %v484_v3  ;;  %v952_v42 = vld [vmem:[#allocation8 + $0x690] sm:$0xff]  ;;  %v951_v43 = vld [vmem:[#allocation8 + $0x688] sm:$0xff]  ;;  %v934_v3 = vld [vmem:[#allocation8 + $0x600] sm:$0xff] }
 0x202   :  { %v489_v52 = vpop.f32.mrf.mxu1  ;;  %v566_v53 = vpop.f32.mrf.mxu0 }
 0x203   :  { %v563_v54 = vadd.f32 %v562_v46, %v486_v48  ;;  %v490_v5 = vadd.f32 %v489_v52, %v410_v2  ;;  %v950_v46 = vld [vmem:[#allocation8 + $0x680] sm:$0xff]  ;;  %v949_v48 = vld [vmem:[#allocation8 + $0x678] sm:$0xff]  ;;  %v948_v52 = vld [vmem:[#allocation8 + $0x670] sm:$0xff] }
 0x204   :  { %v491_v55 = vpop.f32.mrf.mxu1  ;;  %v568_v58 = vpop.f32.mrf.mxu0  ;;  %v935_v2 = vld [vmem:[#allocation8 + $0x608] sm:$0xff] }
 0x205   :  { %v1363_v56 = vmul.f32 -1.442695, %v563_v54  ;;  %v492_v57 = vadd.f32 %v491_v55, %v414_v40  ;;  %v567_v8 = vadd.f32 %v566_v53, %v490_v5  ;;  %v954_v40 = vld [vmem:[#allocation8 + $0x6a0] sm:$0xff]  ;;  %v947_v53 = vld [vmem:[#allocation8 + $0x668] sm:$0xff]  ;;  %v945_v55 = vld [vmem:[#allocation8 + $0x658] sm:$0xff] }
 0x206   :  { %v946_v54 = vld [vmem:[#allocation8 + $0x660] sm:$0xff]  ;;  %v1029_v5 = vld [vmem:[#allocation8 + $0x8f8] sm:$0xff] }
 0x207   :  { %1466 = vpow2.f32 %v1363_v56  ;;  %v569_v59 = vadd.f32 %v568_v58, %v492_v57  ;;  %v944_v56 = vld [vmem:[#allocation8 + $0x650] sm:$0xff]  ;;  %v943_v57 = vld [vmem:[#allocation8 + $0x648] sm:$0xff]  ;;  %v942_v58 = vld [vmem:[#allocation8 + $0x640] sm:$0xff]  ;;  %1120 = vmatprep.subr.mxu0 %v1029_v5 }
 0x208   :  { %v1002_v5 = vld [vmem:[#allocation8 + $0x820] sm:$0xff] }
 0x209   :  { %v1364_v60 = vmul.f32 -1.442695, %v569_v59  ;;  %v941_v59 = vld [vmem:[#allocation8 + $0x638] sm:$0xff] }
 0x20b   :  { %1468 = vpow2.f32 %v1364_v60  ;;  %v940_v60 = vld [vmem:[#allocation8 + $0x630] sm:$0xff] }
 0x214   :  { %v1467_v61 = vpop.eup %1466 }
 0x215   :  { %v577_v62 = vadd.f32 1.0, %v1467_v61  ;;  %v939_v61 = vld [vmem:[#allocation8 + $0x628] sm:$0xff] }
 0x217   :  { %1470 = vrcp.f32 %v577_v62  ;;  %v938_v62 = vld [vmem:[#allocation8 + $0x620] sm:$0xff] }
 0x218   :  { %v1469_v0 = vpop.eup %1468 }
 0x219   :  { %v578_v1 = vadd.f32 1.0, %v1469_v0  ;;  %v937_v0 = vld [vmem:[#allocation8 + $0x618] sm:$0xff] }
 0x21b   :  { %1472 = vrcp.f32 %v578_v1  ;;  %v936_v1 = vld [vmem:[#allocation8 + $0x610] sm:$0xff] }
 0x224   :  { %v1471_v6 = vpop.eup %1470 }
 0x225   :  { %v583_v7 = vmul.f32 %v1471_v6, %v561_v4  ;;  %v997_v4 = vld [vmem:[#allocation8 + $0x7f8] sm:$0xff]  ;;  %v996_v6 = vld [vmem:[#allocation8 + $0x7f0] sm:$0xff] }
 0x227   :  { %v585_v9 = vadd.f32 %v583_v7, %v1826_v49  ;;  %v1028_v7 = vld [vmem:[#allocation8 + $0x8f0] sm:$0xff] }
 0x228   :  { %v1473_v10 = vpop.eup %1472 }
 0x229   :  { %v584_v12 = vmul.f32 %v1473_v10, %v567_v8  ;;  %v587_v13 = vmul.f32 0.70710677, %v585_v9  ;;  %v995_v8 = vld [vmem:[#allocation8 + $0x7e8] sm:$0xff]  ;;  %v994_v10 = vld [vmem:[#allocation8 + $0x7e0] sm:$0xff] }
 0x22a   :  { %v1027_v9 = vld [vmem:[#allocation8 + $0x8e8] sm:$0xff] }
 0x22b   :  { %v586_v15 = vadd.f32 %v584_v12, %v1824_v47  ;;  %v596_v16 = vmul.f32 %v1365_v11, %v587_v13  ;;  %v993_v12 = vld [vmem:[#allocation8 + $0x7d8] sm:$0xff] }
 0x22c   :  { %v1025_v13 = vld [vmem:[#allocation8 + $0x8d8] sm:$0xff] }
 0x22d   :  { %v588_v17 = vmul.f32 0.70710677, %v586_v15  ;;  %v1872_v18 = vadd.f32 %v1366_v14, %v596_v16  ;;  %v1024_v15 = vld [vmem:[#allocation8 + $0x8d0] sm:$0xff]  ;;  %v991_v16 = vld [vmem:[#allocation8 + $0x7c8] sm:$0xff] }
 0x22f   :  { %v597_v19 = vmul.f32 %v1365_v11, %v588_v17  ;;  %793 = vmatprep.mubr.f32.mxu0 %v1872_v18  ;;  %v607_v21 = vrot.slane %v1872_v18, 7  ;;  %v613_v22 = vrot.slane %v1872_v18, 1  ;;  %v1026_v11 = vld [vmem:[#allocation8 + $0x8e0] sm:$0xff]  ;;  %v1023_v17 = vld [vmem:[#allocation8 + $0x8c8] sm:$0xff] }
 0x231   :  { %v1875_v20 = vadd.f32 %v1366_v14, %v597_v19  ;;  %v992_v14 = vld [vmem:[#allocation8 + $0x7d0] sm:$0xff]  ;;  %v990_v19 = vld [vmem:[#allocation8 + $0x7c0] sm:$0xff] }
 0x233   :  { %v608_v49 = vrot.slane %v1875_v20, 7  ;;  %v614_v23 = vrot.slane %v1875_v20, 1 }
 0x235   :  { %v610_v47 = vsel %vm289_vm1, %v608_v49, %v607_v21  ;;  %v615_v24 = vsel %vm300_vm2, %v613_v22, %v614_v23  ;;  %v609_v28 = vsel %vm289_vm1, %v607_v21, %v608_v49  ;;  %v616_v29 = vsel %vm300_vm2, %v614_v23, %v613_v22  ;;  %v1022_v21 = vld [vmem:[#allocation8 + $0x8c0] sm:$0xff]  ;;  %v989_v49 = vld [vmem:[#allocation8 + $0x7b8] sm:$0xff]  ;;  %v988_v23 = vld [vmem:[#allocation8 + $0x7b0] sm:$0xff] }
 0x236   :  { %1367 = vmatmul.mubr.msk.f32.vlgmr.msra.gmra.mxu0 %vm273_vm3, %v610_v47  ;;  %1369 = vmatmul.mubr.msk.f32.vlgmr.msra.gmra.mxu1 %vm283_vm4, %v615_v24  ;;  %v1021_v22 = vld [vmem:[#allocation8 + $0x8b8] sm:$0xff]  ;;  %v1020_v47 = vld [vmem:[#allocation8 + $0x8b0] sm:$0xff]  ;;  %v987_v24 = vld [vmem:[#allocation8 + $0x7a8] sm:$0xff] }
 0x237   :  { %799 = vmatprep.mubr.f32.mxu0 %v1875_v20  ;;  %876 = vmatprep.mubr.f32.mxu1 %v1718_v36 }
 0x238   :  { %1044 = vmatpush1.msra.mxu1 %v964_v25  ;;  %1121 = vmatpush1.msra.mxu0 %v1028_v7  ;;  %v1019_v25 = vld [vmem:[#allocation8 + $0x8a8] sm:$0xff]  ;;  %v1001_v7 = vld [vmem:[#allocation8 + $0x818] sm:$0xff] }
 0x239   :  { %1045 = vmatprep.subr.mxu1 %v963_v26  ;;  %1122 = vmatprep.subr.mxu0 %v1027_v9  ;;  %v986_v26 = vld [vmem:[#allocation8 + $0x7a0] sm:$0xff]  ;;  %v1000_v9 = vld [vmem:[#allocation8 + $0x810] sm:$0xff] }
 0x23a   :  { %1368 = vmatmul.mubr.msk.f32.gmra.mxu0 %vm274_vm5, %v609_v28  ;;  %1370 = vmatmul.mubr.msk.f32.gmra.mxu1 %vm284_vm6, %v616_v29  ;;  %v985_v28 = vld [vmem:[#allocation8 + $0x798] sm:$0xff] }
 0x23b   :  { %1046 = vmatpush1.msra.mxu1 %v962_v27  ;;  %1184 = vmatprep.mubr.f32.mxu0 %v1718_v36  ;;  %v1018_v27 = vld [vmem:[#allocation8 + $0x8a0] sm:$0xff]  ;;  %v1017_v29 = vld [vmem:[#allocation8 + $0x898] sm:$0xff] }
 0x23c   :  { %1047 = vmatprep.subr.mxu1 %v961_v30  ;;  %1123 = vmatpush1.msra.mxu0 %v1026_v11  ;;  %v984_v30 = vld [vmem:[#allocation8 + $0x790] sm:$0xff]  ;;  %v999_v11 = vld [vmem:[#allocation8 + $0x808] sm:$0xff] }
 0x23d   :  { %1048 = vmatpush1.msra.mxu1 %v960_v31  ;;  %1124 = vmatprep.subr.mxu0 %v1025_v13  ;;  %v1016_v31 = vld [vmem:[#allocation8 + $0x890] sm:$0xff]  ;;  %v998_v13 = vld [vmem:[#allocation8 + $0x800] sm:$0xff] }
 0x23e   :  { %1049 = vmatprep.subr.mxu1 %v959_v32  ;;  %1125 = vmatpush1.msra.mxu0 %v1024_v15  ;;  %v983_v32 = vld [vmem:[#allocation8 + $0x788] sm:$0xff] }
 0x23f   :  { %1050 = vmatpush1.msra.mxu1 %v958_v33  ;;  %1126 = vmatprep.subr.mxu0 %v1023_v17  ;;  %v1015_v33 = vld [vmem:[#allocation8 + $0x888] sm:$0xff] }
 0x240   :  { %1051 = vmatprep.subr.mxu1 %v957_v34  ;;  %1127 = vmatpush1.msra.mxu0 %v1022_v21  ;;  %v982_v34 = vld [vmem:[#allocation8 + $0x780] sm:$0xff] }
 0x241   :  { %1052 = vmatpush1.msra.mxu1 %v956_v35  ;;  %1128 = vmatprep.subr.mxu0 %v1021_v22  ;;  %v1014_v35 = vld [vmem:[#allocation8 + $0x880] sm:$0xff] }
 0x242   :  { %1053 = vmatprep.subr.mxu1 %v955_v38  ;;  %1129 = vmatpush1.msra.mxu0 %v1020_v47  ;;  %v981_v38 = vld [vmem:[#allocation8 + $0x778] sm:$0xff] }
 0x243   :  { %1054 = vmatpush1.msra.mxu1 %v954_v40  ;;  %1130 = vmatprep.subr.mxu0 %v1019_v25  ;;  %v1013_v40 = vld [vmem:[#allocation8 + $0x878] sm:$0xff] }
 0x244   :  { %1055 = vmatprep.subr.mxu1 %v953_v41  ;;  %1131 = vmatpush1.msra.mxu0 %v1018_v27  ;;  %v980_v41 = vld [vmem:[#allocation8 + $0x770] sm:$0xff] }
 0x245   :  { %1056 = vmatpush1.msra.mxu1 %v952_v42  ;;  %1132 = vmatprep.subr.mxu0 %v1017_v29  ;;  %v1012_v42 = vld [vmem:[#allocation8 + $0x870] sm:$0xff] }
 0x246   :  { %1057 = vmatprep.subr.mxu1 %v951_v43  ;;  %1133 = vmatpush1.msra.mxu0 %v1016_v31  ;;  %v979_v43 = vld [vmem:[#allocation8 + $0x768] sm:$0xff] }
 0x247   :  { %1058 = vmatpush1.msra.mxu1 %v950_v46  ;;  %1134 = vmatprep.subr.mxu0 %v1015_v33  ;;  %v1011_v46 = vld [vmem:[#allocation8 + $0x868] sm:$0xff] }
 0x248   :  { %1059 = vmatprep.subr.mxu1 %v949_v48  ;;  %1135 = vmatpush1.msra.mxu0 %v1014_v35  ;;  %v978_v48 = vld [vmem:[#allocation8 + $0x760] sm:$0xff] }
 0x249   :  { %1060 = vmatpush1.msra.mxu1 %v948_v52  ;;  %1136 = vmatprep.subr.mxu0 %v1013_v40  ;;  %v1010_v52 = vld [vmem:[#allocation8 + $0x860] sm:$0xff] }
 0x24a   :  { %1061 = vmatprep.subr.mxu1 %v947_v53  ;;  %1137 = vmatpush1.msra.mxu0 %v1012_v42  ;;  %v977_v53 = vld [vmem:[#allocation8 + $0x758] sm:$0xff] }
 0x24b   :  { %1062 = vmatpush1.msra.mxu1 %v946_v54  ;;  %v1009_v54 = vld [vmem:[#allocation8 + $0x858] sm:$0xff]  ;;  %1138 = vmatprep.subr.mxu0 %v1011_v46 }
 0x24c   :  { %1063 = vmatprep.subr.mxu1 %v945_v55  ;;  %v976_v55 = vld [vmem:[#allocation8 + $0x750] sm:$0xff]  ;;  %1139 = vmatpush1.msra.mxu0 %v1010_v52  ;;  %v1373_v52 = vld [vmem:[#allocation11 + $0x1] ss:$0 sm:$0xff] }
 0x24d   :  { %1064 = vmatpush1.msra.mxu1 %v944_v56  ;;  %v1008_v56 = vld [vmem:[#allocation8 + $0x850] sm:$0xff]  ;;  %1140 = vmatprep.subr.mxu0 %v1009_v54 }
 0x24e   :  { %1065 = vmatprep.subr.mxu1 %v943_v57  ;;  %v975_v57 = vld [vmem:[#allocation8 + $0x748] sm:$0xff]  ;;  %1141 = vmatpush1.msra.mxu0 %v1008_v56 }
 0x24f   :  { %1066 = vmatpush1.msra.mxu1 %v942_v58  ;;  %v1007_v58 = vld [vmem:[#allocation8 + $0x848] sm:$0xff] }
 0x250   :  { %1067 = vmatprep.subr.mxu1 %v941_v59  ;;  %v974_v59 = vld [vmem:[#allocation8 + $0x740] sm:$0xff]  ;;  %1142 = vmatprep.subr.mxu0 %v1007_v58 }
 0x251   :  { %1068 = vmatpush1.msra.mxu1 %v940_v60  ;;  %v1006_v60 = vld [vmem:[#allocation8 + $0x840] sm:$0xff] }
 0x252   :  { %1069 = vmatprep.subr.mxu1 %v939_v61  ;;  %v973_v61 = vld [vmem:[#allocation8 + $0x738] sm:$0xff]  ;;  %1143 = vmatpush1.msra.mxu0 %v1006_v60 }
 0x253   :  { %1070 = vmatpush1.msra.mxu1 %v938_v62  ;;  %v1005_v62 = vld [vmem:[#allocation8 + $0x838] sm:$0xff] }
 0x254   :  { %1071 = vmatprep.subr.mxu1 %v937_v0  ;;  %v972_v0 = vld [vmem:[#allocation8 + $0x730] sm:$0xff]  ;;  %1144 = vmatprep.subr.mxu0 %v1005_v62 }
 0x255   :  { %1072 = vmatpush1.msra.mxu1 %v936_v1  ;;  %v1004_v1 = vld [vmem:[#allocation8 + $0x830] sm:$0xff] }
 0x256   :  { %1073 = vmatprep.subr.mxu1 %v935_v2  ;;  %1145 = vmatpush1.msra.mxu0 %v1004_v1  ;;  %v971_v2 = vld [vmem:[#allocation8 + $0x728] sm:$0xff] }
 0x257   :  { %1074 = vmatpush1.msra.mxu1 %v934_v3  ;;  %v1003_v3 = vld [vmem:[#allocation8 + $0x828] sm:$0xff] }
 0x258   :  { %1075 = vmatprep.subr.mxu1 %v997_v4  ;;  %1146 = vmatprep.subr.mxu0 %v1003_v3  ;;  %v970_v4 = vld [vmem:[#allocation8 + $0x720] sm:$0xff] }
 0x259   :  { %1076 = vmatpush2.msra.mxu1 %v996_v6  ;;  %1147 = vmatpush1.msra.mxu0 %v1002_v5  ;;  %v969_v6 = vld [vmem:[#allocation8 + $0x718] sm:$0xff] }
 0x25a   :  { %1077 = vmatprep.subr.mxu1 %v995_v8  ;;  %v968_v8 = vld [vmem:[#allocation8 + $0x710] sm:$0xff]  ;;  %1148 = vmatprep.subr.mxu0 %v1001_v7  ;;  %v1242_v7 = vld [vmem:[#allocation14 + $0x38] sm:$0xff] }
 0x25b   :  { %1078 = vmatpush2.msra.mxu1 %v994_v10  ;;  %v967_v10 = vld [vmem:[#allocation8 + $0x708] sm:$0xff]  ;;  %1149 = vmatpush1.msra.mxu0 %v1000_v9  ;;  %v1248_v5 = vld [vmem:[#allocation14 + $0x68] sm:$0xff] }
 0x25c   :  { %1079 = vmatprep.subr.mxu1 %v993_v12  ;;  %v966_v12 = vld [vmem:[#allocation8 + $0x700] sm:$0xff]  ;;  %1150 = vmatprep.subr.mxu0 %v999_v11  ;;  %v1240_v9 = vld [vmem:[#allocation14 + $0x28] sm:$0xff] }
 0x25d   :  { %1080 = vmatpush2.msra.mxu1 %v992_v14  ;;  %1151 = vmatpush1.msra.mxu0 %v998_v13  ;;  %v717_v14 = vld [vmem:[#allocation10 + $0x2] sm:$0x3]  ;;  %v1238_v11 = vld [vmem:[#allocation14 + $0x18] sm:$0xff]  ;;  %v1236_v13 = vld [vmem:[#allocation14 + $0x8] sm:$0xff] }
 0x25e   :  { %1081 = vmatprep.subr.mxu1 %v991_v16  ;;  %v726_v15 = vrot.slane %v717_v14, %v1863_v37  ;;  %1413 = vmatprep.subr.mxu0 %v1250_v44 }
 0x25f   :  { %1082 = vmatpush2.msra.mxu1 %v990_v19 }
 0x260   :  { %1083 = vmatprep.subr.mxu1 %v989_v49 }
 0x261   :  { %1084 = vmatpush2.msra.mxu1 %v988_v23 }
 0x262   :  { %1085 = vmatprep.subr.mxu1 %v987_v24 }
 0x263   :  { %1086 = vmatpush2.msra.mxu1 %v986_v26 }
 0x264   :  { %1087 = vmatprep.subr.mxu1 %v985_v28 }
 0x265   :  { %1088 = vmatpush2.msra.mxu1 %v984_v30 }
 0x266   :  { %1089 = vmatprep.subr.mxu1 %v983_v32 }
 0x267   :  { %1090 = vmatpush2.msra.mxu1 %v982_v34  ;;  %v722_v34 = vrot.slane %v717_v14, %v1867_v63  ;;  %v1235_v14 = vld [vmem:[#allocation14] sm:$0xff] }
 0x268   :  { %1091 = vmatprep.subr.mxu1 %v981_v38 }
 0x269   :  { %1092 = vmatpush2.msra.mxu1 %v980_v41 }
 0x26a   :  { %1093 = vmatprep.subr.mxu1 %v979_v43 }
 0x26b   :  { %1094 = vmatpush2.msra.mxu1 %v978_v48 }
 0x26c   :  { %1095 = vmatprep.subr.mxu1 %v977_v53 }
 0x26d   :  { %1096 = vmatpush2.msra.mxu1 %v976_v55  ;;  %v1374_v55 = vld [vmem:[#allocation13 + $0x1] ss:$0 sm:$0xff] }
 0x26e   :  { %1097 = vmatprep.subr.mxu1 %v975_v57 }
 0x26f   :  { %1098 = vmatpush2.msra.mxu1 %v974_v59 }
 0x270   :  { %1099 = vmatprep.subr.mxu1 %v973_v61 }
 0x271   :  { %1100 = vmatpush2.msra.mxu1 %v972_v0 }
 0x272   :  { %1101 = vmatprep.subr.mxu1 %v971_v2 }
 0x273   :  { %1102 = vmatpush2.msra.mxu1 %v970_v4 }
 0x274   :  { %1103 = vmatprep.subr.mxu1 %v969_v6  ;;  %v1245_v6 = vld [vmem:[#allocation14 + $0x50] sm:$0xff] }
 0x275   :  { %1104 = vmatpush2.msra.mxu1 %v968_v8  ;;  %v1241_v8 = vld [vmem:[#allocation14 + $0x30] sm:$0xff] }
 0x276   :  { %1105 = vmatprep.subr.mxu1 %v967_v10  ;;  %v1239_v10 = vld [vmem:[#allocation14 + $0x20] sm:$0xff] }
 0x277   :  { %1106 = vmatpush2.msra.mxu1 %v966_v12  ;;  %v1237_v12 = vld [vmem:[#allocation14 + $0x10] sm:$0xff] }
 0x2f6   :  { %v795_v16 = vpop.f32.mrf.mxu0  ;;  %v872_v17 = vpop.f32.mrf.mxu1 }
 0x2f7   :  { %v796_v35 = vadd.f32 %v795_v16, %v722_v34 }
 0x2f8   :  { %v797_v19 = vpop.f32.mrf.mxu0  ;;  %v874_v21 = vpop.f32.mrf.mxu1 }
 0x2f9   :  { %v798_v49 = vadd.f32 %v797_v19, %v726_v15  ;;  %v873_v38 = vadd.f32 %v872_v17, %v796_v35 }
 0x2fa   :  { %v801_v22 = vpop.f32.mrf.mxu0  ;;  %v878_v23 = vpop.f32.mrf.mxu1 }
 0x2fb   :  { %v875_v47 = vadd.f32 %v874_v21, %v798_v49  ;;  %v802_v40 = vadd.f32 %v801_v22, %v722_v34 }
 0x2fc   :  { %v803_v24 = vpop.f32.mrf.mxu0  ;;  %v880_v27 = vpop.f32.mrf.mxu1 }
 0x2fd   :  { %v1371_v25 = vmul.f32 -1.442695, %v875_v47  ;;  %v804_v26 = vadd.f32 %v803_v24, %v726_v15  ;;  %v879_v43 = vadd.f32 %v878_v23, %v802_v40  ;;  %v1031_v15 = vld [vmem:[#allocation10 + $0x4] sm:$0x3] }
 0x2fe   :  { %v1040_v16 = vrot.slane %v1031_v15, %v1863_v37  ;;  %v1036_v34 = vrot.slane %v1031_v15, %v1867_v63 }
 0x2ff   :  { %1474 = vpow2.f32 %v1371_v25  ;;  %v881_v28 = vadd.f32 %v880_v27, %v804_v26 }
 0x301   :  { %v1372_v29 = vmul.f32 -1.442695, %v881_v28 }
 0x303   :  { %1476 = vpow2.f32 %v1372_v29 }
 0x30c   :  { %v1475_v30 = vpop.eup %1474 }
 0x30d   :  { %v889_v31 = vadd.f32 1.0, %v1475_v30 }
 0x30f   :  { %1478 = vrcp.f32 %v889_v31 }
 0x310   :  { %v1477_v32 = vpop.eup %1476 }
 0x311   :  { %v890_v33 = vadd.f32 1.0, %v1477_v32 }
 0x313   :  { %1480 = vrcp.f32 %v890_v33 }
 0x31c   :  { %v1479_v41 = vpop.eup %1478 }
 0x31d   :  { %v895_v42 = vmul.f32 %v1479_v41, %v873_v38 }
 0x31f   :  { %v897_v46 = vadd.f32 %v895_v42, %v1872_v18 }
 0x320   :  { %v1481_v48 = vpop.eup %1480 }
 0x321   :  { %v896_v53 = vmul.f32 %v1481_v48, %v879_v43  ;;  %v899_v54 = vmul.f32 0.70710677, %v897_v46 }
 0x323   :  { %v898_v56 = vadd.f32 %v896_v53, %v1875_v20  ;;  %v909_v57 = vmul.f32 %v1373_v52, %v899_v54 }
 0x325   :  { %v900_v58 = vmul.f32 0.70710677, %v898_v56  ;;  %v1904_v59 = vadd.f32 %v1374_v55, %v909_v57 }
 0x327   :  { %v910_v60 = vmul.f32 %v1373_v52, %v900_v58  ;;  %1107 = vmatprep.mubr.f32.mxu1 %v1904_v59  ;;  %v921_v62 = vrot.slane %v1904_v59, 7  ;;  %v927_v0 = vrot.slane %v1904_v59, 1  ;;  %v1381_v52 = vld [vmem:[#allocation11 + $0x2] ss:$0 sm:$0xff] }
 0x329   :  { %v1907_v61 = vadd.f32 %v1374_v55, %v910_v60  ;;  %v1382_v55 = vld [vmem:[#allocation13 + $0x2] ss:$0 sm:$0xff] }
 0x32b   :  { %v922_v18 = vrot.slane %v1907_v61, 7  ;;  %v928_v1 = vrot.slane %v1907_v61, 1 }
 0x32d   :  { %v924_v20 = vsel %vm289_vm1, %v922_v18, %v921_v62  ;;  %v929_v2 = vsel %vm300_vm2, %v927_v0, %v928_v1  ;;  %v923_v3 = vsel %vm289_vm1, %v921_v62, %v922_v18  ;;  %v930_v4 = vsel %vm300_vm2, %v928_v1, %v927_v0  ;;  %v1383_v18 = vld [vmem:[#allocation16] ss:$0 sm:$0xff] }
 0x32e   :  { %1375 = vmatmul.mubr.msk.f32.vlgmr.msra.gmra.mxu1 %vm273_vm3, %v924_v20  ;;  %1377 = vmatmul.mubr.msk.f32.vlgmr.msra.gmra.mxu0 %vm283_vm4, %v929_v2 }
 0x32f   :  { %1113 = vmatprep.mubr.f32.mxu1 %v1907_v61  ;;  %1190 = vmatprep.mubr.f32.mxu0 %v1718_v36  ;;  %v1247_v36 = vld [vmem:[#allocation14 + $0x60] sm:$0xff] }
 0x330   :  { %1414 = vmatpush3.msra.mxu0 %v1250_v44 }
 0x331   :  { %1415 = vmatprep.subr.mxu0 %v1249_v45 }
 0x332   :  { %1376 = vmatmul.mubr.msk.f32.gmra.mxu1 %vm274_vm5, %v923_v3  ;;  %1378 = vmatmul.mubr.msk.f32.gmra.mxu0 %vm284_vm6, %v930_v4 }
 0x333   :  { %1416 = vmatpush3.msra.mxu0 %v1249_v45 }
 0x334   :  { %1417 = vmatprep.subr.mxu0 %v1248_v5 }
 0x335   :  { %1418 = vmatpush3.msra.mxu0 %v1248_v5 }
 0x336   :  { %1419 = vmatprep.subr.mxu0 %v1247_v36 }
 0x337   :  { %1420 = vmatpush3.msra.mxu0 %v1247_v36 }
 0x338   :  { %1421 = vmatprep.subr.mxu0 %v1246_v39 }
 0x339   :  { %1422 = vmatpush3.msra.mxu0 %v1246_v39 }
 0x33a   :  { %1423 = vmatprep.subr.mxu0 %v1245_v6 }
 0x33b   :  { %1424 = vmatpush3.msra.mxu0 %v1245_v6 }
 0x33c   :  { %1425 = vmatprep.subr.mxu0 %v1244_v50 }
 0x33d   :  { %1426 = vmatpush3.msra.mxu0 %v1244_v50 }
 0x33e   :  { %1427 = vmatprep.subr.mxu0 %v1243_v51 }
 0x33f   :  { %1428 = vmatpush3.msra.mxu0 %v1243_v51 }
 0x340   :  { %1429 = vmatprep.subr.mxu0 %v1242_v7 }
 0x341   :  { %1430 = vmatpush3.msra.mxu0 %v1242_v7 }
 0x342   :  { %1431 = vmatprep.subr.mxu0 %v1241_v8 }
 0x343   :  { %1432 = vmatpush3.msra.mxu0 %v1241_v8 }
 0x344   :  { %1433 = vmatprep.subr.mxu0 %v1240_v9 }
 0x345   :  { %1434 = vmatpush3.msra.mxu0 %v1240_v9 }
 0x346   :  { %1435 = vmatprep.subr.mxu0 %v1239_v10 }
 0x347   :  { %1436 = vmatpush3.msra.mxu0 %v1239_v10 }
 0x348   :  { %1437 = vmatprep.subr.mxu0 %v1238_v11 }
 0x349   :  { %1438 = vmatpush3.msra.mxu0 %v1238_v11 }
 0x34a   :  { %1439 = vmatprep.subr.mxu0 %v1237_v12 }
 0x34b   :  { %1440 = vmatpush3.msra.mxu0 %v1237_v12 }
 0x34c   :  { %1441 = vmatprep.subr.mxu0 %v1236_v13 }
 0x34d   :  { %1442 = vmatpush3.msra.mxu0 %v1236_v13 }
 0x34e   :  { %1443 = vmatprep.subr.mxu0 %v1235_v14 }
 0x34f   :  { %1444 = vmatpush3.msra.mxu0 %v1235_v14 }
 0x3ee   :  { %v1109_v17 = vpop.f32.mrf.mxu1  ;;  %v1186_v19 = vpop.f32.mrf.mxu0 }
 0x3ef   :  { %v1110_v35 = vadd.f32 %v1109_v17, %v1036_v34 }
 0x3f0   :  { %v1111_v21 = vpop.f32.mrf.mxu1  ;;  %v1188_v49 = vpop.f32.mrf.mxu0 }
 0x3f1   :  { %v1112_v22 = vadd.f32 %v1111_v21, %v1040_v16  ;;  %v1187_v38 = vadd.f32 %v1186_v19, %v1110_v35 }
 0x3f2   :  { %v1115_v23 = vpop.f32.mrf.mxu1  ;;  %v1192_v47 = vpop.f32.mrf.mxu0 }
 0x3f3   :  { %v1189_v24 = vadd.f32 %v1188_v49, %v1112_v22  ;;  %v1116_v40 = vadd.f32 %v1115_v23, %v1036_v34 }
 0x3f4   :  { %v1117_v25 = vpop.f32.mrf.mxu1  ;;  %v1194_v28 = vpop.f32.mrf.mxu0 }
 0x3f5   :  { %v1379_v26 = vmul.f32 -1.442695, %v1189_v24  ;;  %v1118_v27 = vadd.f32 %v1117_v25, %v1040_v16  ;;  %v1193_v43 = vadd.f32 %v1192_v47, %v1116_v40 }
 0x3f7   :  { %1482 = vpow2.f32 %v1379_v26  ;;  %v1195_v29 = vadd.f32 %v1194_v28, %v1118_v27 }
 0x3f9   :  { %v1380_v30 = vmul.f32 -1.442695, %v1195_v29 }
 0x3fb   :  { %1484 = vpow2.f32 %v1380_v30 }
 0x404   :  { %v1483_v31 = vpop.eup %1482 }
 0x405   :  { %v1203_v32 = vadd.f32 1.0, %v1483_v31 }
 0x407   :  { %1486 = vrcp.f32 %v1203_v32 }
 0x408   :  { %v1485_v37 = vpop.eup %1484 }
 0x409   :  { %v1204_v33 = vadd.f32 1.0, %v1485_v37 }
 0x40b   :  { %1488 = vrcp.f32 %v1204_v33 }
 0x414   :  { %v1487_v41 = vpop.eup %1486 }
 0x415   :  { %v1209_v42 = vmul.f32 %v1487_v41, %v1187_v38 }
 0x417   :  { %v1211_v46 = vadd.f32 %v1209_v42, %v1904_v59 }
 0x418   :  { %v1489_v48 = vpop.eup %1488 }
 0x419   :  { %v1210_v53 = vmul.f32 %v1489_v48, %v1193_v43  ;;  %v1213_v54 = vmul.f32 0.70710677, %v1211_v46 }
 0x41b   :  { %v1212_v56 = vadd.f32 %v1210_v53, %v1907_v61  ;;  %v1223_v57 = vmul.f32 %v1381_v52, %v1213_v54 }
 0x41d   :  { %v1214_v58 = vmul.f32 0.70710677, %v1212_v56  ;;  %v1233_v60 = vadd.f32 %v1382_v55, %v1223_v57 }
 0x41f   :  { %v1224_v63 = vmul.f32 %v1381_v52, %v1214_v58  ;;  %1445 = vmatprep.mubr.f32.mxu0 %v1233_v60 }
 0x421   :  { %v1234_v62 = vadd.f32 %v1382_v55, %v1224_v63 }
 0x423   :  { %1446 = vmatmul.mubr.f32.vlgmr.msra.gmra.mxu0 %v1234_v62 }
 0x4e3   :  { %v1447_v0 = vpop.f32.mrf.mxu0 }
 0x4e4   :  { %v1330_v1 = vadd.f32 %v1447_v0, %v1383_v18 }
 0x4e5   :  { %v1324_v59 = vpop.f32.mrf.mxu0 }
 0x4e6   :  { %1334 = vst [vmem:[#allocation17 + $0x8] sm:$0xff] %v1330_v1  ;;  %v1325_v20 = vadd.f32 %v1383_v18, %v1324_v59 }
 0x4e8   :  { %1333 = vst [vmem:[#allocation17] sm:$0xff] %v1325_v20 }
 0x4e9   :  { %1681 = shalt.err (!%p1678_p7)
}
 0x4ea   :  { %1346 = dma.vmem_to_hbm [thread:$0]  %s1341_s8, 256, %s1950_s9, [#allocation4], %s1704_s14, %s1704_s14, %s1705_s15  }
 0x4eb   :  { %1700 = dma.done.wait [#allocation4], 256  }
 0x4ec   :  { %1701 = vsyncadd [#allocation4], 4294967040 }
 0x4ed   :  { %1350 = vsyncpa [#allocation3], 1 }
 0x4ee   :  { %1351 = vsyncpa [#allocation6], 1 }
 0x4ef   :  { %1352 = vsyncpa [#allocation9], 1 }
 0x4f0   :  { %1353 = vsyncpa [#allocation12], 1 }
 0x4f1   :  { %1354 = vsyncpa [#allocation15], 1 }
 0x4f2   :  { %1355 = vsyncpa [#allocation4], 1 }

// kernel: tpu_custom_call.1
= control target key start
LH: loop header
LB: loop body
LE: loop exit
PB: predicated region body
PF: predicated region fallthrough
CT: control target
= control target key end

     0   :  { %14 = vsyncpa [#allocation3], 0  ;;  %s1941_s0 = inlined_call_operand.hbm [shape: f32[16,16], index: 0, kind: input, shape index: {}]   ;;  %s1942_s1 = inlined_call_operand.hbm [shape: f32[16,128], index: 1, kind: input, shape index: {}]   ;;  %s1943_s2 = inlined_call_operand.hbm [shape: f32[1,128], index: 2, kind: input, shape index: {}]   ;;  %s1944_s3 = inlined_call_operand.hbm [shape: f32[3,384,256], index: 3, kind: input, shape index: {}]   ;;  %s1945_s4 = inlined_call_operand.hbm [shape: f32[3,1,256], index: 4, kind: input, shape index: {}]   ;;  %s1946_s5 = inlined_call_operand.hbm [shape: f32[3,1,128], index: 5, kind: input, shape index: {}]   ;;  %s1947_s6 = inlined_call_operand.hbm [shape: f32[3,1,128], index: 6, kind: input, shape index: {}]   ;;  %s1948_s7 = inlined_call_operand.hbm [shape: f32[128,128], index: 7, kind: input, shape index: {}]   ;;  %s1949_s8 = inlined_call_operand.hbm [shape: f32[1,128], index: 8, kind: input, shape index: {}]   ;;  %s1950_s9 = inlined_call_operand.hbm [shape: f32[16,128], index: 9, kind: output, shape index: {}]  }
   0x1   :  { %15 = vsyncpa [#allocation6], 0 }
   0x2   :  { %16 = vsyncpa [#allocation9], 0 }
   0x3   :  { %17 = vsyncpa [#allocation12], 0 }
   0x4   :  { %18 = vsyncpa [#allocation15], 0 }
   0x5   :  { %19 = vsyncpa [#allocation4], 0  ;;  %s1702_s30 = smov [#allocation5]   ;;  %s1703_s11 = smov [#allocation8]  }
   0x6   :  { %s37_s10 = sshll.u32 %s1702_s30, 4  ;;  %s59_s12 = sshll.u32 %s1703_s11, 4  ;;  %s38_s10 = int_to_ptr.vmem [resolvable:$true] %s37_s10  ;;  %s60_s12 = int_to_ptr.vmem [resolvable:$true] %s59_s12 }
   0x7   :  { %s1498_s13 = scalar_lea.vmem %s38_s10, 256  ;;  %p1503_p1 = scmp.lt.s32.totalorder %s38_s10, %s38_s10 }
   0x8   :  { %p1499_p0 = scmp.ne.s32.totalorder %s38_s10, %s1498_s13  ;;  %p1504_p2 = scmp.lt.s32.totalorder %s1498_s13, %s1498_s13 }
   0xa   :  { %p1505_p3 = por %p1504_p2, %p1503_p1 }
   0xc   :  { %p1506_p4 = pnand %p1505_p3, %p1499_p0 }
   0xe   :  { %1509 = shalt.err (!%p1506_p4)
}
   0xf   :  { %s1704_s14 = smov 128   ;;  %s1705_s15 = smov 8  }
  0x10   :  { %43 = dma.hbm_to_vmem [thread:$0]  %s1942_s1, 256, %s38_s10, [#allocation6], %s1704_s14, %s1704_s14, %s1705_s15  }
  0x11   :  { %s1518_s18 = scalar_lea.vmem %s60_s12, 36864  ;;  %p1523_p6 = scmp.lt.s32.totalorder %s60_s12, %s60_s12 }
  0x12   :  { %p1519_p5 = scmp.ne.s32.totalorder %s60_s12, %s1518_s18  ;;  %p1524_p7 = scmp.lt.s32.totalorder %s1518_s18, %s1518_s18 }
  0x14   :  { %p1525_p8 = por %p1524_p7, %p1523_p6 }
  0x16   :  { %p1526_p9 = pnand %p1525_p8, %p1519_p5 }
  0x18   :  { %1529 = shalt.err (!%p1526_p9)
}
  0x19   :  { %s1706_s19 = smov 256   ;;  %s1707_s20 = smov 16  }
  0x1a   :  { %65 = dma.hbm_to_vmem [thread:$0]  %s1944_s3, 36864, %s60_s12, [#allocation9], %s1706_s19, %s1706_s19, %s1707_s20  }
  0x1b   :  { %s1708_s23 = smov [#allocation11]   ;;  %s1709_s25 = smov [#allocation14]  }
  0x1c   :  { %s83_s24 = sshll.u32 %s1708_s23, 4  ;;  %s107_s26 = sshll.u32 %s1709_s25, 4  ;;  %s84_s24 = int_to_ptr.vmem [resolvable:$true] %s83_s24  ;;  %s108_s26 = int_to_ptr.vmem [resolvable:$true] %s107_s26 }
  0x1d   :  { %s1538_s1 = scalar_lea.vmem %s84_s24, 48  ;;  %s1542_s27 = scalar_lea.vmem %s84_s24, 64 }
  0x1e   :  { %p1539_p10 = scmp.ne.s32.totalorder %s84_s24, %s1538_s1  ;;  %p1543_p11 = scmp.lt.s32.totalorder %s84_s24, %s84_s24 }
  0x1f   :  { %p1544_p12 = scmp.lt.s32.totalorder %s1542_s27, %s1538_s1 }
  0x21   :  { %p1545_p13 = por %p1544_p12, %p1543_p11 }
  0x23   :  { %p1546_p0 = pnand %p1545_p13, %p1539_p10 }
  0x25   :  { %1549 = shalt.err (!%p1546_p0)
}
  0x26   :  { %s1710_s28 = smov 1   ;;  %s1558_s3 = scalar_lea.vmem %s108_s26, 2048 }
  0x27   :  { %89 = dma.hbm_to_vmem [thread:$0]  %s1946_s5, 48, %s84_s24, [#allocation12], %s1707_s20, %s1707_s20, %s1710_s28  }
  0x28   :  { %p1559_p1 = scmp.ne.s32.totalorder %s108_s26, %s1558_s3  ;;  %p1563_p2 = scmp.lt.s32.totalorder %s108_s26, %s108_s26 }
  0x29   :  { %p1564_p3 = scmp.lt.s32.totalorder %s1558_s3, %s1558_s3 }
  0x2b   :  { %p1565_p4 = por %p1564_p3, %p1563_p2 }
  0x2d   :  { %p1566_p5 = pnand %p1565_p4, %p1559_p1 }
  0x2f   :  { %1569 = shalt.err (!%p1566_p5)
}
  0x30   :  { %113 = dma.hbm_to_vmem [thread:$0]  %s1948_s7, 2048, %s108_s26, [#allocation15], %s1704_s14, %s1704_s14, %s1705_s15  }
  0x31   :  { %s1711_s12 = smov [#allocation2]   ;;  %s1712_s16 = smov [#allocation7]  }
  0x32   :  { %s25_s13 = sshll.u32 %s1711_s12, 4  ;;  %s50_s5 = sshll.u32 %s1712_s16, 4  ;;  %s26_s13 = int_to_ptr.vmem [resolvable:$true] %s25_s13  ;;  %s51_s5 = int_to_ptr.vmem [resolvable:$true] %s50_s5 }
  0x33   :  { %s1578_s17 = scalar_lea.vmem %s26_s13, 256  ;;  %p1583_p7 = scmp.lt.s32.totalorder %s26_s13, %s26_s13 }
  0x34   :  { %p1579_p6 = scmp.ne.s32.totalorder %s26_s13, %s1578_s17  ;;  %p1584_p8 = scmp.lt.s32.totalorder %s1578_s17, %s1578_s17 }
  0x36   :  { %p1585_p9 = por %p1584_p8, %p1583_p7 }
  0x38   :  { %p1586_p10 = pnand %p1585_p9, %p1579_p6 }
  0x3a   :  { %1589 = shalt.err (!%p1586_p10)
}
  0x3b   :  { %31 = dma.hbm_to_vmem [thread:$0]  %s1941_s0, 256, %s26_s13, [#allocation3], %s1704_s14, %s1704_s14, %s1705_s15  }
  0x3c   :  { %s1598_s7 = scalar_lea.vmem %s51_s5, 16  ;;  %s1602_s21 = scalar_lea.vmem %s51_s5, 32 }
  0x3d   :  { %p1599_p11 = scmp.ne.s32.totalorder %s51_s5, %s1598_s7  ;;  %p1603_p12 = scmp.lt.s32.totalorder %s51_s5, %s51_s5 }
  0x3e   :  { %p1604_p13 = scmp.lt.s32.totalorder %s1602_s21, %s1598_s7 }
  0x40   :  { %p1605_p0 = por %p1604_p13, %p1603_p12 }
  0x42   :  { %p1606_p1 = pnand %p1605_p0, %p1599_p11 }
  0x44   :  { %1609 = shalt.err (!%p1606_p1)
}
  0x45   :  { %53 = dma.hbm_to_vmem [thread:$0]  %s1943_s2, 16, %s51_s5, [#allocation6]  }
  0x46   :  { %s1713_s24 = smov [#allocation10]  }
  0x47   :  { %s71_s25 = sshll.u32 %s1713_s24, 4  ;;  %s72_s25 = int_to_ptr.vmem [resolvable:$true] %s71_s25 }
  0x48   :  { %s1618_s26 = scalar_lea.vmem %s72_s25, 96  ;;  %p1623_p3 = scmp.lt.s32.totalorder %s72_s25, %s72_s25 }
  0x49   :  { %p1619_p2 = scmp.ne.s32.totalorder %s72_s25, %s1618_s26  ;;  %p1624_p4 = scmp.lt.s32.totalorder %s1618_s26, %s1618_s26 }
  0x4b   :  { %p1625_p5 = por %p1624_p4, %p1623_p3 }
  0x4d   :  { %p1626_p6 = pnand %p1625_p5, %p1619_p2 }
  0x4f   :  { %1629 = shalt.err (!%p1626_p6)
}
  0x50   :  { %s1714_s0 = smov 32   ;;  %s1715_s1 = smov 2  }
  0x51   :  { %77 = dma.hbm_to_vmem [thread:$0]  %s1945_s4, 96, %s72_s25, [#allocation9], %s1714_s0, %s1714_s0, %s1715_s1  }
  0x52   :  { %s1716_s30 = smov [#allocation13]   ;;  %s1717_s10 = smov [#allocation16]  }
  0x53   :  { %s95_s3 = sshll.u32 %s1716_s30, 4  ;;  %s120_s2 = sshll.u32 %s1717_s10, 4  ;;  %s96_s3 = int_to_ptr.vmem [resolvable:$true] %s95_s3  ;;  %s121_s2 = int_to_ptr.vmem [resolvable:$true] %s120_s2 }
  0x54   :  { %s1638_s11 = scalar_lea.vmem %s96_s3, 48  ;;  %s1642_s12 = scalar_lea.vmem %s96_s3, 64 }
  0x55   :  { %p1639_p7 = scmp.ne.s32.totalorder %s96_s3, %s1638_s11  ;;  %p1643_p8 = scmp.lt.s32.totalorder %s96_s3, %s96_s3 }
  0x56   :  { %p1644_p9 = scmp.lt.s32.totalorder %s1642_s12, %s1638_s11 }
  0x58   :  { %p1645_p10 = por %p1644_p9, %p1643_p8 }
  0x5a   :  { %p1646_p11 = pnand %p1645_p10, %p1639_p7 }
  0x5c   :  { %1649 = shalt.err (!%p1646_p11)
}
  0x5d   :  { %101 = dma.hbm_to_vmem [thread:$0]  %s1947_s6, 48, %s96_s3, [#allocation12], %s1707_s20, %s1707_s20, %s1710_s28  }
  0x5e   :  { %s1658_s4 = scalar_lea.vmem %s121_s2, 16  ;;  %s1662_s5 = scalar_lea.vmem %s121_s2, 32 }
  0x5f   :  { %p1659_p12 = scmp.ne.s32.totalorder %s121_s2, %s1658_s4  ;;  %p1663_p13 = scmp.lt.s32.totalorder %s121_s2, %s121_s2 }
  0x60   :  { %p1664_p0 = scmp.lt.s32.totalorder %s1662_s5, %s1658_s4 }
  0x62   :  { %p1665_p1 = por %p1664_p0, %p1663_p13 }
  0x64   :  { %p1666_p2 = pnand %p1665_p1, %p1659_p12 }
  0x66   :  { %1669 = shalt.err (!%p1666_p2)
}
  0x67   :  { %123 = dma.hbm_to_vmem [thread:$0]  %s1949_s8, 16, %s121_s2, [#allocation15]  }
  0x68   :  { %1690 = dma.done.wait [#allocation3], 256  }
  0x69   :  { %1691 = vsyncadd [#allocation3], 4294967040 }
  0x6a   :  { %1692 = dma.done.wait [#allocation6], 272  }
  0x6b   :  { %1693 = vsyncadd [#allocation6], 4294967024 }
  0x6c   :  { %1694 = dma.done.wait [#allocation9], 36960  }
  0x6d   :  { %1695 = vsyncadd [#allocation9], 4294930336 }
  0x6e   :  { %1696 = dma.done.wait [#allocation12], 96  }
  0x6f   :  { %1697 = vsyncadd [#allocation12], 4294967200 }
  0x70   :  { %1698 = dma.done.wait [#allocation15], 2064  }
  0x71   :  { %1699 = vsyncadd [#allocation15], 4294965232  ;;  %vm162_vm0 = vcmask 130048   ;;  %v154_v0 = vld [vmem:[#allocation5 + $0x8] sm:$0xff]  ;;  %v153_v1 = vld [vmem:[#allocation5] sm:$0xff]  ;;  %s1719_s6 = smov [#allocation17]  }
  0x72   :  { %v151_v2 = vld [vmem:[#allocation2] sm:$0xff]  ;;  %1406 = vmatprep.subr.mxu0 %v154_v0  ;;  %v339_v4 = vld [vmem:[#allocation8 + $0xf0] sm:$0xff]  ;;  %v152_v5 = vld [vmem:[#allocation2 + $0x8] sm:$0xff]  ;;  %s1340_s8 = sshll.u32 %s1719_s6, 4  ;;  %s1341_s8 = int_to_ptr.vmem [resolvable:$true] %s1340_s8 }
  0x73   :  { %1410 = vmatprep.mubr.msk.f32.mxu0 %vm162_vm0, %v151_v2  ;;  %v340_v3 = vld [vmem:[#allocation8 + $0xf8] sm:$0xff]  ;;  %1407 = vmatpush3.msra.mxu0 %v154_v0  ;;  %v338_v6 = vld [vmem:[#allocation8 + $0xe8] sm:$0xff]  ;;  %v337_v7 = vld [vmem:[#allocation8 + $0xe0] sm:$0xff]  ;;  %s1670_s20 = scalar_lea.vmem %s1341_s8, 256  ;;  %p1675_p4 = scmp.lt.s32.totalorder %s1341_s8, %s1341_s8 }
  0x74   :  { %417 = vmatprep.subr.mxu1 %v340_v3  ;;  %1408 = vmatprep.subr.mxu0 %v153_v1  ;;  %v336_v8 = vld [vmem:[#allocation8 + $0xd8] sm:$0xff]  ;;  %v335_v9 = vld [vmem:[#allocation8 + $0xd0] sm:$0xff]  ;;  %v334_v10 = vld [vmem:[#allocation8 + $0xc8] sm:$0xff]  ;;  %p1671_p3 = scmp.ne.s32.totalorder %s1341_s8, %s1670_s20  ;;  %p1676_p5 = scmp.lt.s32.totalorder %s1670_s20, %s1670_s20 }
  0x75   :  { %418 = vmatpush1.msra.mxu1 %v339_v4  ;;  %1409 = vmatpush3.msra.mxu0 %v153_v1  ;;  %v333_v11 = vld [vmem:[#allocation8 + $0xc0] sm:$0xff]  ;;  %v332_v12 = vld [vmem:[#allocation8 + $0xb8] sm:$0xff]  ;;  %v331_v13 = vld [vmem:[#allocation8 + $0xb0] sm:$0xff] }
  0x76   :  { %419 = vmatprep.subr.mxu1 %v338_v6  ;;  %1411 = vmatmul.mubr.msk.f32.vlgmr.msra.gmra.mxu0 %vm162_vm0, %v152_v5  ;;  %v330_v14 = vld [vmem:[#allocation8 + $0xa8] sm:$0xff]  ;;  %v329_v15 = vld [vmem:[#allocation8 + $0xa0] sm:$0xff]  ;;  %v328_v16 = vld [vmem:[#allocation8 + $0x98] sm:$0xff]  ;;  %p1677_p6 = por %p1676_p5, %p1675_p4 }
  0x77   :  { %420 = vmatpush1.msra.mxu1 %v337_v7  ;;  %v327_v17 = vld [vmem:[#allocation8 + $0x90] sm:$0xff]  ;;  %v404_v18 = vld [vmem:[#allocation8 + $0x2f8] sm:$0xff]  ;;  %v326_v19 = vld [vmem:[#allocation8 + $0x88] sm:$0xff] }
  0x78   :  { %421 = vmatprep.subr.mxu1 %v336_v8  ;;  %494 = vmatprep.subr.mxu0 %v404_v18  ;;  %v403_v20 = vld [vmem:[#allocation8 + $0x2f0] sm:$0xff]  ;;  %v402_v21 = vld [vmem:[#allocation8 + $0x2e8] sm:$0xff]  ;;  %v325_v22 = vld [vmem:[#allocation8 + $0x80] sm:$0xff]  ;;  %p1678_p7 = pnand %p1677_p6, %p1671_p3 }
  0x79   :  { %422 = vmatpush1.msra.mxu1 %v335_v9  ;;  %495 = vmatpush1.msra.mxu0 %v403_v20  ;;  %v401_v23 = vld [vmem:[#allocation8 + $0x2e0] sm:$0xff]  ;;  %v324_v24 = vld [vmem:[#allocation8 + $0x78] sm:$0xff]  ;;  %v399_v26 = vld [vmem:[#allocation8 + $0x2d0] sm:$0xff] }
  0x7a   :  { %423 = vmatprep.subr.mxu1 %v334_v10  ;;  %496 = vmatprep.subr.mxu0 %v402_v21  ;;  %v400_v25 = vld [vmem:[#allocation8 + $0x2d8] sm:$0xff]  ;;  %v323_v27 = vld [vmem:[#allocation8 + $0x70] sm:$0xff]  ;;  %v398_v28 = vld [vmem:[#allocation8 + $0x2c8] sm:$0xff] }
  0x7b   :  { %424 = vmatpush1.msra.mxu1 %v333_v11  ;;  %497 = vmatpush1.msra.mxu0 %v401_v23  ;;  %v322_v29 = vld [vmem:[#allocation8 + $0x68] sm:$0xff]  ;;  %v397_v30 = vld [vmem:[#allocation8 + $0x2c0] sm:$0xff]  ;;  %v396_v32 = vld [vmem:[#allocation8 + $0x2b8] sm:$0xff] }
  0x7c   :  { %425 = vmatprep.subr.mxu1 %v332_v12  ;;  %498 = vmatprep.subr.mxu0 %v400_v25  ;;  %v321_v31 = vld [vmem:[#allocation8 + $0x60] sm:$0xff]  ;;  %v320_v33 = vld [vmem:[#allocation8 + $0x58] sm:$0xff]  ;;  %v395_v34 = vld [vmem:[#allocation8 + $0x2b0] sm:$0xff] }
  0x7d   :  { %426 = vmatpush1.msra.mxu1 %v331_v13  ;;  %499 = vmatpush1.msra.mxu0 %v399_v26  ;;  %v319_v35 = vld [vmem:[#allocation8 + $0x50] sm:$0xff]  ;;  %v394_v36 = vld [vmem:[#allocation8 + $0x2a8] sm:$0xff]  ;;  %v393_v38 = vld [vmem:[#allocation8 + $0x2a0] sm:$0xff] }
  0x7e   :  { %427 = vmatprep.subr.mxu1 %v330_v14  ;;  %500 = vmatprep.subr.mxu0 %v398_v28  ;;  %v318_v37 = vld [vmem:[#allocation8 + $0x48] sm:$0xff]  ;;  %v317_v39 = vld [vmem:[#allocation8 + $0x40] sm:$0xff]  ;;  %v392_v40 = vld [vmem:[#allocation8 + $0x298] sm:$0xff] }
  0x7f   :  { %428 = vmatpush1.msra.mxu1 %v329_v15  ;;  %501 = vmatpush1.msra.mxu0 %v397_v30  ;;  %v316_v41 = vld [vmem:[#allocation8 + $0x38] sm:$0xff]  ;;  %v391_v42 = vld [vmem:[#allocation8 + $0x290] sm:$0xff]  ;;  %v390_v44 = vld [vmem:[#allocation8 + $0x288] sm:$0xff] }
  0x80   :  { %429 = vmatprep.subr.mxu1 %v328_v16  ;;  %502 = vmatprep.subr.mxu0 %v396_v32  ;;  %v315_v43 = vld [vmem:[#allocation8 + $0x30] sm:$0xff]  ;;  %v314_v45 = vld [vmem:[#allocation8 + $0x28] sm:$0xff]  ;;  %v389_v46 = vld [vmem:[#allocation8 + $0x280] sm:$0xff] }
  0x81   :  { %430 = vmatpush1.msra.mxu1 %v327_v17  ;;  %503 = vmatpush1.msra.mxu0 %v395_v34  ;;  %v313_v47 = vld [vmem:[#allocation8 + $0x20] sm:$0xff]  ;;  %v388_v48 = vld [vmem:[#allocation8 + $0x278] sm:$0xff]  ;;  %v387_v50 = vld [vmem:[#allocation8 + $0x270] sm:$0xff] }
  0x82   :  { %431 = vmatprep.subr.mxu1 %v326_v19  ;;  %504 = vmatprep.subr.mxu0 %v394_v36  ;;  %v312_v49 = vld [vmem:[#allocation8 + $0x18] sm:$0xff]  ;;  %v311_v51 = vld [vmem:[#allocation8 + $0x10] sm:$0xff]  ;;  %v386_v52 = vld [vmem:[#allocation8 + $0x268] sm:$0xff]  ;;  %v1718_v36 = vmov 0.0  }
  0x83   :  { %432 = vmatpush1.msra.mxu1 %v325_v22  ;;  %505 = vmatpush1.msra.mxu0 %v393_v38  ;;  %v310_v53 = vld [vmem:[#allocation8 + $0x8] sm:$0xff]  ;;  %v385_v54 = vld [vmem:[#allocation8 + $0x260] sm:$0xff]  ;;  %v384_v56 = vld [vmem:[#allocation8 + $0x258] sm:$0xff]  ;;  %v244_v38 = vlaneseq }
  0x84   :  { %433 = vmatprep.subr.mxu1 %v324_v24  ;;  %506 = vmatprep.subr.mxu0 %v392_v40  ;;  %v309_v55 = vld [vmem:[#allocation8] sm:$0xff]  ;;  %v372_v57 = vld [vmem:[#allocation8 + $0x1f8] sm:$0xff]  ;;  %v383_v58 = vld [vmem:[#allocation8 + $0x250] sm:$0xff] }
  0x85   :  { %434 = vmatpush1.msra.mxu1 %v323_v27  ;;  %507 = vmatpush1.msra.mxu0 %v391_v42  ;;  %v371_v59 = vld [vmem:[#allocation8 + $0x1f0] sm:$0xff]  ;;  %v382_v60 = vld [vmem:[#allocation8 + $0x248] sm:$0xff]  ;;  %v381_v62 = vld [vmem:[#allocation8 + $0x240] sm:$0xff] }
  0x86   :  { %435 = vmatprep.subr.mxu1 %v322_v29  ;;  %508 = vmatprep.subr.mxu0 %v390_v44  ;;  %v370_v61 = vld [vmem:[#allocation8 + $0x1e8] sm:$0xff]  ;;  %v369_v63 = vld [vmem:[#allocation8 + $0x1e0] sm:$0xff]  ;;  %v368_v0 = vld [vmem:[#allocation8 + $0x1d8] sm:$0xff] }
  0x87   :  { %436 = vmatpush1.msra.mxu1 %v321_v31  ;;  %509 = vmatpush1.msra.mxu0 %v389_v46  ;;  %v367_v1 = vld [vmem:[#allocation8 + $0x1d0] sm:$0xff]  ;;  %v366_v2 = vld [vmem:[#allocation8 + $0x1c8] sm:$0xff]  ;;  %v365_v3 = vld [vmem:[#allocation8 + $0x1c0] sm:$0xff] }
  0x88   :  { %437 = vmatprep.subr.mxu1 %v320_v33  ;;  %510 = vmatprep.subr.mxu0 %v388_v48  ;;  %v364_v4 = vld [vmem:[#allocation8 + $0x1b8] sm:$0xff]  ;;  %v363_v5 = vld [vmem:[#allocation8 + $0x1b0] sm:$0xff]  ;;  %v362_v6 = vld [vmem:[#allocation8 + $0x1a8] sm:$0xff] }
  0x89   :  { %438 = vmatpush1.msra.mxu1 %v319_v35  ;;  %511 = vmatpush1.msra.mxu0 %v387_v50  ;;  %v361_v7 = vld [vmem:[#allocation8 + $0x1a0] sm:$0xff]  ;;  %v360_v8 = vld [vmem:[#allocation8 + $0x198] sm:$0xff]  ;;  %v359_v9 = vld [vmem:[#allocation8 + $0x190] sm:$0xff] }
  0x8a   :  { %439 = vmatprep.subr.mxu1 %v318_v37  ;;  %512 = vmatprep.subr.mxu0 %v386_v52  ;;  %v358_v10 = vld [vmem:[#allocation8 + $0x188] sm:$0xff]  ;;  %v357_v11 = vld [vmem:[#allocation8 + $0x180] sm:$0xff]  ;;  %v356_v12 = vld [vmem:[#allocation8 + $0x178] sm:$0xff] }
  0x8b   :  { %440 = vmatpush1.msra.mxu1 %v317_v39  ;;  %513 = vmatpush1.msra.mxu0 %v385_v54  ;;  %v355_v13 = vld [vmem:[#allocation8 + $0x170] sm:$0xff]  ;;  %v354_v14 = vld [vmem:[#allocation8 + $0x168] sm:$0xff]  ;;  %v353_v15 = vld [vmem:[#allocation8 + $0x160] sm:$0xff]  ;;  %v1816_v39 = vshrl.u32 %v244_v38, 7 }
  0x8c   :  { %441 = vmatprep.subr.mxu1 %v316_v41  ;;  %514 = vmatprep.subr.mxu0 %v384_v56  ;;  %v352_v16 = vld [vmem:[#allocation8 + $0x158] sm:$0xff]  ;;  %v351_v17 = vld [vmem:[#allocation8 + $0x150] sm:$0xff]  ;;  %v350_v18 = vld [vmem:[#allocation8 + $0x148] sm:$0xff] }
  0x8d   :  { %442 = vmatpush1.msra.mxu1 %v315_v43  ;;  %515 = vmatpush1.msra.mxu0 %v383_v58  ;;  %v349_v19 = vld [vmem:[#allocation8 + $0x140] sm:$0xff]  ;;  %v348_v20 = vld [vmem:[#allocation8 + $0x138] sm:$0xff]  ;;  %v347_v22 = vld [vmem:[#allocation8 + $0x130] sm:$0xff]  ;;  %v251_v40 = vand.u32 7, %v1816_v39  ;;  %v246_v41 = vadd.s32 8, %v1816_v39  ;;  %vm289_vm1 = vcmp.lt.s32.totalorder %v1816_v39, 1 }
  0x8e   :  { %443 = vmatprep.subr.mxu1 %v314_v45  ;;  %516 = vmatprep.subr.mxu0 %v382_v60  ;;  %v380_v21 = vld [vmem:[#allocation8 + $0x238] sm:$0xff]  ;;  %v379_v23 = vld [vmem:[#allocation8 + $0x230] sm:$0xff]  ;;  %v346_v24 = vld [vmem:[#allocation8 + $0x128] sm:$0xff]  ;;  %vm300_vm2 = vcmp.lt.s32.totalorder %v1816_v39, 7 }
  0x8f   :  { %444 = vmatpush1.msra.mxu1 %v313_v47  ;;  %517 = vmatpush1.msra.mxu0 %v381_v62  ;;  %v378_v25 = vld [vmem:[#allocation8 + $0x228] sm:$0xff]  ;;  %v345_v26 = vld [vmem:[#allocation8 + $0x120] sm:$0xff]  ;;  %v344_v28 = vld [vmem:[#allocation8 + $0x118] sm:$0xff]  ;;  %v1820_v44 = vadd.s32 4294967295, %v251_v40  ;;  %v1822_v45 = vadd.s32 1, %v251_v40  ;;  %v258_v46 = vand.u32 7, %v246_v41 }
  0x90   :  { %445 = vmatprep.subr.mxu1 %v312_v49  ;;  %518 = vmatprep.subr.mxu0 %v380_v21  ;;  %v377_v27 = vld [vmem:[#allocation8 + $0x220] sm:$0xff]  ;;  %v376_v29 = vld [vmem:[#allocation8 + $0x218] sm:$0xff]  ;;  %v343_v30 = vld [vmem:[#allocation8 + $0x110] sm:$0xff] }
  0x91   :  { %446 = vmatpush1.msra.mxu1 %v311_v51  ;;  %519 = vmatpush1.msra.mxu0 %v379_v23  ;;  %v375_v31 = vld [vmem:[#allocation8 + $0x210] sm:$0xff]  ;;  %v342_v32 = vld [vmem:[#allocation8 + $0x108] sm:$0xff]  ;;  %v341_v34 = vld [vmem:[#allocation8 + $0x100] sm:$0xff]  ;;  %vm273_vm3 = vcmp.ge.s32.totalorder %v1820_v44, 0  ;;  %vm283_vm4 = vcmp.lt.s32.totalorder %v1822_v45, 8  ;;  %v1832_v50 = vadd.s32 4294967295, %v258_v46 }
  0x92   :  { %447 = vmatprep.subr.mxu1 %v310_v53  ;;  %520 = vmatprep.subr.mxu0 %v378_v25  ;;  %v374_v33 = vld [vmem:[#allocation8 + $0x208] sm:$0xff]  ;;  %v373_v35 = vld [vmem:[#allocation8 + $0x200] sm:$0xff]  ;;  %v651_v37 = vld [vmem:[#allocation8 + $0x3f8] sm:$0xff]  ;;  %v1834_v51 = vadd.s32 1, %v258_v46 }
  0x93   :  { %448 = vmatpush1.msra.mxu1 %v309_v55  ;;  %521 = vmatpush1.msra.mxu0 %v377_v27  ;;  %v1356_v42 = vld [vmem:[#allocation7] ss:$0 sm:$0xff]  ;;  %v650_v58 = vld [vmem:[#allocation8 + $0x3f0] sm:$0xff]  ;;  %vm274_vm5 = vcmp.ge.s32.totalorder %v1832_v50, 0  ;;  %v648_v60 = vld [vmem:[#allocation8 + $0x3e0] sm:$0xff] }
  0x94   :  { %449 = vmatprep.subr.mxu1 %v372_v57  ;;  %522 = vmatprep.subr.mxu0 %v376_v29  ;;  %vm284_vm6 = vcmp.lt.s32.totalorder %v1834_v51, 8  ;;  %v625_v21 = vld [vmem:[#allocation8 + $0x328] sm:$0xff]  ;;  %v623_v23 = vld [vmem:[#allocation8 + $0x318] sm:$0xff]  ;;  %v682_v29 = vld [vmem:[#allocation8 + $0x4f0] sm:$0xff] }
  0x95   :  { %450 = vmatpush2.msra.mxu1 %v371_v59  ;;  %523 = vmatpush1.msra.mxu0 %v375_v31  ;;  %v649_v59 = vld [vmem:[#allocation8 + $0x3e8] sm:$0xff]  ;;  %v683_v27 = vld [vmem:[#allocation8 + $0x4f8] sm:$0xff]  ;;  %v678_v38 = vld [vmem:[#allocation8 + $0x4d0] sm:$0xff] }
  0x96   :  { %451 = vmatprep.subr.mxu1 %v370_v61  ;;  %524 = vmatprep.subr.mxu0 %v374_v33  ;;  %v621_v25 = vld [vmem:[#allocation8 + $0x308] sm:$0xff]  ;;  %v680_v33 = vld [vmem:[#allocation8 + $0x4e0] sm:$0xff]  ;;  %v710_v40 = vld [vmem:[#allocation8 + $0x5d0] sm:$0xff] }
  0x97   :  { %452 = vmatpush2.msra.mxu1 %v369_v63  ;;  %525 = vmatpush1.msra.mxu0 %v373_v35  ;;  %v647_v63 = vld [vmem:[#allocation8 + $0x3d8] sm:$0xff]  ;;  %v681_v31 = vld [vmem:[#allocation8 + $0x4e8] sm:$0xff]  ;;  %v708_v46 = vld [vmem:[#allocation8 + $0x5c0] sm:$0xff] }
  0x98   :  { %453 = vmatprep.subr.mxu1 %v368_v0  ;;  %558 = vmatprep.mubr.f32.mxu0 %v1718_v36  ;;  %v646_v0 = vld [vmem:[#allocation8 + $0x3d0] sm:$0xff]  ;;  %v679_v35 = vld [vmem:[#allocation8 + $0x4d8] sm:$0xff]  ;;  %v677_v41 = vld [vmem:[#allocation8 + $0x4c8] sm:$0xff] }
  0x99   :  { %454 = vmatpush2.msra.mxu1 %v367_v1  ;;  %729 = vmatprep.subr.mxu0 %v651_v37  ;;  %v645_v1 = vld [vmem:[#allocation8 + $0x3c8] sm:$0xff]  ;;  %v711_v37 = vld [vmem:[#allocation8 + $0x5d8] sm:$0xff] }
  0x9a   :  { %455 = vmatprep.subr.mxu1 %v366_v2  ;;  %v644_v2 = vld [vmem:[#allocation8 + $0x3c0] sm:$0xff]  ;;  %v1244_v50 = vld [vmem:[#allocation14 + $0x48] sm:$0xff]  ;;  %v1243_v51 = vld [vmem:[#allocation14 + $0x40] sm:$0xff] }
  0x9b   :  { %456 = vmatpush2.msra.mxu1 %v365_v3  ;;  %v643_v3 = vld [vmem:[#allocation8 + $0x3b8] sm:$0xff]  ;;  %v1250_v44 = vld [vmem:[#allocation14 + $0x78] sm:$0xff] }
  0x9c   :  { %457 = vmatprep.subr.mxu1 %v364_v4  ;;  %v642_v4 = vld [vmem:[#allocation8 + $0x3b0] sm:$0xff]  ;;  %v1249_v45 = vld [vmem:[#allocation14 + $0x70] sm:$0xff] }
  0x9d   :  { %458 = vmatpush2.msra.mxu1 %v363_v5  ;;  %v641_v5 = vld [vmem:[#allocation8 + $0x3a8] sm:$0xff] }
  0x9e   :  { %459 = vmatprep.subr.mxu1 %v362_v6  ;;  %v640_v6 = vld [vmem:[#allocation8 + $0x3a0] sm:$0xff] }
  0x9f   :  { %460 = vmatpush2.msra.mxu1 %v361_v7  ;;  %v639_v7 = vld [vmem:[#allocation8 + $0x398] sm:$0xff] }
  0xa0   :  { %461 = vmatprep.subr.mxu1 %v360_v8  ;;  %v638_v8 = vld [vmem:[#allocation8 + $0x390] sm:$0xff] }
  0xa1   :  { %462 = vmatpush2.msra.mxu1 %v359_v9  ;;  %v637_v9 = vld [vmem:[#allocation8 + $0x388] sm:$0xff] }
  0xa2   :  { %463 = vmatprep.subr.mxu1 %v358_v10  ;;  %v636_v10 = vld [vmem:[#allocation8 + $0x380] sm:$0xff] }
  0xa3   :  { %464 = vmatpush2.msra.mxu1 %v357_v11  ;;  %v635_v11 = vld [vmem:[#allocation8 + $0x378] sm:$0xff] }
  0xa4   :  { %465 = vmatprep.subr.mxu1 %v356_v12  ;;  %v634_v12 = vld [vmem:[#allocation8 + $0x370] sm:$0xff] }
  0xa5   :  { %466 = vmatpush2.msra.mxu1 %v355_v13  ;;  %v633_v13 = vld [vmem:[#allocation8 + $0x368] sm:$0xff] }
  0xa6   :  { %467 = vmatprep.subr.mxu1 %v354_v14  ;;  %v632_v14 = vld [vmem:[#allocation8 + $0x360] sm:$0xff] }
  0xa7   :  { %468 = vmatpush2.msra.mxu1 %v353_v15  ;;  %v631_v15 = vld [vmem:[#allocation8 + $0x358] sm:$0xff] }
  0xa8   :  { %469 = vmatprep.subr.mxu1 %v352_v16  ;;  %v630_v16 = vld [vmem:[#allocation8 + $0x350] sm:$0xff] }
  0xa9   :  { %470 = vmatpush2.msra.mxu1 %v351_v17  ;;  %v629_v17 = vld [vmem:[#allocation8 + $0x348] sm:$0xff] }
  0xaa   :  { %471 = vmatprep.subr.mxu1 %v350_v18  ;;  %v628_v18 = vld [vmem:[#allocation8 + $0x340] sm:$0xff] }
  0xab   :  { %472 = vmatpush2.msra.mxu1 %v349_v19  ;;  %v627_v19 = vld [vmem:[#allocation8 + $0x338] sm:$0xff] }
  0xac   :  { %473 = vmatprep.subr.mxu1 %v348_v20  ;;  %v626_v20 = vld [vmem:[#allocation8 + $0x330] sm:$0xff] }
  0xad   :  { %474 = vmatpush2.msra.mxu1 %v347_v22  ;;  %v624_v22 = vld [vmem:[#allocation8 + $0x320] sm:$0xff] }
  0xae   :  { %475 = vmatprep.subr.mxu1 %v346_v24  ;;  %v622_v24 = vld [vmem:[#allocation8 + $0x310] sm:$0xff] }
  0xaf   :  { %476 = vmatpush2.msra.mxu1 %v345_v26  ;;  %v620_v26 = vld [vmem:[#allocation8 + $0x300] sm:$0xff] }
  0xb0   :  { %477 = vmatprep.subr.mxu1 %v344_v28  ;;  %v715_v28 = vld [vmem:[#allocation8 + $0x5f8] sm:$0xff] }
  0xb1   :  { %478 = vmatpush2.msra.mxu1 %v343_v30  ;;  %v714_v30 = vld [vmem:[#allocation8 + $0x5f0] sm:$0xff] }
  0xb2   :  { %479 = vmatprep.subr.mxu1 %v342_v32  ;;  %v713_v32 = vld [vmem:[#allocation8 + $0x5e8] sm:$0xff] }
  0xb3   :  { %480 = vmatpush2.msra.mxu1 %v341_v34  ;;  %v712_v34 = vld [vmem:[#allocation8 + $0x5e0] sm:$0xff] }
  0xb4   :  { %806 = vmatprep.subr.mxu1 %v715_v28  ;;  %v687_v28 = vld [vmem:[#allocation8 + $0x518] sm:$0xff] }
 0x136   :  { %v1412_v43 = vpop.f32.mrf.mxu0 }
 0x137   :  { %v1824_v47 = vadd.f32 %v1412_v43, %v1356_v42  ;;  %v676_v43 = vld [vmem:[#allocation8 + $0x4c0] sm:$0xff] }
 0x138   :  { %v235_v48 = vpop.f32.mrf.mxu0 }
 0x139   :  { %v1826_v49 = vadd.f32 %v1356_v42, %v235_v48  ;;  %v299_v52 = vrot.slane %v1824_v47, 1  ;;  %v288_v55 = vrot.slane %v1824_v47, 7  ;;  %v709_v42 = vld [vmem:[#allocation8 + $0x5c8] sm:$0xff]  ;;  %v675_v48 = vld [vmem:[#allocation8 + $0x4b8] sm:$0xff] }
 0x13b   :  { %v298_v53 = vrot.slane %v1826_v49, 1  ;;  %481 = vmatprep.mubr.f32.mxu1 %v1826_v49  ;;  %v287_v54 = vrot.slane %v1826_v49, 7 }
 0x13d   :  { %v291_v56 = vsel %vm289_vm1, %v288_v55, %v287_v54  ;;  %v301_v57 = vsel %vm300_vm2, %v298_v53, %v299_v52  ;;  %v290_v61 = vsel %vm289_vm1, %v287_v54, %v288_v55  ;;  %v302_v62 = vsel %vm300_vm2, %v299_v52, %v298_v53  ;;  %v707_v52 = vld [vmem:[#allocation8 + $0x5b8] sm:$0xff]  ;;  %v674_v53 = vld [vmem:[#allocation8 + $0x4b0] sm:$0xff]  ;;  %v673_v55 = vld [vmem:[#allocation8 + $0x4a8] sm:$0xff] }
 0x13e   :  { %1359 = vmatmul.mubr.msk.f32.vlgmr.msra.gmra.mxu1 %vm273_vm3, %v291_v56  ;;  %1361 = vmatmul.mubr.msk.f32.vlgmr.msra.gmra.mxu0 %vm283_vm4, %v301_v57  ;;  %v706_v54 = vld [vmem:[#allocation8 + $0x5b0] sm:$0xff]  ;;  %v705_v56 = vld [vmem:[#allocation8 + $0x5a8] sm:$0xff]  ;;  %v672_v57 = vld [vmem:[#allocation8 + $0x4a0] sm:$0xff] }
 0x13f   :  { %487 = vmatprep.mubr.f32.mxu1 %v1824_v47  ;;  %564 = vmatprep.mubr.f32.mxu0 %v1718_v36 }
 0x140   :  { %730 = vmatpush1.msra.mxu0 %v650_v58  ;;  %807 = vmatpush1.msra.mxu1 %v714_v30  ;;  %v704_v58 = vld [vmem:[#allocation8 + $0x5a0] sm:$0xff]  ;;  %v686_v30 = vld [vmem:[#allocation8 + $0x510] sm:$0xff] }
 0x141   :  { %731 = vmatprep.subr.mxu0 %v649_v59  ;;  %808 = vmatprep.subr.mxu1 %v713_v32  ;;  %v671_v59 = vld [vmem:[#allocation8 + $0x498] sm:$0xff]  ;;  %v685_v32 = vld [vmem:[#allocation8 + $0x508] sm:$0xff] }
 0x142   :  { %1360 = vmatmul.mubr.msk.f32.gmra.mxu1 %vm274_vm5, %v290_v61  ;;  %1362 = vmatmul.mubr.msk.f32.gmra.mxu0 %vm284_vm6, %v302_v62  ;;  %v670_v61 = vld [vmem:[#allocation8 + $0x490] sm:$0xff] }
 0x143   :  { %732 = vmatpush1.msra.mxu0 %v648_v60  ;;  %870 = vmatprep.mubr.f32.mxu1 %v1718_v36  ;;  %v703_v60 = vld [vmem:[#allocation8 + $0x598] sm:$0xff]  ;;  %v702_v62 = vld [vmem:[#allocation8 + $0x590] sm:$0xff] }
 0x144   :  { %733 = vmatprep.subr.mxu0 %v647_v63  ;;  %809 = vmatpush1.msra.mxu1 %v712_v34  ;;  %v669_v63 = vld [vmem:[#allocation8 + $0x488] sm:$0xff]  ;;  %v684_v34 = vld [vmem:[#allocation8 + $0x500] sm:$0xff] }
 0x145   :  { %734 = vmatpush1.msra.mxu0 %v646_v0  ;;  %810 = vmatprep.subr.mxu1 %v711_v37  ;;  %v701_v0 = vld [vmem:[#allocation8 + $0x588] sm:$0xff]  ;;  %v1863_v37 = vsub.s32 1, %v1816_v39 }
 0x146   :  { %735 = vmatprep.subr.mxu0 %v645_v1  ;;  %811 = vmatpush1.msra.mxu1 %v710_v40  ;;  %v668_v1 = vld [vmem:[#allocation8 + $0x480] sm:$0xff] }
 0x147   :  { %736 = vmatpush1.msra.mxu0 %v644_v2  ;;  %812 = vmatprep.subr.mxu1 %v709_v42  ;;  %v700_v2 = vld [vmem:[#allocation8 + $0x580] sm:$0xff] }
 0x148   :  { %737 = vmatprep.subr.mxu0 %v643_v3  ;;  %813 = vmatpush1.msra.mxu1 %v708_v46  ;;  %v667_v3 = vld [vmem:[#allocation8 + $0x478] sm:$0xff] }
 0x149   :  { %738 = vmatpush1.msra.mxu0 %v642_v4  ;;  %814 = vmatprep.subr.mxu1 %v707_v52  ;;  %v699_v4 = vld [vmem:[#allocation8 + $0x578] sm:$0xff] }
 0x14a   :  { %739 = vmatprep.subr.mxu0 %v641_v5  ;;  %815 = vmatpush1.msra.mxu1 %v706_v54  ;;  %v666_v5 = vld [vmem:[#allocation8 + $0x470] sm:$0xff] }
 0x14b   :  { %740 = vmatpush1.msra.mxu0 %v640_v6  ;;  %816 = vmatprep.subr.mxu1 %v705_v56  ;;  %v698_v6 = vld [vmem:[#allocation8 + $0x570] sm:$0xff] }
 0x14c   :  { %741 = vmatprep.subr.mxu0 %v639_v7  ;;  %817 = vmatpush1.msra.mxu1 %v704_v58  ;;  %v665_v7 = vld [vmem:[#allocation8 + $0x468] sm:$0xff] }
 0x14d   :  { %742 = vmatpush1.msra.mxu0 %v638_v8  ;;  %818 = vmatprep.subr.mxu1 %v703_v60  ;;  %v697_v8 = vld [vmem:[#allocation8 + $0x568] sm:$0xff] }
 0x14e   :  { %743 = vmatprep.subr.mxu0 %v637_v9  ;;  %819 = vmatpush1.msra.mxu1 %v702_v62  ;;  %v664_v9 = vld [vmem:[#allocation8 + $0x460] sm:$0xff] }
 0x14f   :  { %744 = vmatpush1.msra.mxu0 %v636_v10  ;;  %820 = vmatprep.subr.mxu1 %v701_v0  ;;  %v696_v10 = vld [vmem:[#allocation8 + $0x560] sm:$0xff] }
 0x150   :  { %745 = vmatprep.subr.mxu0 %v635_v11  ;;  %821 = vmatpush1.msra.mxu1 %v700_v2  ;;  %v663_v11 = vld [vmem:[#allocation8 + $0x458] sm:$0xff] }
 0x151   :  { %746 = vmatpush1.msra.mxu0 %v634_v12  ;;  %822 = vmatprep.subr.mxu1 %v699_v4  ;;  %v695_v12 = vld [vmem:[#allocation8 + $0x558] sm:$0xff] }
 0x152   :  { %747 = vmatprep.subr.mxu0 %v633_v13  ;;  %823 = vmatpush1.msra.mxu1 %v698_v6  ;;  %v662_v13 = vld [vmem:[#allocation8 + $0x450] sm:$0xff] }
 0x153   :  { %748 = vmatpush1.msra.mxu0 %v632_v14  ;;  %824 = vmatprep.subr.mxu1 %v697_v8  ;;  %v694_v14 = vld [vmem:[#allocation8 + $0x550] sm:$0xff] }
 0x154   :  { %749 = vmatprep.subr.mxu0 %v631_v15  ;;  %825 = vmatpush1.msra.mxu1 %v696_v10  ;;  %v661_v15 = vld [vmem:[#allocation8 + $0x448] sm:$0xff] }
 0x155   :  { %750 = vmatpush1.msra.mxu0 %v630_v16  ;;  %v693_v16 = vld [vmem:[#allocation8 + $0x548] sm:$0xff]  ;;  %826 = vmatprep.subr.mxu1 %v695_v12 }
 0x156   :  { %751 = vmatprep.subr.mxu0 %v629_v17  ;;  %v660_v17 = vld [vmem:[#allocation8 + $0x440] sm:$0xff]  ;;  %827 = vmatpush1.msra.mxu1 %v694_v14  ;;  %v1366_v14 = vld [vmem:[#allocation13] ss:$0 sm:$0xff] }
 0x157   :  { %752 = vmatpush1.msra.mxu0 %v628_v18  ;;  %v692_v18 = vld [vmem:[#allocation8 + $0x540] sm:$0xff]  ;;  %828 = vmatprep.subr.mxu1 %v693_v16 }
 0x158   :  { %753 = vmatprep.subr.mxu0 %v627_v19  ;;  %v659_v19 = vld [vmem:[#allocation8 + $0x438] sm:$0xff]  ;;  %829 = vmatpush1.msra.mxu1 %v692_v18 }
 0x159   :  { %754 = vmatpush1.msra.mxu0 %v626_v20  ;;  %v691_v20 = vld [vmem:[#allocation8 + $0x538] sm:$0xff] }
 0x15a   :  { %755 = vmatprep.subr.mxu0 %v625_v21  ;;  %v658_v21 = vld [vmem:[#allocation8 + $0x430] sm:$0xff]  ;;  %830 = vmatprep.subr.mxu1 %v691_v20 }
 0x15b   :  { %756 = vmatpush1.msra.mxu0 %v624_v22  ;;  %v690_v22 = vld [vmem:[#allocation8 + $0x530] sm:$0xff] }
 0x15c   :  { %757 = vmatprep.subr.mxu0 %v623_v23  ;;  %831 = vmatpush1.msra.mxu1 %v690_v22  ;;  %v657_v23 = vld [vmem:[#allocation8 + $0x428] sm:$0xff] }
 0x15d   :  { %758 = vmatpush1.msra.mxu0 %v622_v24  ;;  %v689_v24 = vld [vmem:[#allocation8 + $0x528] sm:$0xff] }
 0x15e   :  { %759 = vmatprep.subr.mxu0 %v621_v25  ;;  %832 = vmatprep.subr.mxu1 %v689_v24  ;;  %v656_v25 = vld [vmem:[#allocation8 + $0x420] sm:$0xff] }
 0x15f   :  { %760 = vmatpush1.msra.mxu0 %v620_v26  ;;  %v688_v26 = vld [vmem:[#allocation8 + $0x520] sm:$0xff] }
 0x160   :  { %761 = vmatprep.subr.mxu0 %v683_v27  ;;  %833 = vmatpush1.msra.mxu1 %v688_v26  ;;  %v655_v27 = vld [vmem:[#allocation8 + $0x418] sm:$0xff]  ;;  %v963_v26 = vld [vmem:[#allocation8 + $0x6e8] sm:$0xff] }
 0x161   :  { %762 = vmatpush2.msra.mxu0 %v682_v29  ;;  %v654_v29 = vld [vmem:[#allocation8 + $0x410] sm:$0xff]  ;;  %834 = vmatprep.subr.mxu1 %v687_v28 }
 0x162   :  { %763 = vmatprep.subr.mxu0 %v681_v31  ;;  %v653_v31 = vld [vmem:[#allocation8 + $0x408] sm:$0xff]  ;;  %835 = vmatpush1.msra.mxu1 %v686_v30  ;;  %v961_v30 = vld [vmem:[#allocation8 + $0x6d8] sm:$0xff] }
 0x163   :  { %764 = vmatpush2.msra.mxu0 %v680_v33  ;;  %v652_v33 = vld [vmem:[#allocation8 + $0x400] sm:$0xff]  ;;  %836 = vmatprep.subr.mxu1 %v685_v32  ;;  %v959_v32 = vld [vmem:[#allocation8 + $0x6c8] sm:$0xff] }
 0x164   :  { %765 = vmatprep.subr.mxu0 %v679_v35  ;;  %837 = vmatpush1.msra.mxu1 %v684_v34  ;;  %v965_v35 = vld [vmem:[#allocation8 + $0x6f8] sm:$0xff] }
 0x165   :  { %766 = vmatpush2.msra.mxu0 %v678_v38  ;;  %1043 = vmatprep.subr.mxu1 %v965_v35  ;;  %v405_v38 = vld [vmem:[#allocation10] sm:$0x3]  ;;  %v957_v34 = vld [vmem:[#allocation8 + $0x6b8] sm:$0xff]  ;;  %v956_v35 = vld [vmem:[#allocation8 + $0x6b0] sm:$0xff] }
 0x166   :  { %767 = vmatprep.subr.mxu0 %v677_v41  ;;  %v414_v40 = vrot.slane %v405_v38, %v1863_v37 }
 0x167   :  { %768 = vmatpush2.msra.mxu0 %v676_v43 }
 0x168   :  { %769 = vmatprep.subr.mxu0 %v675_v48 }
 0x169   :  { %770 = vmatpush2.msra.mxu0 %v674_v53 }
 0x16a   :  { %771 = vmatprep.subr.mxu0 %v673_v55 }
 0x16b   :  { %772 = vmatpush2.msra.mxu0 %v672_v57 }
 0x16c   :  { %773 = vmatprep.subr.mxu0 %v671_v59 }
 0x16d   :  { %774 = vmatpush2.msra.mxu0 %v670_v61 }
 0x16e   :  { %775 = vmatprep.subr.mxu0 %v669_v63  ;;  %v1867_v63 = vsub.s32 0, %v1816_v39  ;;  %v1246_v39 = vld [vmem:[#allocation14 + $0x58] sm:$0xff] }
 0x16f   :  { %776 = vmatpush2.msra.mxu0 %v668_v1 }
 0x170   :  { %777 = vmatprep.subr.mxu0 %v667_v3  ;;  %v410_v2 = vrot.slane %v405_v38, %v1867_v63  ;;  %v955_v38 = vld [vmem:[#allocation8 + $0x6a8] sm:$0xff] }
 0x171   :  { %778 = vmatpush2.msra.mxu0 %v666_v5 }
 0x172   :  { %779 = vmatprep.subr.mxu0 %v665_v7 }
 0x173   :  { %780 = vmatpush2.msra.mxu0 %v664_v9 }
 0x174   :  { %781 = vmatprep.subr.mxu0 %v663_v11  ;;  %v1365_v11 = vld [vmem:[#allocation11] ss:$0 sm:$0xff] }
 0x175   :  { %782 = vmatpush2.msra.mxu0 %v662_v13 }
 0x176   :  { %783 = vmatprep.subr.mxu0 %v661_v15 }
 0x177   :  { %784 = vmatpush2.msra.mxu0 %v660_v17 }
 0x178   :  { %785 = vmatprep.subr.mxu0 %v659_v19 }
 0x179   :  { %786 = vmatpush2.msra.mxu0 %v658_v21 }
 0x17a   :  { %787 = vmatprep.subr.mxu0 %v657_v23 }
 0x17b   :  { %788 = vmatpush2.msra.mxu0 %v656_v25  ;;  %v964_v25 = vld [vmem:[#allocation8 + $0x6f0] sm:$0xff] }
 0x17c   :  { %789 = vmatprep.subr.mxu0 %v655_v27  ;;  %v962_v27 = vld [vmem:[#allocation8 + $0x6e0] sm:$0xff] }
 0x17d   :  { %790 = vmatpush2.msra.mxu0 %v654_v29 }
 0x17e   :  { %791 = vmatprep.subr.mxu0 %v653_v31  ;;  %v960_v31 = vld [vmem:[#allocation8 + $0x6d0] sm:$0xff] }
 0x17f   :  { %792 = vmatpush2.msra.mxu0 %v652_v33  ;;  %v958_v33 = vld [vmem:[#allocation8 + $0x6c0] sm:$0xff] }
 0x1fe   :  { %v483_v41 = vpop.f32.mrf.mxu1  ;;  %v560_v42 = vpop.f32.mrf.mxu0 }
 0x1ff   :  { %v484_v3 = vadd.f32 %v483_v41, %v410_v2  ;;  %v953_v41 = vld [vmem:[#allocation8 + $0x698] sm:$0xff] }
 0x200   :  { %v485_v43 = vpop.f32.mrf.mxu1  ;;  %v562_v46 = vpop.f32.mrf.mxu0 }
 0x201   :  { %v486_v48 = vadd.f32 %v485_v43, %v414_v40  ;;  %v561_v4 = vadd.f32 %v560_v42, %v484_v3  ;;  %v952_v42 = vld [vmem:[#allocation8 + $0x690] sm:$0xff]  ;;  %v951_v43 = vld [vmem:[#allocation8 + $0x688] sm:$0xff]  ;;  %v934_v3 = vld [vmem:[#allocation8 + $0x600] sm:$0xff] }
 0x202   :  { %v489_v52 = vpop.f32.mrf.mxu1  ;;  %v566_v53 = vpop.f32.mrf.mxu0 }
 0x203   :  { %v563_v54 = vadd.f32 %v562_v46, %v486_v48  ;;  %v490_v5 = vadd.f32 %v489_v52, %v410_v2  ;;  %v950_v46 = vld [vmem:[#allocation8 + $0x680] sm:$0xff]  ;;  %v949_v48 = vld [vmem:[#allocation8 + $0x678] sm:$0xff]  ;;  %v948_v52 = vld [vmem:[#allocation8 + $0x670] sm:$0xff] }
 0x204   :  { %v491_v55 = vpop.f32.mrf.mxu1  ;;  %v568_v58 = vpop.f32.mrf.mxu0  ;;  %v935_v2 = vld [vmem:[#allocation8 + $0x608] sm:$0xff] }
 0x205   :  { %v1363_v56 = vmul.f32 -1.442695, %v563_v54  ;;  %v492_v57 = vadd.f32 %v491_v55, %v414_v40  ;;  %v567_v8 = vadd.f32 %v566_v53, %v490_v5  ;;  %v954_v40 = vld [vmem:[#allocation8 + $0x6a0] sm:$0xff]  ;;  %v947_v53 = vld [vmem:[#allocation8 + $0x668] sm:$0xff]  ;;  %v945_v55 = vld [vmem:[#allocation8 + $0x658] sm:$0xff] }
 0x206   :  { %v946_v54 = vld [vmem:[#allocation8 + $0x660] sm:$0xff]  ;;  %v1029_v5 = vld [vmem:[#allocation8 + $0x8f8] sm:$0xff] }
 0x207   :  { %1466 = vpow2.f32 %v1363_v56  ;;  %v569_v59 = vadd.f32 %v568_v58, %v492_v57  ;;  %v944_v56 = vld [vmem:[#allocation8 + $0x650] sm:$0xff]  ;;  %v943_v57 = vld [vmem:[#allocation8 + $0x648] sm:$0xff]  ;;  %v942_v58 = vld [vmem:[#allocation8 + $0x640] sm:$0xff]  ;;  %1120 = vmatprep.subr.mxu0 %v1029_v5 }
 0x208   :  { %v1002_v5 = vld [vmem:[#allocation8 + $0x820] sm:$0xff] }
 0x209   :  { %v1364_v60 = vmul.f32 -1.442695, %v569_v59  ;;  %v941_v59 = vld [vmem:[#allocation8 + $0x638] sm:$0xff] }
 0x20b   :  { %1468 = vpow2.f32 %v1364_v60  ;;  %v940_v60 = vld [vmem:[#allocation8 + $0x630] sm:$0xff] }
 0x214   :  { %v1467_v61 = vpop.eup %1466 }
 0x215   :  { %v577_v62 = vadd.f32 1.0, %v1467_v61  ;;  %v939_v61 = vld [vmem:[#allocation8 + $0x628] sm:$0xff] }
 0x217   :  { %1470 = vrcp.f32 %v577_v62  ;;  %v938_v62 = vld [vmem:[#allocation8 + $0x620] sm:$0xff] }
 0x218   :  { %v1469_v0 = vpop.eup %1468 }
 0x219   :  { %v578_v1 = vadd.f32 1.0, %v1469_v0  ;;  %v937_v0 = vld [vmem:[#allocation8 + $0x618] sm:$0xff] }
 0x21b   :  { %1472 = vrcp.f32 %v578_v1  ;;  %v936_v1 = vld [vmem:[#allocation8 + $0x610] sm:$0xff] }
 0x224   :  { %v1471_v6 = vpop.eup %1470 }
 0x225   :  { %v583_v7 = vmul.f32 %v1471_v6, %v561_v4  ;;  %v997_v4 = vld [vmem:[#allocation8 + $0x7f8] sm:$0xff]  ;;  %v996_v6 = vld [vmem:[#allocation8 + $0x7f0] sm:$0xff] }
 0x227   :  { %v585_v9 = vadd.f32 %v583_v7, %v1826_v49  ;;  %v1028_v7 = vld [vmem:[#allocation8 + $0x8f0] sm:$0xff] }
 0x228   :  { %v1473_v10 = vpop.eup %1472 }
 0x229   :  { %v584_v12 = vmul.f32 %v1473_v10, %v567_v8  ;;  %v587_v13 = vmul.f32 0.70710677, %v585_v9  ;;  %v995_v8 = vld [vmem:[#allocation8 + $0x7e8] sm:$0xff]  ;;  %v994_v10 = vld [vmem:[#allocation8 + $0x7e0] sm:$0xff] }
 0x22a   :  { %v1027_v9 = vld [vmem:[#allocation8 + $0x8e8] sm:$0xff] }
 0x22b   :  { %v586_v15 = vadd.f32 %v584_v12, %v1824_v47  ;;  %v596_v16 = vmul.f32 %v1365_v11, %v587_v13  ;;  %v993_v12 = vld [vmem:[#allocation8 + $0x7d8] sm:$0xff] }
 0x22c   :  { %v1025_v13 = vld [vmem:[#allocation8 + $0x8d8] sm:$0xff] }
 0x22d   :  { %v588_v17 = vmul.f32 0.70710677, %v586_v15  ;;  %v1872_v18 = vadd.f32 %v1366_v14, %v596_v16  ;;  %v1024_v15 = vld [vmem:[#allocation8 + $0x8d0] sm:$0xff]  ;;  %v991_v16 = vld [vmem:[#allocation8 + $0x7c8] sm:$0xff] }
 0x22f   :  { %v597_v19 = vmul.f32 %v1365_v11, %v588_v17  ;;  %793 = vmatprep.mubr.f32.mxu0 %v1872_v18  ;;  %v607_v21 = vrot.slane %v1872_v18, 7  ;;  %v613_v22 = vrot.slane %v1872_v18, 1  ;;  %v1026_v11 = vld [vmem:[#allocation8 + $0x8e0] sm:$0xff]  ;;  %v1023_v17 = vld [vmem:[#allocation8 + $0x8c8] sm:$0xff] }
 0x231   :  { %v1875_v20 = vadd.f32 %v1366_v14, %v597_v19  ;;  %v992_v14 = vld [vmem:[#allocation8 + $0x7d0] sm:$0xff]  ;;  %v990_v19 = vld [vmem:[#allocation8 + $0x7c0] sm:$0xff] }
 0x233   :  { %v608_v49 = vrot.slane %v1875_v20, 7  ;;  %v614_v23 = vrot.slane %v1875_v20, 1 }
 0x235   :  { %v610_v47 = vsel %vm289_vm1, %v608_v49, %v607_v21  ;;  %v615_v24 = vsel %vm300_vm2, %v613_v22, %v614_v23  ;;  %v609_v28 = vsel %vm289_vm1, %v607_v21, %v608_v49  ;;  %v616_v29 = vsel %vm300_vm2, %v614_v23, %v613_v22  ;;  %v1022_v21 = vld [vmem:[#allocation8 + $0x8c0] sm:$0xff]  ;;  %v989_v49 = vld [vmem:[#allocation8 + $0x7b8] sm:$0xff]  ;;  %v988_v23 = vld [vmem:[#allocation8 + $0x7b0] sm:$0xff] }
 0x236   :  { %1367 = vmatmul.mubr.msk.f32.vlgmr.msra.gmra.mxu0 %vm273_vm3, %v610_v47  ;;  %1369 = vmatmul.mubr.msk.f32.vlgmr.msra.gmra.mxu1 %vm283_vm4, %v615_v24  ;;  %v1021_v22 = vld [vmem:[#allocation8 + $0x8b8] sm:$0xff]  ;;  %v1020_v47 = vld [vmem:[#allocation8 + $0x8b0] sm:$0xff]  ;;  %v987_v24 = vld [vmem:[#allocation8 + $0x7a8] sm:$0xff] }
 0x237   :  { %799 = vmatprep.mubr.f32.mxu0 %v1875_v20  ;;  %876 = vmatprep.mubr.f32.mxu1 %v1718_v36 }
 0x238   :  { %1044 = vmatpush1.msra.mxu1 %v964_v25  ;;  %1121 = vmatpush1.msra.mxu0 %v1028_v7  ;;  %v1019_v25 = vld [vmem:[#allocation8 + $0x8a8] sm:$0xff]  ;;  %v1001_v7 = vld [vmem:[#allocation8 + $0x818] sm:$0xff] }
 0x239   :  { %1045 = vmatprep.subr.mxu1 %v963_v26  ;;  %1122 = vmatprep.subr.mxu0 %v1027_v9  ;;  %v986_v26 = vld [vmem:[#allocation8 + $0x7a0] sm:$0xff]  ;;  %v1000_v9 = vld [vmem:[#allocation8 + $0x810] sm:$0xff] }
 0x23a   :  { %1368 = vmatmul.mubr.msk.f32.gmra.mxu0 %vm274_vm5, %v609_v28  ;;  %1370 = vmatmul.mubr.msk.f32.gmra.mxu1 %vm284_vm6, %v616_v29  ;;  %v985_v28 = vld [vmem:[#allocation8 + $0x798] sm:$0xff] }
 0x23b   :  { %1046 = vmatpush1.msra.mxu1 %v962_v27  ;;  %1184 = vmatprep.mubr.f32.mxu0 %v1718_v36  ;;  %v1018_v27 = vld [vmem:[#allocation8 + $0x8a0] sm:$0xff]  ;;  %v1017_v29 = vld [vmem:[#allocation8 + $0x898] sm:$0xff] }
 0x23c   :  { %1047 = vmatprep.subr.mxu1 %v961_v30  ;;  %1123 = vmatpush1.msra.mxu0 %v1026_v11  ;;  %v984_v30 = vld [vmem:[#allocation8 + $0x790] sm:$0xff]  ;;  %v999_v11 = vld [vmem:[#allocation8 + $0x808] sm:$0xff] }
 0x23d   :  { %1048 = vmatpush1.msra.mxu1 %v960_v31  ;;  %1124 = vmatprep.subr.mxu0 %v1025_v13  ;;  %v1016_v31 = vld [vmem:[#allocation8 + $0x890] sm:$0xff]  ;;  %v998_v13 = vld [vmem:[#allocation8 + $0x800] sm:$0xff] }
 0x23e   :  { %1049 = vmatprep.subr.mxu1 %v959_v32  ;;  %1125 = vmatpush1.msra.mxu0 %v1024_v15  ;;  %v983_v32 = vld [vmem:[#allocation8 + $0x788] sm:$0xff] }
 0x23f   :  { %1050 = vmatpush1.msra.mxu1 %v958_v33  ;;  %1126 = vmatprep.subr.mxu0 %v1023_v17  ;;  %v1015_v33 = vld [vmem:[#allocation8 + $0x888] sm:$0xff] }
 0x240   :  { %1051 = vmatprep.subr.mxu1 %v957_v34  ;;  %1127 = vmatpush1.msra.mxu0 %v1022_v21  ;;  %v982_v34 = vld [vmem:[#allocation8 + $0x780] sm:$0xff] }
 0x241   :  { %1052 = vmatpush1.msra.mxu1 %v956_v35  ;;  %1128 = vmatprep.subr.mxu0 %v1021_v22  ;;  %v1014_v35 = vld [vmem:[#allocation8 + $0x880] sm:$0xff] }
 0x242   :  { %1053 = vmatprep.subr.mxu1 %v955_v38  ;;  %1129 = vmatpush1.msra.mxu0 %v1020_v47  ;;  %v981_v38 = vld [vmem:[#allocation8 + $0x778] sm:$0xff] }
 0x243   :  { %1054 = vmatpush1.msra.mxu1 %v954_v40  ;;  %1130 = vmatprep.subr.mxu0 %v1019_v25  ;;  %v1013_v40 = vld [vmem:[#allocation8 + $0x878] sm:$0xff] }
 0x244   :  { %1055 = vmatprep.subr.mxu1 %v953_v41  ;;  %1131 = vmatpush1.msra.mxu0 %v1018_v27  ;;  %v980_v41 = vld [vmem:[#allocation8 + $0x770] sm:$0xff] }
 0x245   :  { %1056 = vmatpush1.msra.mxu1 %v952_v42  ;;  %1132 = vmatprep.subr.mxu0 %v1017_v29  ;;  %v1012_v42 = vld [vmem:[#allocation8 + $0x870] sm:$0xff] }
 0x246   :  { %1057 = vmatprep.subr.mxu1 %v951_v43  ;;  %1133 = vmatpush1.msra.mxu0 %v1016_v31  ;;  %v979_v43 = vld [vmem:[#allocation8 + $0x768] sm:$0xff] }
 0x247   :  { %1058 = vmatpush1.msra.mxu1 %v950_v46  ;;  %1134 = vmatprep.subr.mxu0 %v1015_v33  ;;  %v1011_v46 = vld [vmem:[#allocation8 + $0x868] sm:$0xff] }
 0x248   :  { %1059 = vmatprep.subr.mxu1 %v949_v48  ;;  %1135 = vmatpush1.msra.mxu0 %v1014_v35  ;;  %v978_v48 = vld [vmem:[#allocation8 + $0x760] sm:$0xff] }
 0x249   :  { %1060 = vmatpush1.msra.mxu1 %v948_v52  ;;  %1136 = vmatprep.subr.mxu0 %v1013_v40  ;;  %v1010_v52 = vld [vmem:[#allocation8 + $0x860] sm:$0xff] }
 0x24a   :  { %1061 = vmatprep.subr.mxu1 %v947_v53  ;;  %1137 = vmatpush1.msra.mxu0 %v1012_v42  ;;  %v977_v53 = vld [vmem:[#allocation8 + $0x758] sm:$0xff] }
 0x24b   :  { %1062 = vmatpush1.msra.mxu1 %v946_v54  ;;  %v1009_v54 = vld [vmem:[#allocation8 + $0x858] sm:$0xff]  ;;  %1138 = vmatprep.subr.mxu0 %v1011_v46 }
 0x24c   :  { %1063 = vmatprep.subr.mxu1 %v945_v55  ;;  %v976_v55 = vld [vmem:[#allocation8 + $0x750] sm:$0xff]  ;;  %1139 = vmatpush1.msra.mxu0 %v1010_v52  ;;  %v1373_v52 = vld [vmem:[#allocation11 + $0x1] ss:$0 sm:$0xff] }
 0x24d   :  { %1064 = vmatpush1.msra.mxu1 %v944_v56  ;;  %v1008_v56 = vld [vmem:[#allocation8 + $0x850] sm:$0xff]  ;;  %1140 = vmatprep.subr.mxu0 %v1009_v54 }
 0x24e   :  { %1065 = vmatprep.subr.mxu1 %v943_v57  ;;  %v975_v57 = vld [vmem:[#allocation8 + $0x748] sm:$0xff]  ;;  %1141 = vmatpush1.msra.mxu0 %v1008_v56 }
 0x24f   :  { %1066 = vmatpush1.msra.mxu1 %v942_v58  ;;  %v1007_v58 = vld [vmem:[#allocation8 + $0x848] sm:$0xff] }
 0x250   :  { %1067 = vmatprep.subr.mxu1 %v941_v59  ;;  %v974_v59 = vld [vmem:[#allocation8 + $0x740] sm:$0xff]  ;;  %1142 = vmatprep.subr.mxu0 %v1007_v58 }
 0x251   :  { %1068 = vmatpush1.msra.mxu1 %v940_v60  ;;  %v1006_v60 = vld [vmem:[#allocation8 + $0x840] sm:$0xff] }
 0x252   :  { %1069 = vmatprep.subr.mxu1 %v939_v61  ;;  %v973_v61 = vld [vmem:[#allocation8 + $0x738] sm:$0xff]  ;;  %1143 = vmatpush1.msra.mxu0 %v1006_v60 }
 0x253   :  { %1070 = vmatpush1.msra.mxu1 %v938_v62  ;;  %v1005_v62 = vld [vmem:[#allocation8 + $0x838] sm:$0xff] }
 0x254   :  { %1071 = vmatprep.subr.mxu1 %v937_v0  ;;  %v972_v0 = vld [vmem:[#allocation8 + $0x730] sm:$0xff]  ;;  %1144 = vmatprep.subr.mxu0 %v1005_v62 }
 0x255   :  { %1072 = vmatpush1.msra.mxu1 %v936_v1  ;;  %v1004_v1 = vld [vmem:[#allocation8 + $0x830] sm:$0xff] }
 0x256   :  { %1073 = vmatprep.subr.mxu1 %v935_v2  ;;  %1145 = vmatpush1.msra.mxu0 %v1004_v1  ;;  %v971_v2 = vld [vmem:[#allocation8 + $0x728] sm:$0xff] }
 0x257   :  { %1074 = vmatpush1.msra.mxu1 %v934_v3  ;;  %v1003_v3 = vld [vmem:[#allocation8 + $0x828] sm:$0xff] }
 0x258   :  { %1075 = vmatprep.subr.mxu1 %v997_v4  ;;  %1146 = vmatprep.subr.mxu0 %v1003_v3  ;;  %v970_v4 = vld [vmem:[#allocation8 + $0x720] sm:$0xff] }
 0x259   :  { %1076 = vmatpush2.msra.mxu1 %v996_v6  ;;  %1147 = vmatpush1.msra.mxu0 %v1002_v5  ;;  %v969_v6 = vld [vmem:[#allocation8 + $0x718] sm:$0xff] }
 0x25a   :  { %1077 = vmatprep.subr.mxu1 %v995_v8  ;;  %v968_v8 = vld [vmem:[#allocation8 + $0x710] sm:$0xff]  ;;  %1148 = vmatprep.subr.mxu0 %v1001_v7  ;;  %v1242_v7 = vld [vmem:[#allocation14 + $0x38] sm:$0xff] }
 0x25b   :  { %1078 = vmatpush2.msra.mxu1 %v994_v10  ;;  %v967_v10 = vld [vmem:[#allocation8 + $0x708] sm:$0xff]  ;;  %1149 = vmatpush1.msra.mxu0 %v1000_v9  ;;  %v1248_v5 = vld [vmem:[#allocation14 + $0x68] sm:$0xff] }
 0x25c   :  { %1079 = vmatprep.subr.mxu1 %v993_v12  ;;  %v966_v12 = vld [vmem:[#allocation8 + $0x700] sm:$0xff]  ;;  %1150 = vmatprep.subr.mxu0 %v999_v11  ;;  %v1240_v9 = vld [vmem:[#allocation14 + $0x28] sm:$0xff] }
 0x25d   :  { %1080 = vmatpush2.msra.mxu1 %v992_v14  ;;  %1151 = vmatpush1.msra.mxu0 %v998_v13  ;;  %v717_v14 = vld [vmem:[#allocation10 + $0x2] sm:$0x3]  ;;  %v1238_v11 = vld [vmem:[#allocation14 + $0x18] sm:$0xff]  ;;  %v1236_v13 = vld [vmem:[#allocation14 + $0x8] sm:$0xff] }
 0x25e   :  { %1081 = vmatprep.subr.mxu1 %v991_v16  ;;  %v726_v15 = vrot.slane %v717_v14, %v1863_v37  ;;  %1413 = vmatprep.subr.mxu0 %v1250_v44 }
 0x25f   :  { %1082 = vmatpush2.msra.mxu1 %v990_v19 }
 0x260   :  { %1083 = vmatprep.subr.mxu1 %v989_v49 }
 0x261   :  { %1084 = vmatpush2.msra.mxu1 %v988_v23 }
 0x262   :  { %1085 = vmatprep.subr.mxu1 %v987_v24 }
 0x263   :  { %1086 = vmatpush2.msra.mxu1 %v986_v26 }
 0x264   :  { %1087 = vmatprep.subr.mxu1 %v985_v28 }
 0x265   :  { %1088 = vmatpush2.msra.mxu1 %v984_v30 }
 0x266   :  { %1089 = vmatprep.subr.mxu1 %v983_v32 }
 0x267   :  { %1090 = vmatpush2.msra.mxu1 %v982_v34  ;;  %v722_v34 = vrot.slane %v717_v14, %v1867_v63  ;;  %v1235_v14 = vld [vmem:[#allocation14] sm:$0xff] }
 0x268   :  { %1091 = vmatprep.subr.mxu1 %v981_v38 }
 0x269   :  { %1092 = vmatpush2.msra.mxu1 %v980_v41 }
 0x26a   :  { %1093 = vmatprep.subr.mxu1 %v979_v43 }
 0x26b   :  { %1094 = vmatpush2.msra.mxu1 %v978_v48 }
 0x26c   :  { %1095 = vmatprep.subr.mxu1 %v977_v53 }
 0x26d   :  { %1096 = vmatpush2.msra.mxu1 %v976_v55  ;;  %v1374_v55 = vld [vmem:[#allocation13 + $0x1] ss:$0 sm:$0xff] }
 0x26e   :  { %1097 = vmatprep.subr.mxu1 %v975_v57 }
 0x26f   :  { %1098 = vmatpush2.msra.mxu1 %v974_v59 }
 0x270   :  { %1099 = vmatprep.subr.mxu1 %v973_v61 }
 0x271   :  { %1100 = vmatpush2.msra.mxu1 %v972_v0 }
 0x272   :  { %1101 = vmatprep.subr.mxu1 %v971_v2 }
 0x273   :  { %1102 = vmatpush2.msra.mxu1 %v970_v4 }
 0x274   :  { %1103 = vmatprep.subr.mxu1 %v969_v6  ;;  %v1245_v6 = vld [vmem:[#allocation14 + $0x50] sm:$0xff] }
 0x275   :  { %1104 = vmatpush2.msra.mxu1 %v968_v8  ;;  %v1241_v8 = vld [vmem:[#allocation14 + $0x30] sm:$0xff] }
 0x276   :  { %1105 = vmatprep.subr.mxu1 %v967_v10  ;;  %v1239_v10 = vld [vmem:[#allocation14 + $0x20] sm:$0xff] }
 0x277   :  { %1106 = vmatpush2.msra.mxu1 %v966_v12  ;;  %v1237_v12 = vld [vmem:[#allocation14 + $0x10] sm:$0xff] }
 0x2f6   :  { %v795_v16 = vpop.f32.mrf.mxu0  ;;  %v872_v17 = vpop.f32.mrf.mxu1 }
 0x2f7   :  { %v796_v35 = vadd.f32 %v795_v16, %v722_v34 }
 0x2f8   :  { %v797_v19 = vpop.f32.mrf.mxu0  ;;  %v874_v21 = vpop.f32.mrf.mxu1 }
 0x2f9   :  { %v798_v49 = vadd.f32 %v797_v19, %v726_v15  ;;  %v873_v38 = vadd.f32 %v872_v17, %v796_v35 }
 0x2fa   :  { %v801_v22 = vpop.f32.mrf.mxu0  ;;  %v878_v23 = vpop.f32.mrf.mxu1 }
 0x2fb   :  { %v875_v47 = vadd.f32 %v874_v21, %v798_v49  ;;  %v802_v40 = vadd.f32 %v801_v22, %v722_v34 }
 0x2fc   :  { %v803_v24 = vpop.f32.mrf.mxu0  ;;  %v880_v27 = vpop.f32.mrf.mxu1 }
 0x2fd   :  { %v1371_v25 = vmul.f32 -1.442695, %v875_v47  ;;  %v804_v26 = vadd.f32 %v803_v24, %v726_v15  ;;  %v879_v43 = vadd.f32 %v878_v23, %v802_v40  ;;  %v1031_v15 = vld [vmem:[#allocation10 + $0x4] sm:$0x3] }
 0x2fe   :  { %v1040_v16 = vrot.slane %v1031_v15, %v1863_v37  ;;  %v1036_v34 = vrot.slane %v1031_v15, %v1867_v63 }
 0x2ff   :  { %1474 = vpow2.f32 %v1371_v25  ;;  %v881_v28 = vadd.f32 %v880_v27, %v804_v26 }
 0x301   :  { %v1372_v29 = vmul.f32 -1.442695, %v881_v28 }
 0x303   :  { %1476 = vpow2.f32 %v1372_v29 }
 0x30c   :  { %v1475_v30 = vpop.eup %1474 }
 0x30d   :  { %v889_v31 = vadd.f32 1.0, %v1475_v30 }
 0x30f   :  { %1478 = vrcp.f32 %v889_v31 }
 0x310   :  { %v1477_v32 = vpop.eup %1476 }
 0x311   :  { %v890_v33 = vadd.f32 1.0, %v1477_v32 }
 0x313   :  { %1480 = vrcp.f32 %v890_v33 }
 0x31c   :  { %v1479_v41 = vpop.eup %1478 }
 0x31d   :  { %v895_v42 = vmul.f32 %v1479_v41, %v873_v38 }
 0x31f   :  { %v897_v46 = vadd.f32 %v895_v42, %v1872_v18 }
 0x320   :  { %v1481_v48 = vpop.eup %1480 }
 0x321   :  { %v896_v53 = vmul.f32 %v1481_v48, %v879_v43  ;;  %v899_v54 = vmul.f32 0.70710677, %v897_v46 }
 0x323   :  { %v898_v56 = vadd.f32 %v896_v53, %v1875_v20  ;;  %v909_v57 = vmul.f32 %v1373_v52, %v899_v54 }
 0x325   :  { %v900_v58 = vmul.f32 0.70710677, %v898_v56  ;;  %v1904_v59 = vadd.f32 %v1374_v55, %v909_v57 }
 0x327   :  { %v910_v60 = vmul.f32 %v1373_v52, %v900_v58  ;;  %1107 = vmatprep.mubr.f32.mxu1 %v1904_v59  ;;  %v921_v62 = vrot.slane %v1904_v59, 7  ;;  %v927_v0 = vrot.slane %v1904_v59, 1  ;;  %v1381_v52 = vld [vmem:[#allocation11 + $0x2] ss:$0 sm:$0xff] }
 0x329   :  { %v1907_v61 = vadd.f32 %v1374_v55, %v910_v60  ;;  %v1382_v55 = vld [vmem:[#allocation13 + $0x2] ss:$0 sm:$0xff] }
 0x32b   :  { %v922_v18 = vrot.slane %v1907_v61, 7  ;;  %v928_v1 = vrot.slane %v1907_v61, 1 }
 0x32d   :  { %v924_v20 = vsel %vm289_vm1, %v922_v18, %v921_v62  ;;  %v929_v2 = vsel %vm300_vm2, %v927_v0, %v928_v1  ;;  %v923_v3 = vsel %vm289_vm1, %v921_v62, %v922_v18  ;;  %v930_v4 = vsel %vm300_vm2, %v928_v1, %v927_v0  ;;  %v1383_v18 = vld [vmem:[#allocation16] ss:$0 sm:$0xff] }
 0x32e   :  { %1375 = vmatmul.mubr.msk.f32.vlgmr.msra.gmra.mxu1 %vm273_vm3, %v924_v20  ;;  %1377 = vmatmul.mubr.msk.f32.vlgmr.msra.gmra.mxu0 %vm283_vm4, %v929_v2 }
 0x32f   :  { %1113 = vmatprep.mubr.f32.mxu1 %v1907_v61  ;;  %1190 = vmatprep.mubr.f32.mxu0 %v1718_v36  ;;  %v1247_v36 = vld [vmem:[#allocation14 + $0x60] sm:$0xff] }
 0x330   :  { %1414 = vmatpush3.msra.mxu0 %v1250_v44 }
 0x331   :  { %1415 = vmatprep.subr.mxu0 %v1249_v45 }
 0x332   :  { %1376 = vmatmul.mubr.msk.f32.gmra.mxu1 %vm274_vm5, %v923_v3  ;;  %1378 = vmatmul.mubr.msk.f32.gmra.mxu0 %vm284_vm6, %v930_v4 }
 0x333   :  { %1416 = vmatpush3.msra.mxu0 %v1249_v45 }
 0x334   :  { %1417 = vmatprep.subr.mxu0 %v1248_v5 }
 0x335   :  { %1418 = vmatpush3.msra.mxu0 %v1248_v5 }
 0x336   :  { %1419 = vmatprep.subr.mxu0 %v1247_v36 }
 0x337   :  { %1420 = vmatpush3.msra.mxu0 %v1247_v36 }
 0x338   :  { %1421 = vmatprep.subr.mxu0 %v1246_v39 }
 0x339   :  { %1422 = vmatpush3.msra.mxu0 %v1246_v39 }
 0x33a   :  { %1423 = vmatprep.subr.mxu0 %v1245_v6 }
 0x33b   :  { %1424 = vmatpush3.msra.mxu0 %v1245_v6 }
 0x33c   :  { %1425 = vmatprep.subr.mxu0 %v1244_v50 }
 0x33d   :  { %1426 = vmatpush3.msra.mxu0 %v1244_v50 }
 0x33e   :  { %1427 = vmatprep.subr.mxu0 %v1243_v51 }
 0x33f   :  { %1428 = vmatpush3.msra.mxu0 %v1243_v51 }
 0x340   :  { %1429 = vmatprep.subr.mxu0 %v1242_v7 }
 0x341   :  { %1430 = vmatpush3.msra.mxu0 %v1242_v7 }
 0x342   :  { %1431 = vmatprep.subr.mxu0 %v1241_v8 }
 0x343   :  { %1432 = vmatpush3.msra.mxu0 %v1241_v8 }
 0x344   :  { %1433 = vmatprep.subr.mxu0 %v1240_v9 }
 0x345   :  { %1434 = vmatpush3.msra.mxu0 %v1240_v9 }
 0x346   :  { %1435 = vmatprep.subr.mxu0 %v1239_v10 }
 0x347   :  { %1436 = vmatpush3.msra.mxu0 %v1239_v10 }
 0x348   :  { %1437 = vmatprep.subr.mxu0 %v1238_v11 }
 0x349   :  { %1438 = vmatpush3.msra.mxu0 %v1238_v11 }
 0x34a   :  { %1439 = vmatprep.subr.mxu0 %v1237_v12 }
 0x34b   :  { %1440 = vmatpush3.msra.mxu0 %v1237_v12 }
 0x34c   :  { %1441 = vmatprep.subr.mxu0 %v1236_v13 }
 0x34d   :  { %1442 = vmatpush3.msra.mxu0 %v1236_v13 }
 0x34e   :  { %1443 = vmatprep.subr.mxu0 %v1235_v14 }
 0x34f   :  { %1444 = vmatpush3.msra.mxu0 %v1235_v14 }
 0x3ee   :  { %v1109_v17 = vpop.f32.mrf.mxu1  ;;  %v1186_v19 = vpop.f32.mrf.mxu0 }
 0x3ef   :  { %v1110_v35 = vadd.f32 %v1109_v17, %v1036_v34 }
 0x3f0   :  { %v1111_v21 = vpop.f32.mrf.mxu1  ;;  %v1188_v49 = vpop.f32.mrf.mxu0 }
 0x3f1   :  { %v1112_v22 = vadd.f32 %v1111_v21, %v1040_v16  ;;  %v1187_v38 = vadd.f32 %v1186_v19, %v1110_v35 }
 0x3f2   :  { %v1115_v23 = vpop.f32.mrf.mxu1  ;;  %v1192_v47 = vpop.f32.mrf.mxu0 }
 0x3f3   :  { %v1189_v24 = vadd.f32 %v1188_v49, %v1112_v22  ;;  %v1116_v40 = vadd.f32 %v1115_v23, %v1036_v34 }
 0x3f4   :  { %v1117_v25 = vpop.f32.mrf.mxu1  ;;  %v1194_v28 = vpop.f32.mrf.mxu0 }
 0x3f5   :  { %v1379_v26 = vmul.f32 -1.442695, %v1189_v24  ;;  %v1118_v27 = vadd.f32 %v1117_v25, %v1040_v16  ;;  %v1193_v43 = vadd.f32 %v1192_v47, %v1116_v40 }
 0x3f7   :  { %1482 = vpow2.f32 %v1379_v26  ;;  %v1195_v29 = vadd.f32 %v1194_v28, %v1118_v27 }
 0x3f9   :  { %v1380_v30 = vmul.f32 -1.442695, %v1195_v29 }
 0x3fb   :  { %1484 = vpow2.f32 %v1380_v30 }
 0x404   :  { %v1483_v31 = vpop.eup %1482 }
 0x405   :  { %v1203_v32 = vadd.f32 1.0, %v1483_v31 }
 0x407   :  { %1486 = vrcp.f32 %v1203_v32 }
 0x408   :  { %v1485_v37 = vpop.eup %1484 }
 0x409   :  { %v1204_v33 = vadd.f32 1.0, %v1485_v37 }
 0x40b   :  { %1488 = vrcp.f32 %v1204_v33 }
 0x414   :  { %v1487_v41 = vpop.eup %1486 }
 0x415   :  { %v1209_v42 = vmul.f32 %v1487_v41, %v1187_v38 }
 0x417   :  { %v1211_v46 = vadd.f32 %v1209_v42, %v1904_v59 }
 0x418   :  { %v1489_v48 = vpop.eup %1488 }
 0x419   :  { %v1210_v53 = vmul.f32 %v1489_v48, %v1193_v43  ;;  %v1213_v54 = vmul.f32 0.70710677, %v1211_v46 }
 0x41b   :  { %v1212_v56 = vadd.f32 %v1210_v53, %v1907_v61  ;;  %v1223_v57 = vmul.f32 %v1381_v52, %v1213_v54 }
 0x41d   :  { %v1214_v58 = vmul.f32 0.70710677, %v1212_v56  ;;  %v1233_v60 = vadd.f32 %v1382_v55, %v1223_v57 }
 0x41f   :  { %v1224_v63 = vmul.f32 %v1381_v52, %v1214_v58  ;;  %1445 = vmatprep.mubr.f32.mxu0 %v1233_v60 }
 0x421   :  { %v1234_v62 = vadd.f32 %v1382_v55, %v1224_v63 }
 0x423   :  { %1446 = vmatmul.mubr.f32.vlgmr.msra.gmra.mxu0 %v1234_v62 }
 0x4e3   :  { %v1447_v0 = vpop.f32.mrf.mxu0 }
 0x4e4   :  { %v1330_v1 = vadd.f32 %v1447_v0, %v1383_v18 }
 0x4e5   :  { %v1324_v59 = vpop.f32.mrf.mxu0 }
 0x4e6   :  { %1334 = vst [vmem:[#allocation17 + $0x8] sm:$0xff] %v1330_v1  ;;  %v1325_v20 = vadd.f32 %v1383_v18, %v1324_v59 }
 0x4e8   :  { %1333 = vst [vmem:[#allocation17] sm:$0xff] %v1325_v20 }
 0x4e9   :  { %1681 = shalt.err (!%p1678_p7)
}
 0x4ea   :  { %1346 = dma.vmem_to_hbm [thread:$0]  %s1341_s8, 256, %s1950_s9, [#allocation4], %s1704_s14, %s1704_s14, %s1705_s15  }
 0x4eb   :  { %1700 = dma.done.wait [#allocation4], 256  }
 0x4ec   :  { %1701 = vsyncadd [#allocation4], 4294967040 }
 0x4ed   :  { %1350 = vsyncpa [#allocation3], 1 }
 0x4ee   :  { %1351 = vsyncpa [#allocation6], 1 }
 0x4ef   :  { %1352 = vsyncpa [#allocation9], 1 }
 0x4f0   :  { %1353 = vsyncpa [#allocation12], 1 }
 0x4f1   :  { %1354 = vsyncpa [#allocation15], 1 }
 0x4f2   :  { %1355 = vsyncpa [#allocation4], 1 }

</bundles_post_ra>
